<compile_context>
chip_gen: v7x
topology: tpu7x:2x2x1
jax: 0.10.0
libtpu: 0.0.40
codegen_flags: <defaults>
</compile_context>

<pallas_src>
import functools

import jax
import jax.numpy as jnp
from jax.experimental import pallas as pl
from jax.experimental.pallas import tpu as pltpu

LAYERS = [64, 128, 128, 256, 128]
IN_DIM = 3
N_LAYERS = len(LAYERS)
FEAT = LAYERS[-1]      # 128
HIDDEN0 = LAYERS[0]    # 64
_MIB = 1024 * 1024


# ---------------------------------------------------------------------------
# Kernels
# ---------------------------------------------------------------------------
def _mlp1_kernel(x_ref, *refs, compute_dtype):
    """Pass 1: per-point MLP1, running per-batch max, fused first MLP2 layer.

    x_ref : (TB, TN, 3)
    refs  : w1_0..w1_4, b1_0..b1_4, w2p (128,64),
            hp_ref (TB, TN, 64), g_ref (TB, 1, 128)
    """
    w = refs[0:N_LAYERS]
    b = refs[N_LAYERS:2 * N_LAYERS]
    w2p_ref = refs[2 * N_LAYERS]
    hp_ref, g_ref = refs[-2], refs[-1]
    ni = pl.program_id(1)

    x = x_ref[...].astype(jnp.float32)                 # (TB, TN, 3)
    TB, TN, _ = x.shape
    M = TB * TN

    # Layer 0 (in_dim = 3): three broadcast FMAs on the VPU (keeps K=3 off the
    # MXU and avoids any wrapper-side channel pad).
    w0 = w[0][...].astype(jnp.float32)                 # (3, 64)
    h = (x[:, :, 0:1] * w0[0:1, :]
         + x[:, :, 1:2] * w0[1:2, :]
         + x[:, :, 2:3] * w0[2:3, :]
         + b[0][...])                                  # (TB, TN, 64)
    h = jnp.maximum(h, 0.0).reshape(M, HIDDEN0)

    # Layers 1..4: batch + points folded into the matmul M dimension.
    # Dot inputs in compute dtype (bf16 by default); f32 accumulation.
    for i in range(1, N_LAYERS):
        h = jnp.dot(h.astype(compute_dtype), w[i][...],
                    preferred_element_type=jnp.float32) + b[i][...]
        if i < N_LAYERS - 1:
            h = jnp.maximum(h, 0.0)
    # h == per-point feature pf, f32, shape (M, 128).

    # Running per-batch max over point tiles, taken on f32 BEFORE any downcast.
    blk_max = jnp.max(h.reshape(TB, TN, FEAT), axis=1, keepdims=True)  # (TB,1,128)

    @pl.when(ni == 0)
    def _():
        g_ref[...] = blk_max

    @pl.when(ni != 0)
    def _():
        g_ref[...] = jnp.maximum(g_ref[...], blk_max)

    # Fused per-point half of MLP2's first (split-concat) layer:
    #   cat([g, pf]) @ W2_0 == g @ W2_0[:128] + pf @ W2_0[128:]
    # Only the pf-dependent term is computed here; the g-term is added in pass 2.
    hp = jnp.dot(h.astype(compute_dtype), w2p_ref[...],
                 preferred_element_type=jnp.float32)                   # (M, 64)
    hp_ref[...] = hp.reshape(TB, TN, HIDDEN0).astype(hp_ref.dtype)


def _mlp2_kernel(hp_ref, g_ref, *refs, compute_dtype):
    """Pass 2: add global term, rest of MLP2, final running max.

    hp_ref : (TB, TN, 64)   pf @ W2_0[128:] from pass 1 (compute dtype)
    g_ref  : (TB, 1, 128)   per-batch global max from pass 1 (f32)
    refs   : w2g (128,64), b2_0, w2_1..w2_4, b2_1..b2_4, out_ref (TB, 1, 128)
    """
    w2g_ref, b20_ref = refs[0], refs[1]
    w = refs[2:2 + (N_LAYERS - 1)]
    b = refs[2 + (N_LAYERS - 1):2 + 2 * (N_LAYERS - 1)]
    out_ref = refs[-1]
    ni = pl.program_id(1)

    hp = hp_ref[...]                                   # (TB, TN, 64)
    TB, TN, _ = hp.shape
    M = TB * TN
    g = g_ref[:, 0, :]                                 # (TB, 128) f32

    # Global-feature term of the split-concat first layer (bias added once).
    gterm = jnp.dot(g.astype(compute_dtype), w2g_ref[...],
                    preferred_element_type=jnp.float32) + b20_ref[...]  # (TB, 64)

    h = hp + gterm[:, None, :]                         # promotes to f32
    h = jnp.maximum(h, 0.0).reshape(M, HIDDEN0)

    for i in range(1, N_LAYERS):
        h = jnp.dot(h.astype(compute_dtype), w[i - 1][...],
                    preferred_element_type=jnp.float32) + b[i - 1][...]
        if i < N_LAYERS - 1:
            h = jnp.maximum(h, 0.0)

    blk_max = jnp.max(h.reshape(TB, TN, FEAT), axis=1, keepdims=True)  # (TB,1,128)

    @pl.when(ni == 0)
    def _():
        out_ref[...] = blk_max.astype(out_ref.dtype)

    @pl.when(ni != 0)
    def _():
        out_ref[...] = jnp.maximum(out_ref[...], blk_max.astype(out_ref.dtype))


# ---------------------------------------------------------------------------
# Tiling helpers
# ---------------------------------------------------------------------------
def _round_up(x, m):
    return (x + m - 1) // m * m


def _pick_batch_tile(B, tb, min_batch_blocks):
    """Largest divisor of B <= tb, additionally capped so the 'parallel' batch
    grid axis has >= min_batch_blocks blocks (feeds both v7x TensorCores)."""
    cap = max(1, min(tb, B))
    if B >= min_batch_blocks:
        cap = max(1, min(cap, B // min_batch_blocks))
    for t in range(cap, 0, -1):
        if B % t == 0:
            return t
    return 1


def _pick_point_tiling(N, tn_max):
    """Returns (TN, N_pad).  TN is a multiple of 8; N is padded (by repeating
    the last real point, which leaves all maxes unchanged) to a multiple of TN
    so ragged N never degrades to tiny tiles."""
    tn_max = max(8, (tn_max // 8) * 8)
    if N <= tn_max:
        tn = _round_up(N, 8)
        return tn, tn
    return tn_max, _round_up(N, tn_max)


# ---------------------------------------------------------------------------
# Wrapper
# ---------------------------------------------------------------------------
def pcn_encoder(x, params, *, compute_dtype=jnp.bfloat16, tb=8, tn_max=1024,
                min_batch_blocks=2, vmem_limit_bytes=64 * _MIB):
    """x: (B, N, 3) float32  ->  (B, 128) float32.

    compute_dtype controls the MXU dot-input dtype and the dtype of the
    (B, N, 64) HBM intermediate; accumulation, bias, ReLU and the maxes are
    always f32.  bfloat16 (default) is the fast path on v5e/v6e/v7x;
    float32 is the bit-accurate slow path.
    """
    B, N, C = x.shape
    assert C == IN_DIM
    w1, b1, w2, b2 = params

    cdt = jnp.dtype(compute_dtype)
    f32 = jnp.float32

    TB = _pick_batch_tile(B, tb, min_batch_blocks)
    TN, N_pad = _pick_point_tiling(N, tn_max)
    if N_pad != N:
        # Pad points by repeating the last real point: max-invariant.
        pad = jnp.broadcast_to(x[:, N - 1:N, :], (B, N_pad - N, IN_DIM))
        x = jnp.concatenate([x, pad], axis=1)
    grid = (B // TB, N_pad // TN)
    dimsem = ("parallel", "arbitrary")
    cparams = pltpu.CompilerParams(
        dimension_semantics=dimsem,
        # Per-step footprint at the default TB<=8 / TN<=1024 tiles is roughly
        # 30-40 MiB (lane-padded x blocks + hp double-buffers + f32/bf16
        # activations); 64 MiB is safe on v5e/v6e (128 MiB physical) and equals
        # v7x's physical VMEM, while well above the 16/32 MiB scoped defaults.
        vmem_limit_bytes=int(vmem_limit_bytes))

    # MXU-dot weights in compute dtype; layer-0 (VPU) weight and biases stay f32.
    w1_k = [w1[0].astype(f32)] + [w.astype(cdt) for w in w1[1:]]
    b1_k = [bb.astype(f32) for bb in b1]
    w2g_c = w2[0][:FEAT, :].astype(cdt)     # rows multiplying the global feature
    w2p_c = w2[0][FEAT:, :].astype(cdt)     # rows multiplying the per-point feature
    w2_k = [w.astype(cdt) for w in w2[1:]]
    b2_k = [bb.astype(f32) for bb in b2]

    def full2d(arr):
        return pl.BlockSpec(arr.shape, lambda bi, ni: (0, 0))

    # ---- Pass 1: MLP1 + global max + fused hp = pf @ W2_0[128:] ----
    p1_params = list(w1_k) + list(b1_k) + [w2p_c]
    p1_in_specs = [pl.BlockSpec((TB, TN, IN_DIM), lambda bi, ni: (bi, ni, 0))]
    p1_in_specs += [full2d(a) for a in p1_params]
    hp, g = pl.pallas_call(
        functools.partial(_mlp1_kernel, compute_dtype=cdt),
        grid=grid,
        in_specs=p1_in_specs,
        out_specs=(
            pl.BlockSpec((TB, TN, HIDDEN0), lambda bi, ni: (bi, ni, 0)),
            pl.BlockSpec((TB, 1, FEAT), lambda bi, ni: (bi, 0, 0)),
        ),
        out_shape=(
            jax.ShapeDtypeStruct((B, N_pad, HIDDEN0), cdt),
            jax.ShapeDtypeStruct((B, 1, FEAT), f32),
        ),
        compiler_params=cparams,
    )(x, *p1_params)

    # ---- Pass 2: add global term, MLP2 layers 1..4, final max ----
    p2_params = [w2g_c, b2_k[0]] + list(w2_k) + list(b2_k[1:])
    p2_in_specs = [
        pl.BlockSpec((TB, TN, HIDDEN0), lambda bi, ni: (bi, ni, 0)),
        pl.BlockSpec((TB, 1, FEAT), lambda bi, ni: (bi, 0, 0)),
    ]
    p2_in_specs += [full2d(a) for a in p2_params]
    out = pl.pallas_call(
        functools.partial(_mlp2_kernel, compute_dtype=cdt),
        grid=grid,
        in_specs=p2_in_specs,
        out_specs=pl.BlockSpec((TB, 1, FEAT), lambda bi, ni: (bi, 0, 0)),
        out_shape=jax.ShapeDtypeStruct((B, 1, FEAT), f32),
        compiler_params=cparams,
    )(hp, g, *p2_params)
    return out[:, 0, :]


# ---------------------------------------------------------------------------
# Params / reference
# ---------------------------------------------------------------------------
def init_params(key):
    """PyTorch-Linear-style init: U(-1/sqrt(fan_in), 1/sqrt(fan_in)); W stored (in, out)."""
    dims1 = [IN_DIM] + LAYERS
    dims2 = [LAYERS[-1] * 2] + LAYERS
    n = len(LAYERS)
    ks = jax.random.split(key, 4 * n)
    w1, b1, w2, b2 = [], [], [], []
    idx = 0
    for i in range(n):
        bound = float(1.0 / (dims1[i] ** 0.5))
        w1.append(jax.random.uniform(ks[idx], (dims1[i], dims1[i + 1]), jnp.float32, -bound, bound)); idx += 1
        b1.append(jax.random.uniform(ks[idx], (1, dims1[i + 1]), jnp.float32, -bound, bound)); idx += 1
    for i in range(n):
        bound = float(1.0 / (dims2[i] ** 0.5))
        w2.append(jax.random.uniform(ks[idx], (dims2[i], dims2[i + 1]), jnp.float32, -bound, bound)); idx += 1
        b2.append(jax.random.uniform(ks[idx], (1, dims2[i + 1]), jnp.float32, -bound, bound)); idx += 1
    return w1, b1, w2, b2


def reference(x, params):
    """Pure-JAX reference mirroring the PyTorch forward."""
    w1, b1, w2, b2 = params
    n = len(LAYERS)
    h = x
    for i in range(n):
        h = h @ w1[i] + b1[i]
        if i < n - 1:
            h = jax.nn.relu(h)
    pf1 = h
    g = jnp.max(pf1, axis=1, keepdims=True)
    h = jnp.concatenate([jnp.broadcast_to(g, pf1.shape), pf1], axis=-1)
    for i in range(n):
        h = h @ w2[i] + b2[i]
        if i < n - 1:
            h = jax.nn.relu(h)
    return jnp.max(h, axis=1)


if __name__ == "__main__":
    key = jax.random.PRNGKey(0)
    k_x, k_p = jax.random.split(key)

    B, N = 2, 256
    x = jax.random.normal(k_x, (B, N, IN_DIM), dtype=jnp.float32)
    params = init_params(k_p)
    ref = reference(x, params)

    # Default fast path: bf16 MXU dots, f32 accumulation / max.
    out = jax.block_until_ready(pcn_encoder(x, params))
    assert out.shape == (B, FEAT), out.shape
    assert jnp.allclose(out, ref, atol=2e-1, rtol=2e-1), float(jnp.max(jnp.abs(out - ref)))

    # f32 slow/reference path: tight check of the exact forward semantics.
    out_f32 = jax.block_until_ready(pcn_encoder(x, params, compute_dtype=jnp.float32))
    assert jnp.allclose(out_f32, ref, atol=5e-4, rtol=5e-4), float(jnp.max(jnp.abs(out_f32 - ref)))

    # Ragged N + point-tiled running max (exercises last-point padding and the
    # pl.when accumulator over several point tiles).
    x_r = x[:, :250, :]
    ref_r = reference(x_r, params)
    out_r = jax.block_until_ready(
        pcn_encoder(x_r, params, compute_dtype=jnp.float32, tn_max=64))
    assert out_r.shape == (B, FEAT)
    assert jnp.allclose(out_r, ref_r, atol=5e-4, rtol=5e-4), float(jnp.max(jnp.abs(out_r - ref_r)))

    print("KERNEL_OK")
</pallas_src>

<mosaic_0001>
module attributes {stable_mosaic.version = 11 : i64} {
  func.func @_mlp1_kernel(%arg0: i32, %arg1: i32, %arg2: memref<1x256x3xf32, #tpu.memory_space<vmem>>, %arg3: memref<3x64xf32, #tpu.memory_space<vmem>>, %arg4: memref<64x128xbf16, #tpu.memory_space<vmem>>, %arg5: memref<128x128xbf16, #tpu.memory_space<vmem>>, %arg6: memref<128x256xbf16, #tpu.memory_space<vmem>>, %arg7: memref<256x128xbf16, #tpu.memory_space<vmem>>, %arg8: memref<1x64xf32, #tpu.memory_space<vmem>>, %arg9: memref<1x128xf32, #tpu.memory_space<vmem>>, %arg10: memref<1x128xf32, #tpu.memory_space<vmem>>, %arg11: memref<1x256xf32, #tpu.memory_space<vmem>>, %arg12: memref<1x128xf32, #tpu.memory_space<vmem>>, %arg13: memref<128x64xbf16, #tpu.memory_space<vmem>>, %arg14: memref<1x256x64xbf16, #tpu.memory_space<vmem>>, %arg15: memref<1x1x128xf32, #tpu.memory_space<vmem>>) attributes {dimension_semantics = [#tpu.dimension_semantics<parallel>, #tpu.dimension_semantics<arbitrary>], iteration_bounds = array<i64: 2, 1>, scalar_prefetch = 0 : i64, scratch_operands = 0 : i64, tpu.core_type = #tpu.core_type<tc>, window_params = [{transform_indices = @transform_0, window_bounds = array<i64: 1, 256, 3>}, {pipeline_mode = #tpu.pipeline_mode<synchronous>, transform_indices = @transform_1, window_bounds = array<i64: 3, 64>}, {pipeline_mode = #tpu.pipeline_mode<synchronous>, transform_indices = @transform_2, window_bounds = array<i64: 64, 128>}, {pipeline_mode = #tpu.pipeline_mode<synchronous>, transform_indices = @transform_3, window_bounds = array<i64: 128, 128>}, {pipeline_mode = #tpu.pipeline_mode<synchronous>, transform_indices = @transform_4, window_bounds = array<i64: 128, 256>}, {pipeline_mode = #tpu.pipeline_mode<synchronous>, transform_indices = @transform_5, window_bounds = array<i64: 256, 128>}, {pipeline_mode = #tpu.pipeline_mode<synchronous>, transform_indices = @transform_6, window_bounds = array<i64: 1, 64>}, {pipeline_mode = #tpu.pipeline_mode<synchronous>, transform_indices = @transform_7, window_bounds = array<i64: 1, 128>}, {pipeline_mode = #tpu.pipeline_mode<synchronous>, transform_indices = @transform_8, window_bounds = array<i64: 1, 128>}, {pipeline_mode = #tpu.pipeline_mode<synchronous>, transform_indices = @transform_9, window_bounds = array<i64: 1, 256>}, {pipeline_mode = #tpu.pipeline_mode<synchronous>, transform_indices = @transform_10, window_bounds = array<i64: 1, 128>}, {pipeline_mode = #tpu.pipeline_mode<synchronous>, transform_indices = @transform_11, window_bounds = array<i64: 128, 64>}, {transform_indices = @transform_12, window_bounds = array<i64: 1, 256, 64>}, {transform_indices = @transform_13, window_bounds = array<i64: 1, 1, 128>}]} {
    %c0 = arith.constant 0 : index
    %c0_0 = arith.constant 0 : index
    %c0_1 = arith.constant 0 : index
    %0 = vector.load %arg2[%c0, %c0_0, %c0_1] : memref<1x256x3xf32, #tpu.memory_space<vmem>>, vector<1x256x3xf32>
    %c0_2 = arith.constant 0 : index
    %c0_3 = arith.constant 0 : index
    %1 = vector.load %arg3[%c0_2, %c0_3] : memref<3x64xf32, #tpu.memory_space<vmem>>, vector<3x64xf32>
    %2 = vector.extract_strided_slice %0 {offsets = [0, 0, 0], sizes = [1, 256, 1], strides = [1, 1, 1]} : vector<1x256x3xf32> to vector<1x256x1xf32>
    %3 = vector.extract_strided_slice %1 {offsets = [0, 0], sizes = [1, 64], strides = [1, 1]} : vector<3x64xf32> to vector<1x64xf32>
    %4 = vector.shape_cast %3 : vector<1x64xf32> to vector<1x1x64xf32>
    %5 = vector.broadcast %2 : vector<1x256x1xf32> to vector<1x256x64xf32>
    %6 = vector.broadcast %4 : vector<1x1x64xf32> to vector<1x256x64xf32>
    %7 = arith.mulf %5, %6 : vector<1x256x64xf32>
    %8 = vector.extract_strided_slice %0 {offsets = [0, 0, 1], sizes = [1, 256, 1], strides = [1, 1, 1]} : vector<1x256x3xf32> to vector<1x256x1xf32>
    %9 = vector.extract_strided_slice %1 {offsets = [1, 0], sizes = [1, 64], strides = [1, 1]} : vector<3x64xf32> to vector<1x64xf32>
    %10 = vector.shape_cast %9 : vector<1x64xf32> to vector<1x1x64xf32>
    %11 = vector.broadcast %8 : vector<1x256x1xf32> to vector<1x256x64xf32>
    %12 = vector.broadcast %10 : vector<1x1x64xf32> to vector<1x256x64xf32>
    %13 = arith.mulf %11, %12 : vector<1x256x64xf32>
    %14 = arith.addf %7, %13 : vector<1x256x64xf32>
    %15 = vector.extract_strided_slice %0 {offsets = [0, 0, 2], sizes = [1, 256, 1], strides = [1, 1, 1]} : vector<1x256x3xf32> to vector<1x256x1xf32>
    %16 = vector.extract_strided_slice %1 {offsets = [2, 0], sizes = [1, 64], strides = [1, 1]} : vector<3x64xf32> to vector<1x64xf32>
    %17 = vector.shape_cast %16 : vector<1x64xf32> to vector<1x1x64xf32>
    %18 = vector.broadcast %15 : vector<1x256x1xf32> to vector<1x256x64xf32>
    %19 = vector.broadcast %17 : vector<1x1x64xf32> to vector<1x256x64xf32>
    %20 = arith.mulf %18, %19 : vector<1x256x64xf32>
    %21 = arith.addf %14, %20 : vector<1x256x64xf32>
    %c0_4 = arith.constant 0 : index
    %c0_5 = arith.constant 0 : index
    %22 = vector.load %arg8[%c0_4, %c0_5] : memref<1x64xf32, #tpu.memory_space<vmem>>, vector<1x64xf32>
    %23 = vector.shape_cast %22 : vector<1x64xf32> to vector<1x1x64xf32>
    %24 = vector.broadcast %23 : vector<1x1x64xf32> to vector<1x256x64xf32>
    %25 = arith.addf %21, %24 : vector<1x256x64xf32>
    %cst = arith.constant 0.000000e+00 : f32
    %26 = vector.broadcast %cst : f32 to vector<1x256x64xf32>
    %27 = arith.maximumf %25, %26 : vector<1x256x64xf32>
    %28 = vector.shape_cast %27 : vector<1x256x64xf32> to vector<256x64xf32>
    %29 = arith.truncf %28 : vector<256x64xf32> to vector<256x64xbf16>
    %c0_6 = arith.constant 0 : index
    %c0_7 = arith.constant 0 : index
    %30 = vector.load %arg4[%c0_6, %c0_7] : memref<64x128xbf16, #tpu.memory_space<vmem>>, vector<64x128xbf16>
    %cst_8 = arith.constant dense<0.000000e+00> : vector<256x128xf32>
    %31 = tpu.matmul %29, %30, %cst_8 {dimension_numbers = #tpu.dot_dimension_numbers<[1], [0], [0], [1], [0, 0, 1, 1], [], []>} : vector<256x64xbf16>, vector<64x128xbf16>, vector<256x128xf32> -> vector<256x128xf32>
    %c0_9 = arith.constant 0 : index
    %c0_10 = arith.constant 0 : index
    %32 = vector.load %arg9[%c0_9, %c0_10] : memref<1x128xf32, #tpu.memory_space<vmem>>, vector<1x128xf32>
    %33 = vector.broadcast %32 : vector<1x128xf32> to vector<256x128xf32>
    %34 = arith.addf %31, %33 : vector<256x128xf32>
    %cst_11 = arith.constant 0.000000e+00 : f32
    %35 = vector.broadcast %cst_11 : f32 to vector<256x128xf32>
    %36 = arith.maximumf %34, %35 : vector<256x128xf32>
    %37 = arith.truncf %36 : vector<256x128xf32> to vector<256x128xbf16>
    %c0_12 = arith.constant 0 : index
    %c0_13 = arith.constant 0 : index
    %38 = vector.load %arg5[%c0_12, %c0_13] : memref<128x128xbf16, #tpu.memory_space<vmem>>, vector<128x128xbf16>
    %cst_14 = arith.constant dense<0.000000e+00> : vector<256x128xf32>
    %39 = tpu.matmul %37, %38, %cst_14 {dimension_numbers = #tpu.dot_dimension_numbers<[1], [0], [0], [1], [0, 0, 1, 1], [], []>} : vector<256x128xbf16>, vector<128x128xbf16>, vector<256x128xf32> -> vector<256x128xf32>
    %c0_15 = arith.constant 0 : index
    %c0_16 = arith.constant 0 : index
    %40 = vector.load %arg10[%c0_15, %c0_16] : memref<1x128xf32, #tpu.memory_space<vmem>>, vector<1x128xf32>
    %41 = vector.broadcast %40 : vector<1x128xf32> to vector<256x128xf32>
    %42 = arith.addf %39, %41 : vector<256x128xf32>
    %cst_17 = arith.constant 0.000000e+00 : f32
    %43 = vector.broadcast %cst_17 : f32 to vector<256x128xf32>
    %44 = arith.maximumf %42, %43 : vector<256x128xf32>
    %45 = arith.truncf %44 : vector<256x128xf32> to vector<256x128xbf16>
    %c0_18 = arith.constant 0 : index
    %c0_19 = arith.constant 0 : index
    %46 = vector.load %arg6[%c0_18, %c0_19] : memref<128x256xbf16, #tpu.memory_space<vmem>>, vector<128x256xbf16>
    %cst_20 = arith.constant dense<0.000000e+00> : vector<256x256xf32>
    %47 = tpu.matmul %45, %46, %cst_20 {dimension_numbers = #tpu.dot_dimension_numbers<[1], [0], [0], [1], [0, 0, 1, 1], [], []>} : vector<256x128xbf16>, vector<128x256xbf16>, vector<256x256xf32> -> vector<256x256xf32>
    %c0_21 = arith.constant 0 : index
    %c0_22 = arith.constant 0 : index
    %48 = vector.load %arg11[%c0_21, %c0_22] : memref<1x256xf32, #tpu.memory_space<vmem>>, vector<1x256xf32>
    %49 = vector.broadcast %48 : vector<1x256xf32> to vector<256x256xf32>
    %50 = arith.addf %47, %49 : vector<256x256xf32>
    %cst_23 = arith.constant 0.000000e+00 : f32
    %51 = vector.broadcast %cst_23 : f32 to vector<256x256xf32>
    %52 = arith.maximumf %50, %51 : vector<256x256xf32>
    %53 = arith.truncf %52 : vector<256x256xf32> to vector<256x256xbf16>
    %c0_24 = arith.constant 0 : index
    %c0_25 = arith.constant 0 : index
    %54 = vector.load %arg7[%c0_24, %c0_25] : memref<256x128xbf16, #tpu.memory_space<vmem>>, vector<256x128xbf16>
    %cst_26 = arith.constant dense<0.000000e+00> : vector<256x128xf32>
    %55 = tpu.matmul %53, %54, %cst_26 {dimension_numbers = #tpu.dot_dimension_numbers<[1], [0], [0], [1], [0, 0, 1, 1], [], []>} : vector<256x256xbf16>, vector<256x128xbf16>, vector<256x128xf32> -> vector<256x128xf32>
    %c0_27 = arith.constant 0 : index
    %c0_28 = arith.constant 0 : index
    %56 = vector.load %arg12[%c0_27, %c0_28] : memref<1x128xf32, #tpu.memory_space<vmem>>, vector<1x128xf32>
    %57 = vector.broadcast %56 : vector<1x128xf32> to vector<256x128xf32>
    %58 = arith.addf %55, %57 : vector<256x128xf32>
    %59 = vector.shape_cast %58 : vector<256x128xf32> to vector<1x256x128xf32>
    %cst_29 = arith.constant dense<0xFF800000> : vector<1x128xf32>
    %60 = vector.multi_reduction <maximumf>, %59, %cst_29 [1] : vector<1x256x128xf32> to vector<1x128xf32>
    %61 = vector.shape_cast %60 : vector<1x128xf32> to vector<1x1x128xf32>
    %c0_i32 = arith.constant 0 : i32
    %62 = arith.cmpi eq, %arg1, %c0_i32 : i32
    %63 = arith.extui %62 : i1 to i32
    %c0_i32_30 = arith.constant 0 : i32
    %64 = arith.cmpi ne, %63, %c0_i32_30 : i32
    scf.if %64 {
      %c0_39 = arith.constant 0 : index
      %c0_40 = arith.constant 0 : index
      %c0_41 = arith.constant 0 : index
      %74 = vector.load %arg15[%c0_39, %c0_40, %c0_41] : memref<1x1x128xf32, #tpu.memory_space<vmem>>, vector<1x1x128xf32>
      tpu.vector_store %arg15[%c0_39, %c0_40, %c0_41], %61 {strides = array<i32>} : memref<1x1x128xf32, #tpu.memory_space<vmem>>, vector<1x1x128xf32>,
    } else {
    }
    %c0_i32_31 = arith.constant 0 : i32
    %65 = arith.cmpi ne, %arg1, %c0_i32_31 : i32
    %66 = arith.extui %65 : i1 to i32
    %c0_i32_32 = arith.constant 0 : i32
    %67 = arith.cmpi ne, %66, %c0_i32_32 : i32
    scf.if %67 {
      %c0_39 = arith.constant 0 : index
      %c0_40 = arith.constant 0 : index
      %c0_41 = arith.constant 0 : index
      %74 = vector.load %arg15[%c0_39, %c0_40, %c0_41] : memref<1x1x128xf32, #tpu.memory_space<vmem>>, vector<1x1x128xf32>
      %75 = arith.maximumf %74, %61 : vector<1x1x128xf32>
      %c0_42 = arith.constant 0 : index
      %c0_43 = arith.constant 0 : index
      %c0_44 = arith.constant 0 : index
      %76 = vector.load %arg15[%c0_42, %c0_43, %c0_44] : memref<1x1x128xf32, #tpu.memory_space<vmem>>, vector<1x1x128xf32>
      tpu.vector_store %arg15[%c0_42, %c0_43, %c0_44], %75 {strides = array<i32>} : memref<1x1x128xf32, #tpu.memory_space<vmem>>, vector<1x1x128xf32>,
    } else {
    }
    %68 = arith.truncf %58 : vector<256x128xf32> to vector<256x128xbf16>
    %c0_33 = arith.constant 0 : index
    %c0_34 = arith.constant 0 : index
    %69 = vector.load %arg13[%c0_33, %c0_34] : memref<128x64xbf16, #tpu.memory_space<vmem>>, vector<128x64xbf16>
    %cst_35 = arith.constant dense<0.000000e+00> : vector<256x64xf32>
    %70 = tpu.matmul %68, %69, %cst_35 {dimension_numbers = #tpu.dot_dimension_numbers<[1], [0], [0], [1], [0, 0, 1, 1], [], []>} : vector<256x128xbf16>, vector<128x64xbf16>, vector<256x64xf32> -> vector<256x64xf32>
    %71 = vector.shape_cast %70 : vector<256x64xf32> to vector<1x256x64xf32>
    %72 = arith.truncf %71 : vector<1x256x64xf32> to vector<1x256x64xbf16>
    %c0_36 = arith.constant 0 : index
    %c0_37 = arith.constant 0 : index
    %c0_38 = arith.constant 0 : index
    %73 = vector.load %arg14[%c0_36, %c0_37, %c0_38] : memref<1x256x64xbf16, #tpu.memory_space<vmem>>, vector<1x256x64xbf16>
    tpu.vector_store %arg14[%c0_36, %c0_37, %c0_38], %72 {strides = array<i32>} : memref<1x256x64xbf16, #tpu.memory_space<vmem>>, vector<1x256x64xbf16>,
    return
  }
  func.func @transform_0(%arg0: i32, %arg1: i32) -> (i32, i32, i32) {
    %c0_i32 = arith.constant 0 : i32
    %c0_i32_0 = arith.constant 0 : i32
    return %arg0, %arg1, %c0_i32 : i32, i32, i32
  }
  func.func @transform_1(%arg0: i32, %arg1: i32) -> (i32, i32) {
    %c0_i32 = arith.constant 0 : i32
    %c0_i32_0 = arith.constant 0 : i32
    %c0_i32_1 = arith.constant 0 : i32
    return %c0_i32, %c0_i32_0 : i32, i32
  }
  func.func @transform_2(%arg0: i32, %arg1: i32) -> (i32, i32) {
    %c0_i32 = arith.constant 0 : i32
    %c0_i32_0 = arith.constant 0 : i32
    %c0_i32_1 = arith.constant 0 : i32
    return %c0_i32, %c0_i32_0 : i32, i32
  }
  func.func @transform_3(%arg0: i32, %arg1: i32) -> (i32, i32) {
    %c0_i32 = arith.constant 0 : i32
    %c0_i32_0 = arith.constant 0 : i32
    %c0_i32_1 = arith.constant 0 : i32
    return %c0_i32, %c0_i32_0 : i32, i32
  }
  func.func @transform_4(%arg0: i32, %arg1: i32) -> (i32, i32) {
    %c0_i32 = arith.constant 0 : i32
    %c0_i32_0 = arith.constant 0 : i32
    %c0_i32_1 = arith.constant 0 : i32
    return %c0_i32, %c0_i32_0 : i32, i32
  }
  func.func @transform_5(%arg0: i32, %arg1: i32) -> (i32, i32) {
    %c0_i32 = arith.constant 0 : i32
    %c0_i32_0 = arith.constant 0 : i32
    %c0_i32_1 = arith.constant 0 : i32
    return %c0_i32, %c0_i32_0 : i32, i32
  }
  func.func @transform_6(%arg0: i32, %arg1: i32) -> (i32, i32) {
    %c0_i32 = arith.constant 0 : i32
    %c0_i32_0 = arith.constant 0 : i32
    %c0_i32_1 = arith.constant 0 : i32
    return %c0_i32, %c0_i32_0 : i32, i32
  }
  func.func @transform_7(%arg0: i32, %arg1: i32) -> (i32, i32) {
    %c0_i32 = arith.constant 0 : i32
    %c0_i32_0 = arith.constant 0 : i32
    %c0_i32_1 = arith.constant 0 : i32
    return %c0_i32, %c0_i32_0 : i32, i32
  }
  func.func @transform_8(%arg0: i32, %arg1: i32) -> (i32, i32) {
    %c0_i32 = arith.constant 0 : i32
    %c0_i32_0 = arith.constant 0 : i32
    %c0_i32_1 = arith.constant 0 : i32
    return %c0_i32, %c0_i32_0 : i32, i32
  }
  func.func @transform_9(%arg0: i32, %arg1: i32) -> (i32, i32) {
    %c0_i32 = arith.constant 0 : i32
    %c0_i32_0 = arith.constant 0 : i32
    %c0_i32_1 = arith.constant 0 : i32
    return %c0_i32, %c0_i32_0 : i32, i32
  }
  func.func @transform_10(%arg0: i32, %arg1: i32) -> (i32, i32) {
    %c0_i32 = arith.constant 0 : i32
    %c0_i32_0 = arith.constant 0 : i32
    %c0_i32_1 = arith.constant 0 : i32
    return %c0_i32, %c0_i32_0 : i32, i32
  }
  func.func @transform_11(%arg0: i32, %arg1: i32) -> (i32, i32) {
    %c0_i32 = arith.constant 0 : i32
    %c0_i32_0 = arith.constant 0 : i32
    %c0_i32_1 = arith.constant 0 : i32
    return %c0_i32, %c0_i32_0 : i32, i32
  }
  func.func @transform_12(%arg0: i32, %arg1: i32) -> (i32, i32, i32) {
    %c0_i32 = arith.constant 0 : i32
    %c0_i32_0 = arith.constant 0 : i32
    return %arg0, %arg1, %c0_i32 : i32, i32, i32
  }
  func.func @transform_13(%arg0: i32, %arg1: i32) -> (i32, i32, i32) {
    %c0_i32 = arith.constant 0 : i32
    %c0_i32_0 = arith.constant 0 : i32
    %c0_i32_1 = arith.constant 0 : i32
    return %arg0, %c0_i32, %c0_i32_0 : i32, i32, i32
  }
}

</mosaic_0001>

<bundles_post_ra>
// kernel: tpu_custom_call.1
= control target key start
LH: loop header
LB: loop body
LE: loop exit
PB: predicated region body
PF: predicated region fallthrough
CT: control target
= control target key end

     0   :  { %s5772_s0 = inlined_call_operand.hbm [shape: f32[2,256,3], index: 0, kind: input, shape index: {}]   ;;  %s5773_s1 = inlined_call_operand.hbm [shape: f32[3,64], index: 1, kind: input, shape index: {}]   ;;  %s5774_s2 = inlined_call_operand.hbm [shape: bf16[64,128], index: 2, kind: input, shape index: {}]   ;;  %s5775_s3 = inlined_call_operand.hbm [shape: bf16[128,128], index: 3, kind: input, shape index: {}]   ;;  %s5776_s4 = inlined_call_operand.hbm [shape: bf16[128,256], index: 4, kind: input, shape index: {}]   ;;  %s5777_s5 = inlined_call_operand.hbm [shape: bf16[256,128], index: 5, kind: input, shape index: {}]   ;;  %s5778_s6 = inlined_call_operand.hbm [shape: f32[1,64], index: 6, kind: input, shape index: {}]   ;;  %s5779_s7 = inlined_call_operand.hbm [shape: f32[1,128], index: 7, kind: input, shape index: {}]   ;;  %s5780_s8 = inlined_call_operand.hbm [shape: f32[1,128], index: 8, kind: input, shape index: {}]   ;;  %s5781_s9 = inlined_call_operand.hbm [shape: f32[1,256], index: 9, kind: input, shape index: {}]   ;;  %s5782_s10 = inlined_call_operand.hbm [shape: f32[1,128], index: 10, kind: input, shape index: {}]   ;;  %s5783_s11 = inlined_call_operand.hbm [shape: bf16[128,64], index: 11, kind: input, shape index: {}]   ;;  %s5784_s12 = inlined_call_operand.hbm [shape: bf16[2,256,64], index: 12, kind: output, shape index: {0}]   ;;  %s5785_s13 = inlined_call_operand.hbm [shape: f32[2,1,128], index: 13, kind: output, shape index: {1}]  }
   0x1   :  { %5802 = sst [smem:[#allocation37_spill]] %s5772_s0 }
   0x2   :  { %5803 = sst [smem:[#allocation38_spill]] %s5773_s1 }
   0x3   :  { %5804 = sst [smem:[#allocation39_spill]] %s5774_s2 }
   0x4   :  { %5805 = sst [smem:[#allocation40_spill]] %s5775_s3 }
   0x5   :  { %5806 = sst [smem:[#allocation41_spill]] %s5776_s4 }
   0x6   :  { %5807 = sst [smem:[#allocation42_spill]] %s5777_s5 }
   0x7   :  { %5808 = sst [smem:[#allocation43_spill]] %s5784_s12 }
   0x8   :  { %5809 = sst [smem:[#allocation44_spill]] %s5785_s13 }
   0x9   :  { %19 = vsyncpa [#allocation3], 0 }
   0xa   :  { %21 = vsyncpa [#allocation3 + $0x1], 0 }
   0xb   :  { %22 = vsyncpa [#allocation6], 0 }
   0xc   :  { %23 = vsyncpa [#allocation9], 0 }
   0xd   :  { %24 = vsyncpa [#allocation12], 0 }
   0xe   :  { %25 = vsyncpa [#allocation15], 0 }
   0xf   :  { %26 = vsyncpa [#allocation18], 0 }
  0x10   :  { %27 = vsyncpa [#allocation21], 0 }
  0x11   :  { %28 = vsyncpa [#allocation4], 0 }
  0x12   :  { %30 = vsyncpa [#allocation4 + $0x1], 0 }
  0x13   :  { %31 = vsyncpa [#allocation24], 0 }
  0x14   :  { %33 = vsyncpa [#allocation24 + $0x1], 0  ;;  %s4685_s25 = smov 0   ;;  %s4687_s26 = smov 0  }
  0x15   :  { %s4689_s27 = smov 0   ;;  %s4691_s28 = smov 0  }
  0x16   :  { %s4693_s29 = smov 0   ;;  %s4695_s30 = smov 0  }
  0x17 LB: > { %5810 = sst [smem:[#allocation34_spill]] %s4582_s28  ;;  %s5786_s14 = sadd.s32 4294967295, %s4590_s30   ;;  %s4590_s30 = sphi %s4695_s30, %s39_s30   ;;  %s4586_s29 = sphi %s4693_s29, %s5850_s29   ;;  %s4582_s28 = sphi %s4691_s28, %s5849_s28   ;;  %s4578_s27 = sphi %s4689_s27, %s5848_s27   ;;  %s4574_s26 = sphi %s4687_s26, %s5847_s26   ;;  %s4570_s25 = sphi %s4685_s25, %s5846_s25  }
  0x18   : > { %p3322_p0 = scmp.ge.s32.totalorder %s4590_s30, 1  ;;  %p4719_p1 = scmp.eq.s32.totalorder %s5786_s14, 0 }
  0x19   : > { %p369_p2 = scmp.lt.s32.totalorder %s4590_s30, 3  ;;  %s4592_s17 = smov [#allocation5]  }
  0x1a   : > { %s5811_s15 = scalar_select %p4719_p1, 1, 0 }
  0x1b   : > { %p4724_p3 = pnand %p3322_p0, %p369_p2  ;;  %s382_s18 = sshll.u32 %s4592_s17, 4  ;;  %s383_s18 = int_to_ptr.vmem [resolvable:$true] %s382_s18 }
  0x1c   : > { %5812 = sst [smem:[#allocation35_spill]] %s5811_s15  ;;  %s4593_s20 = smov [#allocation8]  }
  0x1d   : > { %s5813_s16 = scalar_select %p4724_p3, 1, 0 }
  0x1e   : > { %p3870_p5 = pneg %p4724_p3  ;;  %s405_s21 = sshll.u32 %s4593_s20, 4  ;;  %s4737_s21 = int_to_ptr.vmem [resolvable:$true] %s405_s21 }
  0x1f   : > { %5814 = sst [smem:[#allocation36_spill]] %s5813_s16  ;;  %s4594_s22 = smov [#allocation11]  }
  0x20   : > { %p4733_p6 = pnand %p3870_p5, %p4719_p1  ;;  %s4739_s23 = sshll.u32 %s4594_s22, 4  ;;  %s432_s23 = int_to_ptr.vmem [resolvable:$true] %s4739_s23 }
  0x21   : > { %s5816_s1 = sld [smem:[#allocation38_spill]] }
  0x22   : > { %p4749_p8 = pneg %p4733_p6 }
  0x27   : > { %s4114_s17 = scalar_lea.hbm %s5816_s1, 64 }
  0x28   : > { %p4115_p7 = scmp.ne.s32.totalorder %s5816_s1, %s4114_s17  ;;  %p4121_p11 = scmp.lt.u32.totalorder %s4114_s17, %s5816_s1 }
  0x2a   : > { %p4117_p9 = pnand %p4749_p8, %p4115_p7 }
  0x2c   : > { %p4118_p10 = pneg %p4117_p9 }
  0x2e   : > { %p4123_p12 = pnand %p4121_p11, %p4118_p10 }
  0x30   : > { %4126 = shalt.err (!%p4123_p12)
}
  0x31   : > { %s4127_s14 = scalar_lea.vmem %s383_s18, 64  ;;  %p4135_p5 = scmp.lt.s32.totalorder %s383_s18, %s383_s18 }
  0x32   : > { %p4128_p13 = scmp.ne.s32.totalorder %s383_s18, %s4127_s14  ;;  %p4136_p4 = scmp.lt.s32.totalorder %s4127_s14, %s4127_s14 }
  0x34   : > { %p4130_p0 = pnand %p4128_p13, %p4749_p8  ;;  %p4137_p3 = por %p4136_p4, %p4135_p5 }
  0x36   : > { %p4131_p2 = pneg %p4130_p0 }
  0x38   : > { %p4138_p1 = pnand %p4137_p3, %p4131_p2 }
  0x3a   : > { %4141 = shalt.err (!%p4138_p1)
}
  0x3b   : > { %3873 = dma.hbm_to_vmem [thread:$0]  (!%p4733_p6), %s5816_s1, 64, %s383_s18, [#allocation6]  }
  0x3c   : > { %s5818_s3 = sld [smem:[#allocation40_spill]] }
  0x42   : > { %s4142_s20 = scalar_lea.hbm %s5818_s3, 1024 }
  0x43   : > { %p4143_p7 = scmp.ne.s32.totalorder %s5818_s3, %s4142_s20  ;;  %p4149_p1 = scmp.lt.u32.totalorder %s4142_s20, %s5818_s3 }
  0x45   : > { %p4145_p9 = pnand %p4143_p7, %p4749_p8 }
  0x47   : > { %p4146_p4 = pneg %p4145_p9 }
  0x49   : > { %p4151_p3 = pnand %p4149_p1, %p4146_p4 }
  0x4b   : > { %4154 = shalt.err (!%p4151_p3)
}
  0x4c   : > { %s4155_s18 = scalar_lea.vmem %s4737_s21, 1024  ;;  %p4163_p13 = scmp.lt.s32.totalorder %s4737_s21, %s4737_s21 }
  0x4d   : > { %p4156_p10 = scmp.ne.s32.totalorder %s4737_s21, %s4155_s18  ;;  %p4164_p0 = scmp.lt.s32.totalorder %s4155_s18, %s4155_s18 }
  0x4f   : > { %p4158_p11 = pnand %p4156_p10, %p4749_p8  ;;  %p4165_p2 = por %p4164_p0, %p4163_p13 }
  0x51   : > { %p4159_p12 = pneg %p4158_p11 }
  0x53   : > { %p4166_p5 = pnand %p4165_p2, %p4159_p12 }
  0x55   : > { %4169 = shalt.err (!%p4166_p5)
}
  0x56   : > { %s5797_s16 = smov 64   ;;  %s5798_s0 = smov 4  }
  0x57   : > { %3879 = dma.hbm_to_vmem [thread:$0]  (!%p4733_p6), %s5818_s3, 1024, %s4737_s21, [#allocation9], %s5797_s16, %s5797_s16, %s5798_s0  }
  0x58   : > { %s5819_s5 = sld [smem:[#allocation42_spill]] }
  0x5e   : > { %s4170_s20 = scalar_lea.hbm %s5819_s5, 2048 }
  0x5f   : > { %p4171_p7 = scmp.ne.s32.totalorder %s5819_s5, %s4170_s20  ;;  %p4177_p1 = scmp.lt.u32.totalorder %s4170_s20, %s5819_s5 }
  0x61   : > { %p4173_p9 = pnand %p4171_p7, %p4749_p8 }
  0x63   : > { %p4174_p4 = pneg %p4173_p9 }
  0x65   : > { %p4179_p3 = pnand %p4177_p1, %p4174_p4 }
  0x67   : > { %4182 = shalt.err (!%p4179_p3)
}
  0x68   : > { %s4183_s12 = scalar_lea.vmem %s432_s23, 2048  ;;  %p4191_p13 = scmp.lt.s32.totalorder %s432_s23, %s432_s23 }
  0x69   : > { %p4184_p10 = scmp.ne.s32.totalorder %s432_s23, %s4183_s12  ;;  %p4192_p0 = scmp.lt.s32.totalorder %s4183_s12, %s4183_s12 }
  0x6b   : > { %p4186_p11 = pnand %p4184_p10, %p4749_p8  ;;  %p4193_p2 = por %p4192_p0, %p4191_p13 }
  0x6d   : > { %p4187_p12 = pneg %p4186_p11 }
  0x6f   : > { %p4194_p5 = pnand %p4193_p2, %p4187_p12 }
  0x71   : > { %4197 = shalt.err (!%p4194_p5)
}
  0x72   : > { %3885 = dma.hbm_to_vmem [thread:$0]  (!%p4733_p6), %s5819_s5, 2048, %s432_s23, [#allocation12], %s5797_s16, %s5797_s16, %s5798_s0  }
  0x73   : > { %s4597_s13 = smov [#allocation14]   ;;  %s4598_s17 = smov [#allocation17]  }
  0x74   : > { %s456_s24 = sshll.u32 %s4597_s13, 4  ;;  %s478_s20 = sshll.u32 %s4598_s17, 4  ;;  %s457_s24 = int_to_ptr.vmem [resolvable:$true] %s456_s24  ;;  %s479_s20 = int_to_ptr.vmem [resolvable:$true] %s478_s20 }
  0x75   : > { %s4198_s18 = scalar_lea.hbm %s5779_s7, 16 }
  0x76   : > { %p4199_p7 = scmp.ne.s32.totalorder %s5779_s7, %s4198_s18  ;;  %p4205_p1 = scmp.lt.u32.totalorder %s4198_s18, %s5779_s7 }
  0x78   : > { %p4201_p9 = pnand %p4199_p7, %p4749_p8 }
  0x7a   : > { %p4202_p4 = pneg %p4201_p9 }
  0x7c   : > { %p4207_p3 = pnand %p4205_p1, %p4202_p4 }
  0x7e   : > { %4210 = shalt.err (!%p4207_p3)
}
  0x7f   : > { %s4211_s23 = scalar_lea.vmem %s457_s24, 16  ;;  %s4218_s21 = scalar_lea.vmem %s457_s24, 32 }
  0x80   : > { %p4212_p10 = scmp.ne.s32.totalorder %s457_s24, %s4211_s23  ;;  %p4219_p13 = scmp.lt.s32.totalorder %s457_s24, %s457_s24 }
  0x81   : > { %p4220_p0 = scmp.lt.s32.totalorder %s4218_s21, %s4211_s23 }
  0x82   : > { %p4214_p11 = pnand %p4212_p10, %p4749_p8 }
  0x83   : > { %p4221_p2 = por %p4220_p0, %p4219_p13 }
  0x84   : > { %p4215_p12 = pneg %p4214_p11 }
  0x86   : > { %p4222_p5 = pnand %p4221_p2, %p4215_p12 }
  0x88   : > { %4225 = shalt.err (!%p4222_p5)
}
  0x89   : > { %3891 = dma.hbm_to_vmem [thread:$0]  (!%p4733_p6), %s5779_s7, 16, %s457_s24, [#allocation15]  }
  0x8a   : > { %s4226_s22 = scalar_lea.hbm %s5781_s9, 32 }
  0x8b   : > { %p4227_p7 = scmp.ne.s32.totalorder %s5781_s9, %s4226_s22  ;;  %p4233_p1 = scmp.lt.u32.totalorder %s4226_s22, %s5781_s9 }
  0x8d   : > { %p4229_p9 = pnand %p4227_p7, %p4749_p8 }
  0x8f   : > { %p4230_p4 = pneg %p4229_p9 }
  0x91   : > { %p4235_p3 = pnand %p4233_p1, %p4230_p4 }
  0x93   : > { %4238 = shalt.err (!%p4235_p3)
}
  0x94   : > { %s4239_s23 = scalar_lea.vmem %s479_s20, 32  ;;  %p4247_p13 = scmp.lt.s32.totalorder %s479_s20, %s479_s20 }
  0x95   : > { %p4240_p10 = scmp.ne.s32.totalorder %s479_s20, %s4239_s23  ;;  %p4248_p0 = scmp.lt.s32.totalorder %s4239_s23, %s4239_s23 }
  0x97   : > { %p4242_p11 = pnand %p4240_p10, %p4749_p8  ;;  %p4249_p2 = por %p4248_p0, %p4247_p13 }
  0x99   : > { %p4243_p12 = pneg %p4242_p11 }
  0x9b   : > { %p4250_p5 = pnand %p4249_p2, %p4243_p12 }
  0x9d   : > { %4253 = shalt.err (!%p4250_p5)
}
  0x9e   : > { %3897 = dma.hbm_to_vmem [thread:$0]  (!%p4733_p6), %s5781_s9, 32, %s479_s20, [#allocation18]  }
  0x9f   : > { %s4599_s3 = smov [#allocation7]   ;;  %s4600_s15 = smov [#allocation10]  }
  0xa0   : > { %s392_s13 = sshll.u32 %s4599_s3, 4  ;;  %s418_s17 = sshll.u32 %s4600_s15, 4  ;;  %s393_s13 = int_to_ptr.vmem [resolvable:$true] %s392_s13  ;;  %s419_s17 = int_to_ptr.vmem [resolvable:$true] %s418_s17 }
  0xa1   : > { %s5820_s2 = sld [smem:[#allocation39_spill]] }
  0xa7   : > { %s4254_s18 = scalar_lea.hbm %s5820_s2, 512 }
  0xa8   : > { %p4255_p7 = scmp.ne.s32.totalorder %s5820_s2, %s4254_s18  ;;  %p4261_p1 = scmp.lt.u32.totalorder %s4254_s18, %s5820_s2 }
  0xaa   : > { %p4257_p9 = pnand %p4255_p7, %p4749_p8 }
  0xac   : > { %p4258_p4 = pneg %p4257_p9 }
  0xae   : > { %p4263_p3 = pnand %p4261_p1, %p4258_p4 }
  0xb0   : > { %4266 = shalt.err (!%p4263_p3)
}
  0xb1   : > { %s4267_s20 = scalar_lea.vmem %s393_s13, 512  ;;  %p4275_p13 = scmp.lt.s32.totalorder %s393_s13, %s393_s13 }
  0xb2   : > { %p4268_p10 = scmp.ne.s32.totalorder %s393_s13, %s4267_s20  ;;  %p4276_p0 = scmp.lt.s32.totalorder %s4267_s20, %s4267_s20 }
  0xb4   : > { %p4270_p11 = pnand %p4268_p10, %p4749_p8  ;;  %p4277_p2 = por %p4276_p0, %p4275_p13 }
  0xb6   : > { %p4271_p12 = pneg %p4270_p11 }
  0xb8   : > { %p4278_p5 = pnand %p4277_p2, %p4271_p12 }
  0xba   : > { %4281 = shalt.err (!%p4278_p5)
}
  0xbb   : > { %3876 = dma.hbm_to_vmem [thread:$0]  (!%p4733_p6), %s5820_s2, 512, %s393_s13, [#allocation6], %s5797_s16, %s5797_s16, %s5798_s0  }
  0xbc   : > { %s5821_s4 = sld [smem:[#allocation41_spill]] }
  0xc2   : > { %s4282_s14 = scalar_lea.hbm %s5821_s4, 2048 }
  0xc3   : > { %p4283_p7 = scmp.ne.s32.totalorder %s5821_s4, %s4282_s14  ;;  %p4289_p1 = scmp.lt.u32.totalorder %s4282_s14, %s5821_s4 }
  0xc5   : > { %p4285_p9 = pnand %p4283_p7, %p4749_p8 }
  0xc7   : > { %p4286_p4 = pneg %p4285_p9 }
  0xc9   : > { %p4291_p3 = pnand %p4289_p1, %p4286_p4 }
  0xcb   : > { %4294 = shalt.err (!%p4291_p3)
}
  0xcc   : > { %s4295_s24 = scalar_lea.vmem %s419_s17, 2048  ;;  %p4303_p13 = scmp.lt.s32.totalorder %s419_s17, %s419_s17 }
  0xcd   : > { %p4296_p10 = scmp.ne.s32.totalorder %s419_s17, %s4295_s24  ;;  %p4304_p0 = scmp.lt.s32.totalorder %s4295_s24, %s4295_s24 }
  0xcf   : > { %p4298_p11 = pnand %p4296_p10, %p4749_p8  ;;  %p4305_p2 = por %p4304_p0, %p4303_p13 }
  0xd1   : > { %p4299_p12 = pneg %p4298_p11 }
  0xd3   : > { %p4306_p5 = pnand %p4305_p2, %p4299_p12 }
  0xd5   : > { %4309 = shalt.err (!%p4306_p5)
}
  0xd6   : > { %s5799_s13 = smov 128   ;;  %s5800_s20 = smov 8  }
  0xd7   : > { %3882 = dma.hbm_to_vmem [thread:$0]  (!%p4733_p6), %s5821_s4, 2048, %s419_s17, [#allocation9], %s5799_s13, %s5799_s13, %s5800_s20  }
  0xd8   : > { %s4603_s15 = smov [#allocation13]   ;;  %s4604_s14 = smov [#allocation16]  }
  0xd9   : > { %s445_s22 = sshll.u32 %s4603_s15, 4  ;;  %s467_s18 = sshll.u32 %s4604_s14, 4  ;;  %s446_s22 = int_to_ptr.vmem [resolvable:$true] %s445_s22  ;;  %s468_s18 = int_to_ptr.vmem [resolvable:$true] %s467_s18 }
  0xda   : > { %s4310_s23 = scalar_lea.hbm %s5778_s6, 16 }
  0xdb   : > { %p4311_p7 = scmp.ne.s32.totalorder %s5778_s6, %s4310_s23  ;;  %p4317_p1 = scmp.lt.u32.totalorder %s4310_s23, %s5778_s6 }
  0xdd   : > { %p4313_p9 = pnand %p4311_p7, %p4749_p8 }
  0xdf   : > { %p4314_p4 = pneg %p4313_p9 }
  0xe1   : > { %p4319_p3 = pnand %p4317_p1, %p4314_p4 }
  0xe3   : > { %4322 = shalt.err (!%p4319_p3)
}
  0xe4   : > { %s4323_s17 = scalar_lea.vmem %s446_s22, 16  ;;  %s4330_s21 = scalar_lea.vmem %s446_s22, 32 }
  0xe5   : > { %p4324_p10 = scmp.ne.s32.totalorder %s446_s22, %s4323_s17  ;;  %p4331_p13 = scmp.lt.s32.totalorder %s446_s22, %s446_s22 }
  0xe6   : > { %p4332_p0 = scmp.lt.s32.totalorder %s4330_s21, %s4323_s17 }
  0xe7   : > { %p4326_p11 = pnand %p4324_p10, %p4749_p8 }
  0xe8   : > { %p4333_p2 = por %p4332_p0, %p4331_p13 }
  0xe9   : > { %p4327_p12 = pneg %p4326_p11 }
  0xeb   : > { %p4334_p5 = pnand %p4333_p2, %p4327_p12 }
  0xed   : > { %4337 = shalt.err (!%p4334_p5)
}
  0xee   : > { %3888 = dma.hbm_to_vmem [thread:$0]  (!%p4733_p6), %s5778_s6, 16, %s446_s22, [#allocation12]  }
  0xef   : > { %s4338_s15 = scalar_lea.hbm %s5780_s8, 16 }
  0xf0   : > { %p4339_p7 = scmp.ne.s32.totalorder %s5780_s8, %s4338_s15  ;;  %p4345_p1 = scmp.lt.u32.totalorder %s4338_s15, %s5780_s8 }
  0xf2   : > { %p4341_p9 = pnand %p4339_p7, %p4749_p8 }
  0xf4   : > { %p4342_p4 = pneg %p4341_p9 }
  0xf6   : > { %p4347_p3 = pnand %p4345_p1, %p4342_p4 }
  0xf8   : > { %4350 = shalt.err (!%p4347_p3)
}
  0xf9   : > { %s4351_s24 = scalar_lea.vmem %s468_s18, 16  ;;  %s4358_s22 = scalar_lea.vmem %s468_s18, 32 }
  0xfa   : > { %p4352_p10 = scmp.ne.s32.totalorder %s468_s18, %s4351_s24  ;;  %p4359_p13 = scmp.lt.s32.totalorder %s468_s18, %s468_s18 }
  0xfb   : > { %p4360_p0 = scmp.lt.s32.totalorder %s4358_s22, %s4351_s24 }
  0xfc   : > { %p4354_p11 = pnand %p4352_p10, %p4749_p8 }
  0xfd   : > { %p4361_p2 = por %p4360_p0, %p4359_p13 }
  0xfe   : > { %p4355_p12 = pneg %p4354_p11 }
 0x100   : > { %p4362_p5 = pnand %p4361_p2, %p4355_p12 }
 0x102   : > { %4365 = shalt.err (!%p4362_p5)
}
 0x103   : > { %3894 = dma.hbm_to_vmem [thread:$0]  (!%p4733_p6), %s5780_s8, 16, %s468_s18, [#allocation15]  }
 0x104   : > { %s4605_s16 = smov [#allocation19]   ;;  %s4606_s2 = smov [#allocation20]  }
 0x105   : > { %s489_s3 = sshll.u32 %s4605_s16, 4  ;;  %s499_s0 = sshll.u32 %s4606_s2, 4  ;;  %s490_s3 = int_to_ptr.vmem [resolvable:$true] %s489_s3  ;;  %s500_s0 = int_to_ptr.vmem [resolvable:$true] %s499_s0 }
 0x106   : > { %s4366_s12 = scalar_lea.hbm %s5782_s10, 16 }
 0x107   : > { %p4367_p7 = scmp.ne.s32.totalorder %s5782_s10, %s4366_s12  ;;  %p4373_p1 = scmp.lt.u32.totalorder %s4366_s12, %s5782_s10 }
 0x109   : > { %p4369_p9 = pnand %p4367_p7, %p4749_p8 }
 0x10b   : > { %p4370_p4 = pneg %p4369_p9 }
 0x10d   : > { %p4375_p3 = pnand %p4373_p1, %p4370_p4 }
 0x10f   : > { %4378 = shalt.err (!%p4375_p3)
}
 0x110   : > { %s4379_s18 = scalar_lea.vmem %s490_s3, 16  ;;  %s4386_s17 = scalar_lea.vmem %s490_s3, 32 }
 0x111   : > { %p4380_p10 = scmp.ne.s32.totalorder %s490_s3, %s4379_s18  ;;  %p4387_p13 = scmp.lt.s32.totalorder %s490_s3, %s490_s3 }
 0x112   : > { %p4388_p0 = scmp.lt.s32.totalorder %s4386_s17, %s4379_s18 }
 0x113   : > { %p4382_p11 = pnand %p4380_p10, %p4749_p8 }
 0x114   : > { %p4389_p2 = por %p4388_p0, %p4387_p13 }
 0x115   : > { %p4383_p12 = pneg %p4382_p11 }
 0x117   : > { %p4390_p5 = pnand %p4389_p2, %p4383_p12 }
 0x119   : > { %4393 = shalt.err (!%p4390_p5)
}
 0x11a   : > { %3900 = dma.hbm_to_vmem [thread:$0]  (!%p4733_p6), %s5782_s10, 16, %s490_s3, [#allocation18]  }
 0x11b   : > { %s4394_s14 = scalar_lea.hbm %s5783_s11, 1024 }
 0x11c   : > { %p4395_p7 = scmp.ne.s32.totalorder %s5783_s11, %s4394_s14  ;;  %p4401_p1 = scmp.lt.u32.totalorder %s4394_s14, %s5783_s11 }
 0x11e   : > { %p4397_p9 = pnand %p4395_p7, %p4749_p8 }
 0x120   : > { %p4398_p4 = pneg %p4397_p9 }
 0x122   : > { %p4403_p3 = pnand %p4401_p1, %p4398_p4 }
 0x124   : > { %4406 = shalt.err (!%p4403_p3)
}
 0x125   : > { %s4407_s22 = scalar_lea.vmem %s500_s0, 1024  ;;  %p4415_p13 = scmp.lt.s32.totalorder %s500_s0, %s500_s0 }
 0x126   : > { %p4408_p10 = scmp.ne.s32.totalorder %s500_s0, %s4407_s22  ;;  %p4416_p0 = scmp.lt.s32.totalorder %s4407_s22, %s4407_s22 }
 0x128   : > { %p4410_p11 = pnand %p4408_p10, %p4749_p8  ;;  %p4417_p2 = por %p4416_p0, %p4415_p13 }
 0x12a   : > { %p4411_p12 = pneg %p4410_p11 }
 0x12c   : > { %p4418_p5 = pnand %p4417_p2, %p4411_p12 }
 0x12e   : > { %4421 = shalt.err (!%p4418_p5)
}
 0x12f   : > { %s5822_s3 = smov 4   ;;  %s5823_s18 = smov 64  }
 0x130   : > { %s5824_s28 = sld [smem:[#allocation35_spill]]  ;;  %s3321_s19 = sadd.s32 4294967294, %s4590_s30  }
 0x131   : > { %3903 = dma.hbm_to_vmem [thread:$0]  (!%p4733_p6), %s5783_s11, 1024, %s500_s0, [#allocation21], %s5823_s18, %s5823_s18, %s5822_s3  }
 0x132   : > { %s51_s16 = sadd.s32 1, %s4586_s29  ;;  %s60_s2 = sadd.s32 1, %s4578_s27 }
 0x133   : > { %p53_p8 = scmp.ge.s32.totalorder %s51_s16, 2  ;;  %p67_p7 = scmp.ne.s32.totalorder %s4578_s27, %s4574_s26 }
 0x134   : > { %p68_p9 = scmp.eq.s32.totalorder %s4590_s30, 0  ;;  %p73_p4 = scmp.ne.s32.totalorder %s4574_s26, %s4570_s25 }
 0x135   : > { %s5852_s16 = smov (%p53_p8, %s51_s16), 0  ;;  %s5828_s12 = sadd.s32 4294967295, %s4590_s30  }
 0x136   : > { %p4976_p1 = por %p68_p9, %p67_p7  ;;  %p5826_p3 = scmp.ne.s32.totalorder %s5824_s28, 0 }
 0x137   : > { %s55_s14 = ssub.s32 %s4586_s29, %s5852_s16  ;;  %p330_p10 = scmp.eq.s32.totalorder %s5828_s12, 1 }
 0x138   : > { %p4982_p6 = por %p5826_p3, %p73_p4  ;;  %p58_p11 = scmp.eq.s32.totalorder %s55_s14, 0 }
 0x139   : > { %p336_p12 = scmp.eq.s32.totalorder %s3321_s19, 1  ;;  %p4990_p13 = por %p330_p10, %p67_p7 }
 0x13a   : > { %p3926_p0 = scmp.lt.s32.totalorder %s4590_s30, 2  ;;  %s513_s22 = sand.u32 1, %s4578_s27  }
 0x13b   : > { %s5829_s1 = scalar_select %p4990_p13, 1, 0 }
 0x13c   : > { %s4996_s23 = scalar_select %p58_p11, %s4578_s27, %s60_s2  }
 0x13d   : > { %p4998_p2 = por %p336_p12, %p73_p4  ;;  %s3335_s3 = sshll.u32 %s513_s22, 8 }
 0x13e   : > { %s3462_s18 = sshll.u32 %s4586_s29, 12  ;;  %s5831_s28 = sld [smem:[#allocation37_spill]] }
 0x13f   : > { %s5830_s24 = scalar_select %p4998_p2, 1, 0 }
 0x140   : > { %s517_s19 = scalar_lea.vmem [#allocation2], %s3335_s3  ;;  %p5013_p5 = pnand %p3926_p0, %p4976_p1 }
 0x141   : > { %s526_s14 = sshll.u32 %s517_s19, 4  ;;  %s5017_s20 = scalar_lea.sflag [#allocation3], %s513_s22  ;;  %s5009_s14 = int_to_ptr.vmem [resolvable:$true] %s526_s14 }
 0x142   : > { %p4424_p7 = pneg %p5013_p5 }
 0x144   : > { %s5832_s13 = smov %s5831_s28  ;;  %s5007_s12 = scalar_lea.hbm %s5831_s28, %s3462_s18 }
 0x145   : > { %s4422_s17 = scalar_lea.hbm %s5007_s12, 4096  ;;  %s4427_s15 = scalar_lea.hbm %s5832_s13, 8192 }
 0x146   : > { %p4423_p8 = scmp.ne.s32.totalorder %s5007_s12, %s4422_s17  ;;  %p4428_p1 = scmp.lt.u32.totalorder %s5007_s12, %s5832_s13 }
 0x147   : > { %p4429_p3 = scmp.lt.u32.totalorder %s4427_s15, %s4422_s17  ;;  %p4431_p11 = scmp.lt.u32.totalorder %s4422_s17, %s5007_s12 }
 0x148   : > { %p4425_p9 = pnand %p4424_p7, %p4423_p8 }
 0x149   : > { %p4430_p10 = por %p4429_p3, %p4428_p1 }
 0x14a   : > { %p4426_p4 = pneg %p4425_p9 }
 0x14b   : > { %p4432_p12 = por %p4431_p11, %p4430_p10 }
 0x14d   : > { %p4433_p0 = pnand %p4432_p12, %p4426_p4 }
 0x14f   : > { %4436 = shalt.err (!%p4433_p0)
}
 0x150   : > { %s4437_s22 = scalar_lea.vmem %s5009_s14, 4096  ;;  %s4607_s19 = smov [#allocation2]  }
 0x151   : > { %p4438_p8 = scmp.ne.s32.totalorder %s5009_s14, %s4437_s22  ;;  %s4442_s3 = sshll.u32 %s4607_s19, 4  ;;  %s4443_s3 = int_to_ptr.vmem [resolvable:$false] %s4442_s3 }
 0x152   : > { %s4444_s18 = scalar_lea.vmem %s4443_s3, 8192  ;;  %p4445_p13 = scmp.lt.s32.totalorder %s5009_s14, %s4443_s3 }
 0x153   : > { %p4440_p9 = pnand %p4438_p8, %p4424_p7  ;;  %p4446_p1 = scmp.lt.s32.totalorder %s4444_s18, %s4437_s22 }
 0x155   : > { %p4441_p2 = pneg %p4440_p9  ;;  %p4447_p3 = por %p4446_p1, %p4445_p13 }
 0x157   : > { %p4448_p10 = pnand %p4447_p3, %p4441_p2 }
 0x159   : > { %4451 = shalt.err (!%p4448_p10)
}
 0x15a   : > { %s5834_s17 = smov 8   ;;  %s5835_s15 = smov 128  }
 0x15b   : > { %3907 = dma.hbm_to_vmem [thread:$0]  (!%p5013_p5), %s5007_s12, 4096, %s5009_s14, %s5017_s20, %s5835_s15, %s5835_s15, %s5834_s17  }
 0x15c   : > { %s5836_s21 = sld [smem:[#allocation36_spill]] }
 0x162   : > { %p5837_p7 = scmp.ne.s32.totalorder %s5836_s21, 0 }
 0x163   : > { %s5051_s28 = sand.u32 (!%p5837_p7), 1, %s4574_s26  }
 0x164   : > { %538 = sbr.rel (%p5837_p7) target bundleno = 1919 (0x77f), region = 68  ;;  %s3339_s22 = sshll.u32 (!%p5837_p7), %s5051_s28, 8 }
 0x165   : > { %s541_s19 = scalar_lea.sflag (!%p5837_p7), [#allocation3], %s5051_s28  ;;  %s5055_s3 = scalar_lea.vmem (!%p5837_p7), [#allocation2], %s3339_s22 }
 0x16b   : > { %4533 = dma.done.wait (%p4982_p6), %s541_s19, 4096  }
 0x16c   : > { %4535 = vsyncadd (%p4982_p6), %s541_s19, 4294963200  ;;  %s5838_s2 = sld [smem:[#allocation35_spill]] }
 0x172   : > { %p5839_p13 = scmp.ne.s32.totalorder %s5838_s2, 0 }
 0x174   : > { %4537 = dma.done.wait (%p5839_p13), [#allocation6], 576  }
 0x175   : > { %4539 = vsyncadd (%p5839_p13), [#allocation6], 4294966720 }
 0x176   : > { %4541 = dma.done.wait (%p5839_p13), [#allocation9], 3072  }
 0x177   : > { %4543 = vsyncadd (%p5839_p13), [#allocation9], 4294964224 }
 0x178   : > { %4545 = dma.done.wait (%p5839_p13), [#allocation12], 2064  }
 0x179   : > { %4547 = vsyncadd (%p5839_p13), [#allocation12], 4294965232 }
 0x17a   : > { %4549 = dma.done.wait (%p5839_p13), [#allocation15], 32  }
 0x17b   : > { %4551 = vsyncadd (%p5839_p13), [#allocation15], 4294967264 }
 0x17c   : > { %4553 = dma.done.wait (%p5839_p13), [#allocation18], 48  }
 0x17d   : > { %4555 = vsyncadd (%p5839_p13), [#allocation18], 4294967248 }
 0x17e   : > { %4557 = dma.done.wait (%p5839_p13), [#allocation21], 1024  }
 0x17f   : > { %4559 = vsyncadd (%p5839_p13), [#allocation21], 4294966272  ;;  %v4608_v0 = vmov 1   ;;  %v640_v1 = vld [vmem:[%s5055_s3 + $0x10] sm:$0xff]  ;;  %v638_v2 = vld [vmem:[%s5055_s3] sm:$0xff]  ;;  %v4609_v4 = vmov 2   ;;  %v831_v37 = vlaneseq }
 0x180   : > { %4009 = vset.pattern.permute.xlu0 %v4608_v0  ;;  %4007 = vset.pattern.permute.xlu1 %v4608_v0  ;;  %v639_v3 = vld [vmem:[%s5055_s3 + $0x8] sm:$0xff]  ;;  %v642_v5 = vld [vmem:[%s5055_s3 + $0x20] sm:$0xff]  ;;  %v641_v6 = vld [vmem:[%s5055_s3 + $0x18] sm:$0xff]  ;;  %v4610_v7 = vmov 0   ;;  %vm1385_vm0 = vcmask 523264   ;;  %s3351_s20 = sshll.u32 %s5051_s28, 7 }
 0x181   : > { %876 = vperm.xlu0 %4009, %v640_v1   ;;  %868 = vperm.xlu1 %4007, %v638_v2   ;;  %v645_v8 = vld [vmem:[%s5055_s3 + $0x38] sm:$0xff]  ;;  %v5096_v9 = vld [vmem:[%s5055_s3 + $0x48] sm:$0xff]  ;;  %v648_v15 = vld [vmem:[%s5055_s3 + $0x50] sm:$0xff]  ;;  %v5180_v41 = vshrl.u32 %v831_v37, 7  ;;  %vm3034_vm1 = vcmask 519168   ;;  %s5621_s0 = scalar_lea.vmem [#allocation22], %s3351_s20 }
 0x182   : > { %v4054_v10 = vld [vmem:[#allocation7] sm:$0xff]   ;;  %v4055_v12 = vld [vmem:[#allocation7 + $0x8] sm:$0xff]   ;;  %v4056_v13 = vld [vmem:[#allocation7 + $0x10] sm:$0xff]   ;;  %s634_s12 = scalar_lea.vmem [#allocation23], %s5051_s28  ;;  %s5840_s14 = sld [smem:[#allocation34_spill]] }
 0x183   : > { %3676 = vmatprep.subr.bf16.mxu0 %v4054_v10  ;;  %v643_v11 = vld [vmem:[%s5055_s3 + $0x28] sm:$0xff]  ;;  %3812 = vmatprep.subr.bf16.mxu1 %v4054_v10  ;;  %v4057_v14 = vld [vmem:[#allocation7 + $0x18] sm:$0xff]   ;;  %v644_v16 = vld [vmem:[%s5055_s3 + $0x30] sm:$0xff]  ;;  %v997_v45 = vsub.s32 1, %v5180_v41  ;;  %v1193_v47 = vsub.s32 2, %v5180_v41  ;;  %v833_v48 = vsub.s32 0, %v5180_v41 }
 0x184   : > { %3677 = vmatpush3.bf16.msra.mxu0 %v4054_v10  ;;  %3816 = vmatpush3.bf16.msra.mxu1 %v4054_v10  ;;  %v650_v17 = vld [vmem:[%s5055_s3 + $0x60] sm:$0xff]  ;;  %v5111_v18 = vld [vmem:[%s5055_s3 + $0x88] sm:$0xff]  ;;  %v5116_v19 = vld [vmem:[%s5055_s3 + $0x90] sm:$0xff]  ;;  %s3103_s17 = sshll.u32 %s634_s12, 4  ;;  %s5841_s22 = sld [smem:[#allocation44_spill]]  ;;  %s3104_s17 = int_to_ptr.vmem [resolvable:$true] %s3103_s17 }
 0x185   : > { %4012 = vset.pattern.permute.xlu0 %v4609_v4  ;;  %872 = vperm.xlu1 %4007, %v639_v3   ;;  %v646_v20 = vld [vmem:[%s5055_s3 + $0x40] sm:$0xff]  ;;  %v651_v21 = vld [vmem:[%s5055_s3 + $0x68] sm:$0xff]  ;;  %v652_v22 = vld [vmem:[%s5055_s3 + $0x70] sm:$0xff]  ;;  %s4452_s2 = scalar_lea.vmem %s3104_s17, 16  ;;  %p5842_p2 = scmp.ne.s32.totalorder %s5829_s1, 0 }
 0x186   : > { %1068 = vperm.xlu0 %4012, %v639_v3   ;;  %3678 = vmatprep.subr.bf16.mxu0 %v4055_v12  ;;  %v649_v23 = vld [vmem:[%s5055_s3 + $0x58] sm:$0xff]  ;;  %v5131_v24 = vld [vmem:[%s5055_s3 + $0xa8] sm:$0xff]  ;;  %v5136_v25 = vld [vmem:[%s5055_s3 + $0xb0] sm:$0xff]  ;;  %p4453_p6 = scmp.ne.s32.totalorder %s3104_s17, %s4452_s2  ;;  %s4611_s20 = smov [#allocation23]  }
 0x187   : > { %3813 = vmatprep.subr.bf16.mxu1 %v4055_v12  ;;  %v653_v26 = vld [vmem:[%s5055_s3 + $0x78] sm:$0xff]  ;;  %v5145_v27 = vld [vmem:[%s5055_s3 + $0xa0] sm:$0xff]  ;;  %v5154_v29 = vld [vmem:[%s5055_s3 + $0xc8] sm:$0xff]  ;;  %s4456_s4 = sshll.u32 %s4611_s20, 4  ;;  %s4457_s4 = int_to_ptr.vmem [resolvable:$false] %s4456_s4 }
 0x188   : > { %3679 = vmatpush3.bf16.msra.mxu0 %v4055_v12  ;;  %3817 = vmatpush3.bf16.msra.mxu1 %v4055_v12  ;;  %v5149_v28 = vld [vmem:[%s5055_s3 + $0xb8] sm:$0xff]  ;;  %v5163_v30 = vld [vmem:[%s5055_s3 + $0xd0] sm:$0xff]  ;;  %v5168_v31 = vld [vmem:[%s5055_s3 + $0xe0] sm:$0xff]  ;;  %s3459_s18 = sshll.u32 %s5840_s14, 4  ;;  %p4454_p5 = pnand %p4453_p6, %p5842_p2 }
 0x189   : > { %4008 = vset.pattern.permute.xlu1 %v4610_v7  ;;  %3680 = vmatprep.subr.bf16.mxu0 %v4056_v13  ;;  %v654_v36 = vld [vmem:[%s5055_s3 + $0x80] sm:$0xff]  ;;  %v5176_v38 = vld [vmem:[%s5055_s3 + $0xe8] sm:$0xff]  ;;  %v5185_v42 = vld [vmem:[%s5055_s3 + $0xf0] sm:$0xff]  ;;  %s4458_s5 = scalar_lea.vmem %s4457_s4, 32  ;;  %p4459_p11 = scmp.lt.s32.totalorder %s3104_s17, %s4457_s4 }
 0x18a   : > { %1080 = vperm.xlu0 %4012, %v642_v5   ;;  %688 = vperm.xlu1 %4008, %v641_v6   ;;  %v670_v46 = vld [vmem:[#allocation5] sm:$0x7]  ;;  %v657_v52 = vld [vmem:[%s5055_s3 + $0x98] sm:$0xff]  ;;  %s5664_s19 = scalar_lea.hbm %s5841_s22, %s3459_s18  ;;  %p4455_p4 = pneg %p4454_p5 }
 0x18b   : > { %3814 = vmatprep.subr.bf16.mxu1 %v4056_v13  ;;  %v5198_v50 = vrot.slane %v670_v46, %v997_v45  ;;  %v5203_v53 = vrot.slane %v670_v46, %v1193_v47  ;;  %v5207_v54 = vrot.slane %v670_v46, %v833_v48  ;;  %v5213_v59 = vld [vmem:[%s5055_s3 + $0xf8] sm:$0xff]  ;;  %p4460_p12 = scmp.lt.s32.totalorder %s4458_s5, %s4452_s2 }
 0x18c   : > { %3681 = vmatpush3.bf16.msra.mxu0 %v4056_v13  ;;  %3818 = vmatpush3.bf16.msra.mxu1 %v4056_v13 }
 0x18d   : > { %3682 = vmatprep.subr.bf16.mxu0 %v4057_v14  ;;  %3815 = vmatprep.subr.bf16.mxu1 %v4057_v14  ;;  %p4461_p0 = por %p4460_p12, %p4459_p11 }
 0x18e   : > { %1092 = vperm.xlu0 %4012, %v645_v8   ;;  %4010 = vset.pattern.permute.xlu1 %v4608_v0 }
 0x18f   : > { %880 = vperm.xlu1 %4010, %v641_v6   ;;  %p4462_p8 = pnand %p4461_p0, %p4455_p4 }
 0x190   : > { %3683 = vmatpush3.bf16.msra.mxu0 %v4057_v14  ;;  %3819 = vmatpush3.bf16.msra.mxu1 %v4057_v14 }
 0x192   : > { %1100 = vperm.xlu0 %4012, %v5096_v9  }
 0x193   : > { %4011 = vset.pattern.permute.xlu1 %v4609_v4 }
 0x194   : > { %1064 = vperm.xlu1 %4011, %v638_v2  }
 0x196   : > { %4023 = vset.pattern.permute.xlu0 %v4610_v7 }
 0x197   : > { %673 = vperm.xlu0 %4023, %v638_v2  }
 0x198   : > { %1072 = vperm.xlu1 %4011, %v640_v1  }
 0x19b   : > { %678 = vperm.xlu0 %4023, %v639_v3  }
 0x19c   : > { %1076 = vperm.xlu1 %4011, %v641_v6  }
 0x19f   : > { %683 = vperm.xlu0 %4023, %v640_v1  }
 0x1a0   : > { %4013 = vset.pattern.permute.xlu1 %v4610_v7 }
 0x1a1   : > { %698 = vperm.xlu1 %4013, %v643_v11  }
 0x1a3   : > { %693 = vperm.xlu0 %4023, %v642_v5  }
 0x1a5   : > { %4014 = vset.pattern.permute.xlu1 %v4608_v0 }
 0x1a6   : > { %884 = vperm.xlu1 %4014, %v642_v5  }
 0x1a7   : > { %718 = vperm.xlu0 %4023, %v5096_v9  }
 0x1aa   : > { %4015 = vset.pattern.permute.xlu1 %v4610_v7 }
 0x1ab   : > { %723 = vperm.xlu0 %4023, %v648_v15   ;;  %703 = vperm.xlu1 %4015, %v644_v16  }
 0x1af   : > { %733 = vperm.xlu0 %4023, %v650_v17   ;;  %708 = vperm.xlu1 %4015, %v645_v8  }
 0x1b3   : > { %758 = vperm.xlu0 %4023, %v5111_v18   ;;  %4016 = vset.pattern.permute.xlu1 %v4608_v0 }
 0x1b4   : > { %896 = vperm.xlu1 %4016, %v645_v8  }
 0x1b7   : > { %763 = vperm.xlu0 %4023, %v5116_v19  }
 0x1b8   : > { %4017 = vset.pattern.permute.xlu1 %v4609_v4 }
 0x1b9   : > { %1084 = vperm.xlu1 %4017, %v643_v11  }
 0x1bb   : > { %4031 = vset.pattern.permute.xlu0 %v4608_v0 }
 0x1bc   : > { %888 = vperm.xlu0 %4031, %v643_v11  }
 0x1bd   : > { %1088 = vperm.xlu1 %4017, %v644_v16  }
 0x1c0   : > { %892 = vperm.xlu0 %4031, %v644_v16  }
 0x1c1   : > { %4018 = vset.pattern.permute.xlu1 %v4610_v7 }
 0x1c2   : > { %713 = vperm.xlu1 %4018, %v646_v20  }
 0x1c4   : > { %908 = vperm.xlu0 %4031, %v648_v15  }
 0x1c6   : > { %4019 = vset.pattern.permute.xlu1 %v4608_v0 }
 0x1c7   : > { %900 = vperm.xlu1 %4019, %v646_v20  }
 0x1c8   : > { %920 = vperm.xlu0 %4031, %v651_v21  }
 0x1cb   : > { %904 = vperm.xlu1 %4019, %v5096_v9   ;;  %v5223_v9 = vld [vmem:[#allocation13] ss:$0 sm:$0xff] }
 0x1cc   : > { %924 = vperm.xlu0 %4031, %v652_v22  }
 0x1cf   : > { %4020 = vset.pattern.permute.xlu1 %v4610_v7 }
 0x1d0   : > { %728 = vperm.xlu1 %4020, %v649_v23   ;;  %940 = vperm.xlu0 %4031, %v5116_v19  }
 0x1d4   : > { %4021 = vset.pattern.permute.xlu1 %v4608_v0  ;;  %952 = vperm.xlu0 %4031, %v5131_v24  }
 0x1d5   : > { %912 = vperm.xlu1 %4021, %v649_v23  }
 0x1d8   : > { %956 = vperm.xlu0 %4031, %v5136_v25  }
 0x1d9   : > { %4022 = vset.pattern.permute.xlu1 %v4609_v4 }
 0x1da   : > { %1096 = vperm.xlu1 %4022, %v646_v20  }
 0x1dc   : > { %4038 = vset.pattern.permute.xlu0 %v4609_v4 }
 0x1dd   : > { %1112 = vperm.xlu0 %4038, %v650_v17  }
 0x1de   : > { %1104 = vperm.xlu1 %4022, %v648_v15  }
 0x1e1   : > { %1124 = vperm.xlu0 %4038, %v653_v26  }
 0x1e2   : > { %1108 = vperm.xlu1 %4022, %v649_v23  }
 0x1e5   : > { %1132 = vperm.xlu0 %4038, %v5111_v18  }
 0x1e6   : > { %4024 = vset.pattern.permute.xlu1 %v4610_v7 }
 0x1e7   : > { %738 = vperm.xlu1 %4024, %v651_v21  }
 0x1e9   : > { %1144 = vperm.xlu0 %4038, %v5145_v27  }
 0x1eb   : > { %4025 = vset.pattern.permute.xlu1 %v4608_v0 }
 0x1ec   : > { %916 = vperm.xlu1 %4025, %v650_v17  }
 0x1ed   : > { %1156 = vperm.xlu0 %4038, %v5149_v28  }
 0x1f0   : > { %4026 = vset.pattern.permute.xlu1 %v4610_v7 }
 0x1f1   : > { %743 = vperm.xlu1 %4026, %v652_v22   ;;  %1164 = vperm.xlu0 %4038, %v5154_v29  }
 0x1f5   : > { %748 = vperm.xlu1 %4026, %v653_v26   ;;  %4046 = vset.pattern.permute.xlu0 %v4610_v7 }
 0x1f6   : > { %773 = vperm.xlu0 %4046, %v5145_v27  }
 0x1f9   : > { %4027 = vset.pattern.permute.xlu1 %v4608_v0 }
 0x1fa   : > { %928 = vperm.xlu1 %4027, %v653_v26   ;;  %798 = vperm.xlu0 %4046, %v5154_v29  }
 0x1fe   : > { %4028 = vset.pattern.permute.xlu1 %v4609_v4  ;;  %803 = vperm.xlu0 %4046, %v5163_v30  }
 0x1ff   : > { %1116 = vperm.xlu1 %4028, %v651_v21  }
 0x200   : > { %v869_v32 = vpop.permute.xlu1 %868  ;;  %v877_v33 = vpop.permute.xlu0 %876 }
 0x201   : > { %v999_v56 = vmul.f32 %v5198_v50, %v869_v32  ;;  %v1001_v11 = vmul.f32 %v5198_v50, %v877_v33 }
 0x202   : > { %813 = vperm.xlu0 %4046, %v5168_v31  }
 0x203   : > { %1120 = vperm.xlu1 %4028, %v652_v22  }
 0x204   : > { %v873_v34 = vpop.permute.xlu1 %872 }
 0x205   : > { %v1069_v35 = vpop.permute.xlu0 %1068  ;;  %v1000_v63 = vmul.f32 %v5198_v50, %v873_v34 }
 0x206   : > { %4047 = vset.pattern.permute.xlu0 %v4608_v0  ;;  %v1196_v2 = vmul.f32 %v5203_v53, %v1069_v35 }
 0x207   : > { %4029 = vset.pattern.permute.xlu1 %v4610_v7  ;;  %972 = vperm.xlu0 %4047, %v5163_v30  }
 0x208   : > { %753 = vperm.xlu1 %4029, %v654_v36  }
 0x209   : > { %v689_v39 = vpop.permute.xlu1 %688  ;;  %v5178_v40 = vpop.permute.xlu0 %1080 }
 0x20a   : > { %v838_v3 = vmul.f32 %v5207_v54, %v689_v39 }
 0x20b   : > { %984 = vperm.xlu0 %4047, %v5176_v38  }
 0x20c   : > { %4030 = vset.pattern.permute.xlu1 %v4608_v0 }
 0x20d   : > { %932 = vperm.xlu1 %4030, %v654_v36   ;;  %v5187_v43 = vpop.permute.xlu0 %1092 }
 0x20e   : > { %v881_v44 = vpop.permute.xlu1 %880 }
 0x20f   : > { %988 = vperm.xlu0 %4047, %v5185_v42   ;;  %v1002_v60 = vmul.f32 %v5198_v50, %v881_v44 }
 0x211   : > { %936 = vperm.xlu1 %4030, %v5111_v18   ;;  %v5194_v49 = vpop.permute.xlu0 %1100  ;;  %v1034_v12 = vadd.f32 %v1002_v60, %v838_v3 }
 0x213   : > { %v1065_v51 = vpop.permute.xlu1 %1064  ;;  %4052 = vset.pattern.permute.xlu0 %v4609_v4 }
 0x214   : > { %1176 = vperm.xlu0 %4052, %v5168_v31   ;;  %v1195_v61 = vmul.f32 %v5203_v53, %v1065_v51 }
 0x215   : > { %4032 = vset.pattern.permute.xlu1 %v4610_v7 }
 0x216   : > { %v674_v55 = vpop.permute.xlu0 %673  ;;  %768 = vperm.xlu1 %4032, %v657_v52  }
 0x217   : > { %v835_v57 = vmul.f32 %v5207_v54, %v674_v55  ;;  %v1073_v58 = vpop.permute.xlu1 %1072 }
 0x218   : > { %1188 = vperm.xlu0 %4052, %v5213_v59   ;;  %v1197_v21 = vmul.f32 %v5203_v53, %v1073_v58 }
 0x219   : > { %v1031_v62 = vadd.f32 %v999_v56, %v835_v57 }
 0x21a   : > { %v679_v1 = vpop.permute.xlu0 %678  ;;  %4033 = vset.pattern.permute.xlu1 %v4608_v0 }
 0x21b   : > { %v1227_v5 = vadd.f32 %v1195_v61, %v1031_v62  ;;  %v836_v6 = vmul.f32 %v5207_v54, %v679_v1  ;;  %944 = vperm.xlu1 %4033, %v657_v52   ;;  %v1077_v8 = vpop.permute.xlu1 %1076 }
 0x21c   : > { %v1198_v10 = vmul.f32 %v5203_v53, %v1077_v8 }
 0x21d   : > { %v1032_v13 = vadd.f32 %v1000_v63, %v836_v6  ;;  %v1266_v18 = vadd.f32 %v5223_v9, %v1227_v5  ;;  %v1199_v63 = vmul.f32 %v5203_v53, %v5178_v40  ;;  %v1202_v5 = vmul.f32 %v5203_v53, %v5187_v43 }
 0x21e   : > { %v684_v14 = vpop.permute.xlu0 %683  ;;  %v1230_v16 = vadd.f32 %v1198_v10, %v1034_v12 }
 0x21f   : > { %v1228_v15 = vadd.f32 %v1196_v2, %v1032_v13  ;;  %v837_v17 = vmul.f32 %v5207_v54, %v684_v14  ;;  %4034 = vset.pattern.permute.xlu1 %v4609_v4  ;;  %v1298_v34 = vmax.f32 %v1266_v18, 0.0 }
 0x220   : > { %1128 = vperm.xlu1 %4034, %v654_v36   ;;  %v699_v20 = vpop.permute.xlu1 %698  ;;  %v1269_v32 = vadd.f32 %v5223_v9, %v1230_v16 }
 0x221   : > { %v1033_v22 = vadd.f32 %v1001_v11, %v837_v17  ;;  %v1267_v23 = vadd.f32 %v5223_v9, %v1228_v15  ;;  %v840_v8 = vmul.f32 %v5207_v54, %v699_v20 }
 0x222   : > { %v694_v26 = vpop.permute.xlu0 %693  ;;  %v1301_v46 = vmax.f32 %v1269_v32, 0.0 }
 0x223   : > { %v1229_v33 = vadd.f32 %v1197_v21, %v1033_v22  ;;  %v1299_v35 = vmax.f32 %v1267_v23, 0.0  ;;  %v839_v60 = vmul.f32 %v5207_v54, %v694_v26 }
 0x224   : > { %1136 = vperm.xlu1 %4034, %v5116_v19  }
 0x225   : > { %v1268_v37 = vadd.f32 %v5223_v9, %v1229_v33  ;;  %v885_v39 = vpop.permute.xlu1 %884  ;;  %v1330_v44 = vpack.c.bf16 %v1299_v35, %v1298_v34 }
 0x226   : > { %v5235_v36 = vpop.permute.xlu0 %718  ;;  %v1003_v61 = vmul.f32 %v5198_v50, %v885_v39 }
 0x227   : > { %v1300_v47 = vmax.f32 %v1268_v37, 0.0  ;;  %3684 = vmatprep.mubr.msk.bf16.mxu0 %vm1385_vm0, %v1330_v44 }
 0x228   : > { %1140 = vperm.xlu1 %4034, %v657_v52   ;;  %v1035_v1 = vadd.f32 %v1003_v61, %v839_v60 }
 0x229   : > { %v1331_v51 = vpack.c.bf16 %v1301_v46, %v1300_v47 }
 0x22a   : > { %v704_v55 = vpop.permute.xlu1 %703  ;;  %v5238_v56 = vpop.permute.xlu0 %723  ;;  %v1231_v10 = vadd.f32 %v1199_v63, %v1035_v1 }
 0x22b   : > { %3685 = vmatmul.mubr.msk.bf16.vlgmr.msra.gmra.mrb[0].mxu0 %vm1385_vm0, %v1331_v51  ;;  %v841_v15 = vmul.f32 %v5207_v54, %v704_v55  ;;  %v662_v55 = vld [vmem:[%s5055_s3 + $0xc0] sm:$0xff] }
 0x22c   : > { %4035 = vset.pattern.permute.xlu1 %v4610_v7  ;;  %v1270_v43 = vadd.f32 %v5223_v9, %v1231_v10 }
 0x22d   : > { %778 = vperm.xlu1 %4035, %v5131_v24  }
 0x22e   : > { %v709_v19 = vpop.permute.xlu1 %708  ;;  %v5243_v57 = vpop.permute.xlu0 %733  ;;  %v1302_v32 = vmax.f32 %v1270_v43, 0.0 }
 0x22f   : > { %v842_v3 = vmul.f32 %v5207_v54, %v709_v19 }
 0x231   : > { %4036 = vset.pattern.permute.xlu1 %v4608_v0 }
 0x232   : > { %948 = vperm.xlu1 %4036, %v5145_v27   ;;  %v5247_v58 = vpop.permute.xlu0 %758 }
 0x233   : > { %v897_v52 = vpop.permute.xlu1 %896 }
 0x234   : > { %v1006_v2 = vmul.f32 %v5198_v50, %v897_v52 }
 0x236   : > { %4037 = vset.pattern.permute.xlu1 %v4610_v7  ;;  %v5252_v62 = vpop.permute.xlu0 %763  ;;  %v1038_v11 = vadd.f32 %v1006_v2, %v842_v3  ;;  %v845_v2 = vmul.f32 %v5207_v54, %v5238_v56 }
 0x237   : > { %783 = vperm.xlu1 %4037, %v5136_v25  }
 0x238   : > { %v1085_v27 = vpop.permute.xlu1 %1084  ;;  %v1234_v17 = vadd.f32 %v1202_v5, %v1038_v11 }
 0x239   : > { %v1200_v40 = vmul.f32 %v5203_v53, %v1085_v27 }
 0x23a   : > { %v1273_v33 = vadd.f32 %v5223_v9, %v1234_v17 }
 0x23b   : > { %v889_v6 = vpop.permute.xlu0 %888  ;;  %788 = vperm.xlu1 %4037, %v5149_v28  }
 0x23c   : > { %v1004_v12 = vmul.f32 %v5198_v50, %v889_v6  ;;  %v1089_v13 = vpop.permute.xlu1 %1088  ;;  %v1305_v44 = vmax.f32 %v1273_v33, 0.0 }
 0x23d   : > { %v1201_v23 = vmul.f32 %v5203_v53, %v1089_v13 }
 0x23e   : > { %v1036_v14 = vadd.f32 %v1004_v12, %v840_v8  ;;  %v665_v8 = vld [vmem:[%s5055_s3 + $0xd8] sm:$0xff]  ;;  %s3073_s3 = scalar_lea.sflag [#allocation24], %s5051_s28 }
 0x23f   : > { %v893_v16 = vpop.permute.xlu0 %892  ;;  %4039 = vset.pattern.permute.xlu1 %v4608_v0 }
 0x240   : > { %v1232_v18 = vadd.f32 %v1200_v40, %v1036_v14  ;;  %v1005_v21 = vmul.f32 %v5198_v50, %v893_v16  ;;  %960 = vperm.xlu1 %4039, %v5149_v28  }
 0x241   : > { %v714_v20 = vpop.permute.xlu1 %713 }
 0x242   : > { %v1271_v22 = vadd.f32 %v5223_v9, %v1232_v18  ;;  %v1037_v26 = vadd.f32 %v1005_v21, %v841_v15 }
 0x243   : > { %v909_v60 = vpop.permute.xlu0 %908 }
 0x244   : > { %v1303_v34 = vmax.f32 %v1271_v22, 0.0  ;;  %v1233_v35 = vadd.f32 %v1201_v23, %v1037_v26  ;;  %4040 = vset.pattern.permute.xlu1 %v4609_v4  ;;  %v1009_v3 = vmul.f32 %v5198_v50, %v909_v60 }
 0x245   : > { %1148 = vperm.xlu1 %4040, %v5131_v24   ;;  %v844_v24 = vmul.f32 %v5207_v54, %v5235_v36  ;;  %v843_v36 = vmul.f32 %v5207_v54, %v714_v20 }
 0x246   : > { %v1272_v37 = vadd.f32 %v5223_v9, %v1233_v35  ;;  %v901_v39 = vpop.permute.xlu1 %900  ;;  %v1332_v28 = vpack.c.bf16 %v1303_v34, %v1302_v32  ;;  %v1041_v12 = vadd.f32 %v1009_v3, %v845_v2 }
 0x247   : > { %v1007_v1 = vmul.f32 %v5198_v50, %v901_v39  ;;  %v921_v5 = vpop.permute.xlu0 %920 }
 0x248   : > { %v1304_v46 = vmax.f32 %v1272_v37, 0.0  ;;  %3688 = vmatprep.mubr.msk.bf16.mxu0 %vm1385_vm0, %v1332_v28 }
 0x249   : > { %1152 = vperm.xlu1 %4040, %v5136_v25   ;;  %v1204_v25 = vmul.f32 %v5203_v53, %v5194_v49  ;;  %v1039_v10 = vadd.f32 %v1007_v1, %v843_v36  ;;  %v1012_v1 = vmul.f32 %v5198_v50, %v921_v5 }
 0x24a   : > { %v905_v47 = vpop.permute.xlu1 %904  ;;  %v1333_v51 = vpack.c.bf16 %v1305_v44, %v1304_v46 }
 0x24b   : > { %v1008_v52 = vmul.f32 %v5198_v50, %v905_v47  ;;  %v925_v14 = vpop.permute.xlu0 %924 }
 0x24c   : > { %3689 = vmatmul.mubr.msk.bf16.gmra.mrb[4].mxu0 %vm1385_vm0, %v1333_v51 }
 0x24d   : > { %4041 = vset.pattern.permute.xlu1 %v4610_v7  ;;  %v1040_v61 = vadd.f32 %v1008_v52, %v844_v24 }
 0x24e   : > { %793 = vperm.xlu1 %4041, %v662_v55  }
 0x24f   : > { %v729_v19 = vpop.permute.xlu1 %728  ;;  %v1236_v27 = vadd.f32 %v1204_v25, %v1040_v61  ;;  %v5304_v32 = vpop.permute.xlu0 %940 }
 0x250   : > { %v846_v43 = vmul.f32 %v5207_v54, %v729_v19  ;;  %v847_v19 = vmul.f32 %v5207_v54, %v5243_v57 }
 0x251   : > { %v1275_v11 = vadd.f32 %v5223_v9, %v1236_v27 }
 0x252   : > { %4042 = vset.pattern.permute.xlu1 %v4608_v0 }
 0x253   : > { %964 = vperm.xlu1 %4042, %v662_v55   ;;  %v1307_v16 = vmax.f32 %v1275_v11, 0.0  ;;  %v5309_v44 = vpop.permute.xlu0 %952 }
 0x254   : > { %v913_v63 = vpop.permute.xlu1 %912 }
 0x255   : > { %v1010_v56 = vmul.f32 %v5198_v50, %v913_v63 }
 0x257   : > { %968 = vperm.xlu1 %4042, %v5154_v29   ;;  %v1042_v20 = vadd.f32 %v1010_v56, %v846_v43  ;;  %v5313_v47 = vpop.permute.xlu0 %956 }
 0x259   : > { %v1097_v6 = vpop.permute.xlu1 %1096 }
 0x25a   : > { %v1203_v49 = vmul.f32 %v5203_v53, %v1097_v6  ;;  %v1013_v6 = vmul.f32 %v5198_v50, %v925_v14 }
 0x25b   : > { %4043 = vset.pattern.permute.xlu1 %v4610_v7 }
 0x25c   : > { %v1235_v29 = vadd.f32 %v1203_v49, %v1039_v10  ;;  %808 = vperm.xlu1 %4043, %v665_v8   ;;  %v1113_v52 = vpop.permute.xlu0 %1112  ;;  %v5333_v49 = vld [vmem:[#allocation8] sm:$0xff]  }
 0x25d   : > { %v1105_v13 = vpop.permute.xlu1 %1104  ;;  %v1207_v60 = vmul.f32 %v5203_v53, %v1113_v52  ;;  %3716 = vmatprep.subr.bf16.mxu1 %v5333_v49 }
 0x25e   : > { %v1274_v40 = vadd.f32 %v5223_v9, %v1235_v29  ;;  %v1205_v15 = vmul.f32 %v5203_v53, %v1105_v13 }
 0x260   : > { %v1306_v17 = vmax.f32 %v1274_v40, 0.0  ;;  %v1237_v18 = vadd.f32 %v1205_v15, %v1041_v12  ;;  %4044 = vset.pattern.permute.xlu1 %v4608_v0  ;;  %v1125_v63 = vpop.permute.xlu0 %1124 }
 0x261   : > { %976 = vperm.xlu1 %4044, %v665_v8   ;;  %v1109_v21 = vpop.permute.xlu1 %1108  ;;  %v1210_v3 = vmul.f32 %v5203_v53, %v1125_v63 }
 0x262   : > { %v1334_v22 = vpack.c.bf16 %v1307_v16, %v1306_v17  ;;  %v1206_v23 = vmul.f32 %v5203_v53, %v1109_v21  ;;  %v1276_v26 = vadd.f32 %v5223_v9, %v1237_v18 }
 0x264   : > { %v1238_v33 = vadd.f32 %v1206_v23, %v1042_v20  ;;  %3692 = vmatprep.mubr.msk.bf16.mxu0 %vm1385_vm0, %v1334_v22  ;;  %v1308_v37 = vmax.f32 %v1276_v26, 0.0 }
 0x265   : > { %4045 = vset.pattern.permute.xlu1 %v4609_v4 }
 0x266   : > { %v1277_v34 = vadd.f32 %v5223_v9, %v1238_v33  ;;  %1160 = vperm.xlu1 %4045, %v662_v55   ;;  %v739_v35 = vpop.permute.xlu1 %738 }
 0x267   : > { %v848_v2 = vmul.f32 %v5207_v54, %v739_v35  ;;  %v1133_v35 = vpop.permute.xlu0 %1132 }
 0x268   : > { %v1309_v39 = vmax.f32 %v1277_v34, 0.0 }
 0x26a   : > { %v1335_v28 = vpack.c.bf16 %v1309_v39, %v1308_v37  ;;  %1168 = vperm.xlu1 %4045, %v5163_v30   ;;  %v852_v37 = vmul.f32 %v5207_v54, %v5247_v58 }
 0x26b   : > { %v917_v46 = vpop.permute.xlu1 %916 }
 0x26c   : > { %3693 = vmatmul.mubr.msk.bf16.gmra.mrb[8].mxu0 %vm1385_vm0, %v1335_v28  ;;  %v1011_v24 = vmul.f32 %v5198_v50, %v917_v46 }
 0x26e   : > { %1172 = vperm.xlu1 %4045, %v665_v8   ;;  %v1043_v30 = vadd.f32 %v1011_v24, %v847_v19  ;;  %v1044_v8 = vadd.f32 %v1012_v1, %v848_v2  ;;  %v1017_v19 = vmul.f32 %v5198_v50, %v5304_v32 }
 0x270   : > { %v744_v51 = vpop.permute.xlu1 %743  ;;  %v1239_v36 = vadd.f32 %v1207_v60, %v1043_v30 }
 0x271   : > { %v849_v10 = vmul.f32 %v5207_v54, %v744_v51 }
 0x272   : > { %4048 = vset.pattern.permute.xlu1 %v4610_v7  ;;  %v1278_v11 = vadd.f32 %v5223_v9, %v1239_v36 }
 0x273   : > { %818 = vperm.xlu1 %4048, %v5176_v38   ;;  %v1045_v56 = vadd.f32 %v1013_v6, %v849_v10 }
 0x274   : > { %v749_v55 = vpop.permute.xlu1 %748  ;;  %v1310_v15 = vmax.f32 %v1278_v11, 0.0 }
 0x275   : > { %v850_v57 = vmul.f32 %v5207_v54, %v749_v55 }
 0x277   : > { %4049 = vset.pattern.permute.xlu1 %v4608_v0 }
 0x278   : > { %980 = vperm.xlu1 %4049, %v5168_v31  }
 0x279   : > { %v929_v25 = vpop.permute.xlu1 %928 }
 0x27a   : > { %v1014_v61 = vmul.f32 %v5198_v50, %v929_v25 }
 0x27c   : > { %4050 = vset.pattern.permute.xlu1 %v4610_v7  ;;  %v1046_v27 = vadd.f32 %v1014_v61, %v850_v57  ;;  %v1145_v57 = vpop.permute.xlu0 %1144 }
 0x27d   : > { %823 = vperm.xlu1 %4050, %v5185_v42  }
 0x27e   : > { %v1117_v31 = vpop.permute.xlu1 %1116  ;;  %v1242_v12 = vadd.f32 %v1210_v3, %v1046_v27 }
 0x27f   : > { %v1208_v5 = vmul.f32 %v5203_v53, %v1117_v31 }
 0x280   : > { %v1281_v16 = vadd.f32 %v5223_v9, %v1242_v12  ;;  %v1157_v11 = vpop.permute.xlu0 %1156 }
 0x281   : > { %v1240_v29 = vadd.f32 %v1208_v5, %v1044_v8  ;;  %828 = vperm.xlu1 %4050, %v5213_v59  }
 0x282   : > { %v1121_v13 = vpop.permute.xlu1 %1120  ;;  %v1313_v22 = vmax.f32 %v1281_v16, 0.0  ;;  %v4060_v16 = vld [vmem:[#allocation8 + $0x10] sm:$0xff]  }
 0x283   : > { %v1279_v40 = vadd.f32 %v5223_v9, %v1240_v29  ;;  %v1209_v14 = vmul.f32 %v5203_v53, %v1121_v13 }
 0x285   : > { %v1311_v43 = vmax.f32 %v1279_v40, 0.0  ;;  %v1241_v17 = vadd.f32 %v1209_v14, %v1045_v56  ;;  %4051 = vset.pattern.permute.xlu1 %v4608_v0  ;;  %v4059_v40 = vld [vmem:[#allocation8 + $0x8] sm:$0xff]  }
 0x286   : > { %992 = vperm.xlu1 %4051, %v5213_v59  }
 0x287   : > { %v1336_v18 = vpack.c.bf16 %v1311_v43, %v1310_v15  ;;  %v1280_v21 = vadd.f32 %v5223_v9, %v1241_v17  ;;  %v754_v20 = vpop.permute.xlu1 %753  ;;  %v5370_v15 = vpop.permute.xlu0 %1164 }
 0x288   : > { %v851_v46 = vmul.f32 %v5207_v54, %v754_v20 }
 0x289   : > { %v1312_v23 = vmax.f32 %v1280_v21, 0.0  ;;  %3696 = vmatprep.mubr.msk.bf16.mxu0 %vm1385_vm0, %v1336_v18  ;;  %v4061_v18 = vld [vmem:[#allocation8 + $0x18] sm:$0xff]  }
 0x28a   : > { %4053 = vset.pattern.permute.xlu1 %v4609_v4  ;;  %v1212_v4 = vmul.f32 %v5203_v53, %v1133_v35 }
 0x28b   : > { %v1337_v26 = vpack.c.bf16 %v1313_v22, %v1312_v23  ;;  %1180 = vperm.xlu1 %4053, %v5176_v38   ;;  %v774_v17 = vpop.permute.xlu0 %773  ;;  %v4062_v23 = vld [vmem:[#allocation8 + $0x20] sm:$0xff]  }
 0x28c   : > { %v933_v33 = vpop.permute.xlu1 %932  ;;  %v855_v20 = vmul.f32 %v5207_v54, %v774_v17 }
 0x28d   : > { %3697 = vmatmul.mubr.msk.bf16.gmra.mrb[12].mxu0 %vm1385_vm0, %v1337_v26  ;;  %v1015_v38 = vmul.f32 %v5198_v50, %v933_v33  ;;  %v1215_v26 = vmul.f32 %v5203_v53, %v1145_v57 }
 0x28e   : > { %2063 = vmatprep.mubr.bf16.mxu0 %v4610_v7 }
 0x28f   : > { %1184 = vperm.xlu1 %4053, %v5185_v42   ;;  %v853_v42 = vmul.f32 %v5207_v54, %v5252_v62  ;;  %v1047_v24 = vadd.f32 %v1015_v38, %v851_v46  ;;  %v4064_v46 = vld [vmem:[#allocation8 + $0x30] sm:$0xff]  }
 0x290   : > { %v937_v0 = vpop.permute.xlu1 %936 }
 0x291   : > { %v1016_v34 = vmul.f32 %v5198_v50, %v937_v0  ;;  %v1049_v25 = vadd.f32 %v1017_v19, %v853_v42  ;;  %v1021_v19 = vmul.f32 %v5198_v50, %v5313_v47 }
 0x293   : > { %v1048_v39 = vadd.f32 %v1016_v34, %v852_v37  ;;  %v1020_v37 = vmul.f32 %v5198_v50, %v5309_v44 }
 0x295   : > { %v769_v59 = vpop.permute.xlu1 %768  ;;  %v1244_v51 = vadd.f32 %v1212_v4, %v1048_v39  ;;  %v1218_v39 = vmul.f32 %v5203_v53, %v1157_v11 }
 0x296   : > { %v854_v2 = vmul.f32 %v5207_v54, %v769_v59  ;;  %v4063_v59 = vld [vmem:[#allocation8 + $0x28] sm:$0xff]  }
 0x297   : > { %v1283_v30 = vadd.f32 %v5223_v9, %v1244_v51 }
 0x299   : > { %v1315_v32 = vmax.f32 %v1283_v30, 0.0  ;;  %v4065_v30 = vld [vmem:[#allocation8 + $0x38] sm:$0xff]  }
 0x29a   : > { %v945_v28 = vpop.permute.xlu1 %944 }
 0x29b   : > { %v1018_v61 = vmul.f32 %v5198_v50, %v945_v28 }
 0x29d   : > { %v1050_v3 = vadd.f32 %v1018_v61, %v854_v2 }
 0x29f   : > { %v1129_v55 = vpop.permute.xlu1 %1128 }
 0x2a0   : > { %v1211_v52 = vmul.f32 %v5203_v53, %v1129_v55 }
 0x2a2   : > { %v1243_v58 = vadd.f32 %v1211_v52, %v1047_v24 }
 0x2a3   : > { %v1137_v60 = vpop.permute.xlu1 %1136 }
 0x2a4   : > { %v1213_v63 = vmul.f32 %v5203_v53, %v1137_v60  ;;  %v1282_v1 = vadd.f32 %v5223_v9, %v1243_v58 }
 0x2a6   : > { %v1245_v62 = vadd.f32 %v1213_v63, %v1049_v25  ;;  %v1314_v36 = vmax.f32 %v1282_v1, 0.0 }
 0x2a7   : > { %v1141_v27 = vpop.permute.xlu1 %1140 }
 0x2a8   : > { %v1214_v31 = vmul.f32 %v5203_v53, %v1141_v27  ;;  %v1338_v6 = vpack.c.bf16 %v1315_v32, %v1314_v36  ;;  %v1284_v8 = vadd.f32 %v5223_v9, %v1245_v62 }
 0x2aa   : > { %v1246_v10 = vadd.f32 %v1214_v31, %v1050_v3  ;;  %3700 = vmatprep.mubr.msk.bf16.mxu1 %vm1385_vm0, %v1338_v6  ;;  %v1316_v29 = vmax.f32 %v1284_v8, 0.0  ;;  %v799_v31 = vpop.permute.xlu0 %798 }
 0x2ac   : > { %v1285_v5 = vadd.f32 %v5223_v9, %v1246_v10  ;;  %v779_v12 = vpop.permute.xlu1 %778 }
 0x2ad   : > { %v856_v34 = vmul.f32 %v5207_v54, %v779_v12  ;;  %v860_v12 = vmul.f32 %v5207_v54, %v799_v31 }
 0x2ae   : > { %v1317_v13 = vmax.f32 %v1285_v5, 0.0  ;;  %v804_v8 = vpop.permute.xlu0 %803 }
 0x2af   : > { %v1052_v51 = vadd.f32 %v1020_v37, %v856_v34 }
 0x2b0   : > { %v1339_v56 = vpack.c.bf16 %v1317_v13, %v1316_v29 }
 0x2b1   : > { %v949_v14 = vpop.permute.xlu1 %948 }
 0x2b2   : > { %3701 = vmatmul.mubr.msk.bf16.vlgmr.msra.gmra.mrb[0].mxu1 %vm1385_vm0, %v1339_v56  ;;  %v1019_v22 = vmul.f32 %v5198_v50, %v949_v14  ;;  %v814_v11 = vpop.permute.xlu0 %813  ;;  %v1220_v14 = vmul.f32 %v5203_v53, %v5370_v15 }
 0x2b3   : > { %3717 = vmatpush3.bf16.msra.mxu1 %v5333_v49 }
 0x2b4   : > { %3718 = vmatprep.subr.bf16.mxu1 %v4059_v40  ;;  %v1051_v33 = vadd.f32 %v1019_v22, %v855_v20 }
 0x2b6   : > { %v784_v43 = vpop.permute.xlu1 %783  ;;  %v1247_v4 = vadd.f32 %v1215_v26, %v1051_v33 }
 0x2b7   : > { %3719 = vmatpush3.bf16.msra.mxu1 %v4059_v40  ;;  %v857_v55 = vmul.f32 %v5207_v54, %v784_v43  ;;  %v973_v40 = vpop.permute.xlu0 %972 }
 0x2b8   : > { %3720 = vmatprep.subr.bf16.mxu1 %v4060_v16  ;;  %v1286_v24 = vadd.f32 %v5223_v9, %v1247_v4 }
 0x2b9   : > { %v1053_v60 = vadd.f32 %v1021_v19, %v857_v55 }
 0x2ba   : > { %v789_v21 = vpop.permute.xlu1 %788  ;;  %v1318_v63 = vmax.f32 %v1286_v24, 0.0 }
 0x2bb   : > { %3721 = vmatpush3.bf16.msra.mxu1 %v4060_v16  ;;  %v858_v35 = vmul.f32 %v5207_v54, %v789_v21  ;;  %v1025_v21 = vmul.f32 %v5198_v50, %v973_v40 }
 0x2bc   : > { %3722 = vmatprep.subr.bf16.mxu1 %v4061_v18 }
 0x2bf   : > { %v961_v0 = vpop.permute.xlu1 %960  ;;  %3723 = vmatpush3.bf16.msra.mxu1 %v4061_v18  ;;  %v861_v18 = vmul.f32 %v5207_v54, %v804_v8  ;;  %v863_v8 = vmul.f32 %v5207_v54, %v814_v11 }
 0x2c0   : > { %v1022_v49 = vmul.f32 %v5198_v50, %v961_v0  ;;  %3724 = vmatprep.subr.bf16.mxu1 %v4062_v23 }
 0x2c1   : > { %v1057_v0 = vadd.f32 %v1025_v21, %v861_v18 }
 0x2c2   : > { %v1054_v28 = vadd.f32 %v1022_v49, %v858_v35 }
 0x2c3   : > { %3725 = vmatpush3.bf16.msra.mxu1 %v4062_v23 }
 0x2c4   : > { %v1149_v38 = vpop.permute.xlu1 %1148  ;;  %3726 = vmatprep.subr.bf16.mxu1 %v4063_v59  ;;  %v1250_v52 = vadd.f32 %v1218_v39, %v1054_v28 }
 0x2c5   : > { %v1216_v42 = vmul.f32 %v5203_v53, %v1149_v38 }
 0x2c6   : > { %v1289_v1 = vadd.f32 %v5223_v9, %v1250_v52 }
 0x2c7   : > { %v1248_v44 = vadd.f32 %v1216_v42, %v1052_v51  ;;  %3727 = vmatpush3.bf16.msra.mxu1 %v4063_v59 }
 0x2c8   : > { %v1153_v58 = vpop.permute.xlu1 %1152  ;;  %3728 = vmatprep.subr.bf16.mxu1 %v4064_v46  ;;  %v1321_v32 = vmax.f32 %v1289_v1, 0.0 }
 0x2c9   : > { %v1287_v25 = vadd.f32 %v5223_v9, %v1248_v44  ;;  %v1217_v61 = vmul.f32 %v5203_v53, %v1153_v58 }
 0x2cb   : > { %v1319_v2 = vmax.f32 %v1287_v25, 0.0  ;;  %v1249_v62 = vadd.f32 %v1217_v61, %v1053_v60  ;;  %3729 = vmatpush3.bf16.msra.mxu1 %v4064_v46 }
 0x2cc   : > { %3730 = vmatprep.subr.bf16.mxu1 %v4065_v30 }
 0x2cd   : > { %v1340_v47 = vpack.c.bf16 %v1319_v2, %v1318_v63  ;;  %v1288_v57 = vadd.f32 %v5223_v9, %v1249_v62  ;;  %v794_v36 = vpop.permute.xlu1 %793  ;;  %v5413_v63 = vld [vmem:[#allocation14] ss:$0 sm:$0xff] }
 0x2ce   : > { %v859_v43 = vmul.f32 %v5207_v54, %v794_v36 }
 0x2cf   : > { %v1320_v27 = vmax.f32 %v1288_v57, 0.0  ;;  %3704 = vmatprep.mubr.msk.bf16.mxu1 %vm1385_vm0, %v1340_v47  ;;  %3731 = vmatpush3.bf16.msra.mxu1 %v4065_v30  ;;  %v985_v30 = vpop.permute.xlu0 %984 }
 0x2d0   : > { %v1028_v18 = vmul.f32 %v5198_v50, %v985_v30 }
 0x2d1   : > { %v1341_v3 = vpack.c.bf16 %v1321_v32, %v1320_v27 }
 0x2d2   : > { %v965_v6 = vpop.permute.xlu1 %964 }
 0x2d3   : > { %3705 = vmatmul.mubr.msk.bf16.gmra.mrb[4].mxu1 %vm1385_vm0, %v1341_v3  ;;  %v1023_v16 = vmul.f32 %v5198_v50, %v965_v6  ;;  %v989_v25 = vpop.permute.xlu0 %988 }
 0x2d5   : > { %v1055_v22 = vadd.f32 %v1023_v16, %v859_v43 }
 0x2d6   : > { %v969_v10 = vpop.permute.xlu1 %968 }
 0x2d7   : > { %v1024_v29 = vmul.f32 %v5198_v50, %v969_v10  ;;  %v1177_v31 = vpop.permute.xlu0 %1176 }
 0x2d9   : > { %v1056_v13 = vadd.f32 %v1024_v29, %v860_v12 }
 0x2db   : > { %v809_v5 = vpop.permute.xlu1 %808  ;;  %v1252_v17 = vadd.f32 %v1220_v14, %v1056_v13 }
 0x2dc   : > { %v862_v37 = vmul.f32 %v5207_v54, %v809_v5 }
 0x2dd   : > { %v1291_v26 = vadd.f32 %v5223_v9, %v1252_v17  ;;  %v1189_v17 = vpop.permute.xlu0 %1188 }
 0x2df   : > { %v1323_v35 = vmax.f32 %v1291_v26, 0.0 }
 0x2e0   : > { %v977_v56 = vpop.permute.xlu1 %976 }
 0x2e1   : > { %v1026_v15 = vmul.f32 %v5198_v50, %v977_v56  ;;  %v1223_v56 = vmul.f32 %v5203_v53, %v1177_v31 }
 0x2e3   : > { %v1058_v38 = vadd.f32 %v1026_v15, %v862_v37 }
 0x2e5   : > { %v1161_v20 = vpop.permute.xlu1 %1160 }
 0x2e6   : > { %v1219_v23 = vmul.f32 %v5203_v53, %v1161_v20 }
 0x2e8   : > { %v1251_v33 = vadd.f32 %v1219_v23, %v1055_v22  ;;  %v1226_v23 = vmul.f32 %v5203_v53, %v1189_v17  ;;  %v4069_v17 = vld [vmem:[#allocation10 + $0x10] ss:$8 sps:$4 sm:$0xff]  }
 0x2e9   : > { %v1169_v49 = vpop.permute.xlu1 %1168 }
 0x2ea   : > { %v1290_v59 = vadd.f32 %v5223_v9, %v1251_v33  ;;  %v1221_v34 = vmul.f32 %v5203_v53, %v1169_v49 }
 0x2ec   : > { %v1322_v39 = vmax.f32 %v1290_v59, 0.0  ;;  %v1253_v4 = vadd.f32 %v1221_v34, %v1057_v0  ;;  %v1029_v0 = vmul.f32 %v5198_v50, %v989_v25 }
 0x2ed   : > { %v1173_v28 = vpop.permute.xlu1 %1172 }
 0x2ee   : > { %v1342_v46 = vpack.c.bf16 %v1323_v35, %v1322_v39  ;;  %v1222_v51 = vmul.f32 %v5203_v53, %v1173_v28  ;;  %v1292_v55 = vadd.f32 %v5223_v9, %v1253_v4 }
 0x2f0   : > { %v1254_v42 = vadd.f32 %v1222_v51, %v1058_v38  ;;  %3708 = vmatprep.mubr.msk.bf16.mxu1 %vm1385_vm0, %v1342_v46  ;;  %v1324_v52 = vmax.f32 %v1292_v55, 0.0 }
 0x2f2   : > { %v1293_v19 = vadd.f32 %v5223_v9, %v1254_v42  ;;  %v819_v24 = vpop.permute.xlu1 %818 }
 0x2f3   : > { %v864_v21 = vmul.f32 %v5207_v54, %v819_v24 }
 0x2f4   : > { %v1325_v44 = vmax.f32 %v1293_v19, 0.0 }
 0x2f5   : > { %v1060_v33 = vadd.f32 %v1028_v18, %v864_v21  ;;  %v4074_v18 = vld [vmem:[#allocation10 + $0x24] ss:$8 sps:$4 sm:$0xff]   ;;  %v4072_v21 = vld [vmem:[#allocation10 + $0x20] ss:$8 sps:$4 sm:$0xff]  }
 0x2f6   : > { %v1343_v58 = vpack.c.bf16 %v1325_v44, %v1324_v52 }
 0x2f7   : > { %v981_v60 = vpop.permute.xlu1 %980 }
 0x2f8   : > { %3709 = vmatmul.mubr.msk.bf16.gmra.mrb[8].mxu1 %vm1385_vm0, %v1343_v58  ;;  %v1027_v32 = vmul.f32 %v5198_v50, %v981_v60 }
 0x2fa   : > { %v1059_v13 = vadd.f32 %v1027_v32, %v863_v8 }
 0x2fc   : > { %v824_v61 = vpop.permute.xlu1 %823  ;;  %v1255_v11 = vadd.f32 %v1223_v56, %v1059_v13 }
 0x2fd   : > { %v865_v49 = vmul.f32 %v5207_v54, %v824_v61 }
 0x2fe   : > { %v3686_v1 = vpop.f32.mrb[0].mxu0  ;;  %v1294_v59 = vadd.f32 %v5223_v9, %v1255_v11 }
 0x2ff   : > { %v1477_v2 = vadd.f32 %v3686_v1, %v5413_v63  ;;  %v1468_v62 = vpop.f32.mrb[1].mxu0  ;;  %v1061_v39 = vadd.f32 %v1029_v0, %v865_v49 }
 0x300   : > { %v1469_v47 = vadd.f32 %v5413_v63, %v1468_v62  ;;  %v3687_v57 = vpop.f32.mrb[2].mxu0  ;;  %v829_v36 = vpop.permute.xlu1 %828  ;;  %v1326_v38 = vmax.f32 %v1294_v59, 0.0 }
 0x301   : > { %v1480_v27 = vadd.f32 %v3687_v57, %v5413_v63  ;;  %v1471_v3 = vpop.f32.mrb[3].mxu0  ;;  %v1597_v10 = vmax.f32 %v1477_v2, 0.0  ;;  %v866_v20 = vmul.f32 %v5207_v54, %v829_v36 }
 0x302   : > { %v1472_v6 = vadd.f32 %v5413_v63, %v1471_v3  ;;  %v1595_v12 = vmax.f32 %v1469_v47, 0.0 }
 0x303   : > { %v1598_v5 = vmax.f32 %v1480_v27, 0.0 }
 0x304   : > { %v1596_v29 = vmax.f32 %v1472_v6, 0.0 }
 0x305   : > { %v1628_v40 = vpack.c.bf16 %v1598_v5, %v1597_v10  ;;  %v993_v14 = vpop.permute.xlu1 %992 }
 0x306   : > { %v1627_v16 = vpack.c.bf16 %v1596_v29, %v1595_v12  ;;  %v1030_v43 = vmul.f32 %v5198_v50, %v993_v14  ;;  %v4066_v14 = vld [vmem:[#allocation10] ss:$8 sps:$4 sm:$0xff]  }
 0x308   : > { %v1062_v22 = vadd.f32 %v1030_v43, %v866_v20  ;;  %v4071_v43 = vld [vmem:[#allocation10 + $0x14] ss:$8 sps:$4 sm:$0xff]  }
 0x309   : > { %v4077_v20 = vld [vmem:[#allocation10 + $0x34] ss:$8 sps:$4 sm:$0xff]  }
 0x30a   : > { %v1181_v26 = vpop.permute.xlu1 %1180  ;;  %v1258_v34 = vadd.f32 %v1226_v23, %v1062_v22 }
 0x30b   : > { %v1224_v15 = vmul.f32 %v5203_v53, %v1181_v26  ;;  %v4075_v26 = vld [vmem:[#allocation10 + $0x30] ss:$8 sps:$4 sm:$0xff]  }
 0x30c   : > { %v1297_v46 = vadd.f32 %v5223_v9, %v1258_v34 }
 0x30d   : > { %v1256_v35 = vadd.f32 %v1224_v15, %v1060_v33 }
 0x30e   : > { %v1185_v37 = vpop.permute.xlu1 %1184  ;;  %v1329_v42 = vmax.f32 %v1297_v46, 0.0  ;;  %v4078_v46 = vld [vmem:[#allocation10 + $0x40] ss:$8 sps:$4 sm:$0xff]  }
 0x30f   : > { %v1295_v4 = vadd.f32 %v5223_v9, %v1256_v35  ;;  %v1225_v28 = vmul.f32 %v5203_v53, %v1185_v37 }
 0x311   : > { %v1327_v51 = vmax.f32 %v1295_v4, 0.0  ;;  %v1257_v55 = vadd.f32 %v1225_v28, %v1061_v39 }
 0x313   : > { %v1344_v50 = vpack.c.bf16 %v1327_v51, %v1326_v38  ;;  %v1296_v54 = vadd.f32 %v5223_v9, %v1257_v55  ;;  %v4080_v38 = vld [vmem:[#allocation10 + $0x44] ss:$8 sps:$4 sm:$0xff]   ;;  %v4083_v51 = vld [vmem:[#allocation10 + $0x54] ss:$8 sps:$4 sm:$0xff]   ;;  %v4081_v55 = vld [vmem:[#allocation10 + $0x50] ss:$8 sps:$4 sm:$0xff]  }
 0x315   : > { %v1328_v19 = vmax.f32 %v1296_v54, 0.0  ;;  %3712 = vmatprep.mubr.msk.bf16.mxu1 %vm1385_vm0, %v1344_v50  ;;  %v4086_v50 = vld [vmem:[#allocation10 + $0x64] ss:$8 sps:$4 sm:$0xff]   ;;  %v4084_v54 = vld [vmem:[#allocation10 + $0x60] ss:$8 sps:$4 sm:$0xff]  }
 0x317   : > { %v1345_v24 = vpack.c.bf16 %v1329_v42, %v1328_v19  ;;  %v4089_v42 = vld [vmem:[#allocation10 + $0x74] ss:$8 sps:$4 sm:$0xff]   ;;  %v4087_v19 = vld [vmem:[#allocation10 + $0x70] ss:$8 sps:$4 sm:$0xff]  }
 0x319   : > { %3713 = vmatmul.mubr.msk.bf16.gmra.mrb[12].mxu1 %vm1385_vm0, %v1345_v24 }
 0x31a   : > { %3732 = vmatprep.mubr.bf16.mxu1 %v1627_v16  ;;  %v4068_v16 = vld [vmem:[#allocation10 + $0x4] ss:$8 sps:$4 sm:$0xff]  }
 0x31b   : > { %2031 = vmatprep.subr.bf16.mxu0 %v4068_v16 }
 0x31c   : > { %2032 = vmatpush1.bf16.msra.mxu0 %v4066_v14 }
 0x31d   : > { %2033 = vmatprep.subr.bf16.mxu0 %v4071_v43 }
 0x31f   : > { %v3690_v52 = vpop.f32.mrb[4].mxu0 }
 0x320   : > { %v1493_v44 = vadd.f32 %v3690_v52, %v5413_v63  ;;  %v1484_v53 = vpop.f32.mrb[5].mxu0  ;;  %2034 = vmatpush1.bf16.msra.mxu0 %v4069_v17 }
 0x321   : > { %v1485_v58 = vadd.f32 %v5413_v63, %v1484_v53  ;;  %v3691_v30 = vpop.f32.mrb[6].mxu0  ;;  %3733 = vmatmul.mubr.bf16.vlgmr.msra.gmra.mrb[16].mxu1 %v1628_v40  ;;  %2035 = vmatprep.subr.bf16.mxu0 %v4074_v18 }
 0x322   : > { %v1496_v60 = vadd.f32 %v3691_v30, %v5413_v63  ;;  %v1487_v25 = vpop.f32.mrb[7].mxu0  ;;  %v1601_v61 = vmax.f32 %v1493_v44, 0.0 }
 0x323   : > { %v1488_v9 = vadd.f32 %v5413_v63, %v1487_v25  ;;  %v1599_v2 = vmax.f32 %v1485_v58, 0.0 }
 0x324   : > { %v1602_v1 = vmax.f32 %v1496_v60, 0.0  ;;  %2036 = vmatpush1.bf16.msra.mxu0 %v4072_v21 }
 0x325   : > { %v1600_v62 = vmax.f32 %v1488_v9, 0.0  ;;  %2037 = vmatprep.subr.bf16.mxu0 %v4077_v20 }
 0x326   : > { %v1630_v47 = vpack.c.bf16 %v1602_v1, %v1601_v61 }
 0x327   : > { %v1629_v57 = vpack.c.bf16 %v1600_v62, %v1599_v2 }
 0x328   : > { %2038 = vmatpush1.bf16.msra.mxu0 %v4075_v26 }
 0x329   : > { %3736 = vmatprep.mubr.bf16.mxu1 %v1629_v57  ;;  %2039 = vmatprep.subr.bf16.mxu0 %v4080_v38 }
 0x32a   : > { %3737 = vmatmul.mubr.bf16.gmra.mrb[20].mxu1 %v1630_v47 }
 0x32c   : > { %2040 = vmatpush1.bf16.msra.mxu0 %v4078_v46 }
 0x32d   : > { %2041 = vmatprep.subr.bf16.mxu0 %v4083_v51 }
 0x330   : > { %2042 = vmatpush1.bf16.msra.mxu0 %v4081_v55  ;;  %v5465_v55 = vld [vmem:[#allocation16] ss:$0 sm:$0xff] }
 0x331   : > { %2043 = vmatprep.subr.bf16.mxu0 %v4086_v50 }
 0x334   : > { %2044 = vmatpush1.bf16.msra.mxu0 %v4084_v54 }
 0x335   : > { %2045 = vmatprep.subr.bf16.mxu0 %v4089_v42 }
 0x338   : > { %2046 = vmatpush1.bf16.msra.mxu0 %v4087_v19 }
 0x33f   : > { %v3694_v36 = vpop.f32.mrb[8].mxu0 }
 0x340   : > { %v1509_v32 = vadd.f32 %v3694_v36, %v5413_v63  ;;  %v1500_v27 = vpop.f32.mrb[9].mxu0 }
 0x341   : > { %v1501_v3 = vadd.f32 %v5413_v63, %v1500_v27  ;;  %v3695_v31 = vpop.f32.mrb[10].mxu0 }
 0x342   : > { %v1512_v6 = vadd.f32 %v3695_v31, %v5413_v63  ;;  %v1503_v8 = vpop.f32.mrb[11].mxu0  ;;  %v1605_v5 = vmax.f32 %v1509_v32, 0.0 }
 0x343   : > { %v1504_v10 = vadd.f32 %v5413_v63, %v1503_v8  ;;  %v1603_v29 = vmax.f32 %v1501_v3, 0.0 }
 0x344   : > { %v1606_v12 = vmax.f32 %v1512_v6, 0.0 }
 0x345   : > { %v1604_v13 = vmax.f32 %v1504_v10, 0.0 }
 0x346   : > { %v1632_v56 = vpack.c.bf16 %v1606_v12, %v1605_v5 }
 0x347   : > { %v1631_v40 = vpack.c.bf16 %v1604_v13, %v1603_v29 }
 0x349   : > { %3740 = vmatprep.mubr.bf16.mxu1 %v1631_v40 }
 0x34a   : > { %3741 = vmatmul.mubr.bf16.gmra.mrb[24].mxu1 %v1632_v56 }
 0x360   : > { %v3698_v11 = vpop.f32.mrb[12].mxu0 }
 0x361   : > { %v1525_v22 = vadd.f32 %v3698_v11, %v5413_v63  ;;  %v1516_v23 = vpop.f32.mrb[13].mxu0 }
 0x362   : > { %v1517_v33 = vadd.f32 %v5413_v63, %v1516_v23  ;;  %v3699_v0 = vpop.f32.mrb[14].mxu0 }
 0x363   : > { %v1528_v49 = vadd.f32 %v3699_v0, %v5413_v63  ;;  %v1519_v15 = vpop.f32.mrb[15].mxu0  ;;  %v1609_v34 = vmax.f32 %v1525_v22, 0.0 }
 0x364   : > { %v1520_v59 = vadd.f32 %v5413_v63, %v1519_v15  ;;  %v1607_v37 = vmax.f32 %v1517_v33, 0.0 }
 0x365   : > { %v1610_v35 = vmax.f32 %v1528_v49, 0.0 }
 0x366   : > { %v1608_v39 = vmax.f32 %v1520_v59, 0.0 }
 0x367   : > { %v1634_v4 = vpack.c.bf16 %v1610_v35, %v1609_v34 }
 0x368   : > { %v1633_v28 = vpack.c.bf16 %v1608_v39, %v1607_v37 }
 0x36a   : > { %3744 = vmatprep.mubr.bf16.mxu1 %v1633_v28 }
 0x36b   : > { %3745 = vmatmul.mubr.bf16.gmra.mrb[28].mxu1 %v1634_v4 }
 0x385   : > { %v3702_v24 = vpop.f32.mrb[0].mxu1 }
 0x386   : > { %v1541_v52 = vadd.f32 %v3702_v24, %v5413_v63  ;;  %v1532_v44 = vpop.f32.mrb[1].mxu1 }
 0x387   : > { %v1533_v53 = vadd.f32 %v5413_v63, %v1532_v44  ;;  %v3703_v58 = vpop.f32.mrb[2].mxu1 }
 0x388   : > { %v1544_v30 = vadd.f32 %v3703_v58, %v5413_v63  ;;  %v1535_v60 = vpop.f32.mrb[3].mxu1  ;;  %v1613_v9 = vmax.f32 %v1541_v52, 0.0 }
 0x389   : > { %v1536_v25 = vadd.f32 %v5413_v63, %v1535_v60  ;;  %v1611_v1 = vmax.f32 %v1533_v53, 0.0 }
 0x38a   : > { %v1614_v61 = vmax.f32 %v1544_v30, 0.0 }
 0x38b   : > { %v1612_v2 = vmax.f32 %v1536_v25, 0.0 }
 0x38c   : > { %v1636_v62 = vpack.c.bf16 %v1614_v61, %v1613_v9 }
 0x38d   : > { %v1635_v47 = vpack.c.bf16 %v1612_v2, %v1611_v1 }
 0x38f   : > { %3748 = vmatprep.mubr.bf16.mxu1 %v1635_v47 }
 0x390   : > { %3749 = vmatmul.mubr.bf16.gmra.mrb[32].mxu1 %v1636_v62 }
 0x3a6   : > { %v3706_v57 = vpop.f32.mrb[4].mxu1 }
 0x3a7   : > { %v1557_v36 = vadd.f32 %v3706_v57, %v5413_v63  ;;  %v1548_v32 = vpop.f32.mrb[5].mxu1 }
 0x3a8   : > { %v1549_v27 = vadd.f32 %v5413_v63, %v1548_v32  ;;  %v3707_v3 = vpop.f32.mrb[6].mxu1 }
 0x3a9   : > { %v1560_v31 = vadd.f32 %v3707_v3, %v5413_v63  ;;  %v1551_v6 = vpop.f32.mrb[7].mxu1  ;;  %v1617_v10 = vmax.f32 %v1557_v36, 0.0 }
 0x3aa   : > { %v1552_v8 = vadd.f32 %v5413_v63, %v1551_v6  ;;  %v1615_v12 = vmax.f32 %v1549_v27, 0.0 }
 0x3ab   : > { %v1618_v5 = vmax.f32 %v1560_v31, 0.0 }
 0x3ac   : > { %v1616_v29 = vmax.f32 %v1552_v8, 0.0 }
 0x3ad   : > { %v1638_v13 = vpack.c.bf16 %v1618_v5, %v1617_v10 }
 0x3ae   : > { %v1637_v56 = vpack.c.bf16 %v1616_v29, %v1615_v12 }
 0x3b0   : > { %3752 = vmatprep.mubr.bf16.mxu1 %v1637_v56 }
 0x3b1   : > { %3753 = vmatmul.mubr.bf16.gmra.mrb[36].mxu1 %v1638_v13 }
 0x3cb   : > { %v3710_v40 = vpop.f32.mrb[8].mxu1 }
 0x3cc   : > { %v1573_v14 = vadd.f32 %v3710_v40, %v5413_v63  ;;  %v1564_v16 = vpop.f32.mrb[9].mxu1 }
 0x3cd   : > { %v1565_v43 = vadd.f32 %v5413_v63, %v1564_v16  ;;  %v3711_v17 = vpop.f32.mrb[10].mxu1 }
 0x3ce   : > { %v1576_v18 = vadd.f32 %v3711_v17, %v5413_v63  ;;  %v1567_v21 = vpop.f32.mrb[11].mxu1  ;;  %v1621_v11 = vmax.f32 %v1573_v14, 0.0 }
 0x3cf   : > { %v1568_v20 = vadd.f32 %v5413_v63, %v1567_v21  ;;  %v1619_v23 = vmax.f32 %v1565_v43, 0.0 }
 0x3d0   : > { %v1622_v22 = vmax.f32 %v1576_v18, 0.0 }
 0x3d1   : > { %v1620_v26 = vmax.f32 %v1568_v20, 0.0 }
 0x3d2   : > { %v1640_v33 = vpack.c.bf16 %v1622_v22, %v1621_v11 }
 0x3d3   : > { %v1639_v0 = vpack.c.bf16 %v1620_v26, %v1619_v23  ;;  %v4090_v26 = vld [vmem:[#allocation11 + $0x40] sm:$0xff]  }
 0x3d4   : > { %3540 = vmatprep.subr.bf16.mxu1 %v4090_v26 }
 0x3d5   : > { %3756 = vmatprep.mubr.bf16.mxu1 %v1639_v0  ;;  %v4092_v0 = vld [vmem:[#allocation11 + $0x48] sm:$0xff]  }
 0x3d6   : > { %3757 = vmatmul.mubr.bf16.gmra.mrb[40].mxu1 %v1640_v33  ;;  %v4091_v33 = vld [vmem:[#allocation11] sm:$0xff]  }
 0x3d7   : > { %3541 = vmatpush3.bf16.msra.mxu1 %v4091_v33 }
 0x3d8   : > { %3542 = vmatprep.subr.bf16.mxu1 %v4092_v0 }
 0x3ec   : > { %v3714_v49 = vpop.f32.mrb[12].mxu1 }
 0x3ed   : > { %v1589_v15 = vadd.f32 %v3714_v49, %v5413_v63  ;;  %v1580_v59 = vpop.f32.mrb[13].mxu1  ;;  %v4093_v49 = vld [vmem:[#allocation11 + $0x8] sm:$0xff]  }
 0x3ee   : > { %v1581_v34 = vadd.f32 %v5413_v63, %v1580_v59  ;;  %v3715_v35 = vpop.f32.mrb[14].mxu1  ;;  %v4094_v59 = vld [vmem:[#allocation11 + $0x50] sm:$0xff]   ;;  %3543 = vmatpush3.bf16.msra.mxu1 %v4093_v49 }
 0x3ef   : > { %v1592_v37 = vadd.f32 %v3715_v35, %v5413_v63  ;;  %v1583_v39 = vpop.f32.mrb[15].mxu1  ;;  %v1625_v28 = vmax.f32 %v1589_v15, 0.0  ;;  %3544 = vmatprep.subr.bf16.mxu1 %v4094_v59 }
 0x3f0   : > { %v1584_v4 = vadd.f32 %v5413_v63, %v1583_v39  ;;  %v1623_v46 = vmax.f32 %v1581_v34, 0.0 }
 0x3f1   : > { %v1626_v38 = vmax.f32 %v1592_v37, 0.0 }
 0x3f2   : > { %v1624_v51 = vmax.f32 %v1584_v4, 0.0 }
 0x3f3   : > { %v1642_v50 = vpack.c.bf16 %v1626_v38, %v1625_v28  ;;  %v4095_v38 = vld [vmem:[#allocation11 + $0x10] sm:$0xff]  }
 0x3f4   : > { %v1641_v54 = vpack.c.bf16 %v1624_v51, %v1623_v46  ;;  %v3734_v42 = vpop.f32.mrb[16].mxu1  ;;  %v4096_v51 = vld [vmem:[#allocation11 + $0x58] sm:$0xff]   ;;  %3545 = vmatpush3.bf16.msra.mxu1 %v4095_v38 }
 0x3f5   : > { %v1757_v19 = vadd.f32 %v3734_v42, %v5465_v55  ;;  %v1748_v24 = vpop.f32.mrb[17].mxu1  ;;  %3546 = vmatprep.subr.bf16.mxu1 %v4096_v51 }
 0x3f6   : > { %v1749_v52 = vadd.f32 %v5465_v55, %v1748_v24  ;;  %v3735_v44 = vpop.f32.mrb[18].mxu1  ;;  %3760 = vmatprep.mubr.bf16.mxu1 %v1641_v54 }
 0x3f7   : > { %v1760_v53 = vadd.f32 %v3735_v44, %v5465_v55  ;;  %v1751_v58 = vpop.f32.mrb[19].mxu1  ;;  %3761 = vmatmul.mubr.bf16.gmra.mrb[44].mxu1 %v1642_v50  ;;  %v1877_v30 = vmax.f32 %v1757_v19, 0.0 }
 0x3f8   : > { %v1752_v63 = vadd.f32 %v5465_v55, %v1751_v58  ;;  %v1875_v25 = vmax.f32 %v1749_v52, 0.0  ;;  %v4097_v52 = vld [vmem:[#allocation11 + $0x18] sm:$0xff]   ;;  %v4099_v58 = vld [vmem:[#allocation11 + $0x20] sm:$0xff]  }
 0x3f9   : > { %v1878_v60 = vmax.f32 %v1760_v53, 0.0  ;;  %3547 = vmatpush3.bf16.msra.mxu1 %v4097_v52  ;;  %v4098_v53 = vld [vmem:[#allocation11 + $0x60] sm:$0xff]  }
 0x3fa   : > { %v1876_v9 = vmax.f32 %v1752_v63, 0.0  ;;  %3548 = vmatprep.subr.bf16.mxu1 %v4098_v53  ;;  %v4100_v63 = vld [vmem:[#allocation11 + $0x68] sm:$0xff]  }
 0x3fb   : > { %v1908_v61 = vpack.c.bf16 %v1878_v60, %v1877_v30  ;;  %v4101_v30 = vld [vmem:[#allocation11 + $0x28] sm:$0xff]   ;;  %v4102_v60 = vld [vmem:[#allocation11 + $0x70] sm:$0xff]  }
 0x3fc   : > { %v1907_v1 = vpack.c.bf16 %v1876_v9, %v1875_v25  ;;  %v4103_v25 = vld [vmem:[#allocation11 + $0x30] sm:$0xff]   ;;  %v4104_v9 = vld [vmem:[#allocation11 + $0x78] sm:$0xff]  }
 0x3fd   : > { %v3738_v2 = vpop.f32.mrb[20].mxu1  ;;  %3549 = vmatpush3.bf16.msra.mxu1 %v4099_v58 }
 0x3fe   : > { %v1773_v62 = vadd.f32 %v3738_v2, %v5465_v55  ;;  %v1764_v47 = vpop.f32.mrb[21].mxu1  ;;  %2064 = vmatmul.mubr.bf16.vlgmr.msra.gmra.mrb[16].mxu0 %v1907_v1  ;;  %3550 = vmatprep.subr.bf16.mxu1 %v4100_v63 }
 0x3ff   : > { %v1765_v57 = vadd.f32 %v5465_v55, %v1764_v47  ;;  %v3739_v36 = vpop.f32.mrb[22].mxu1  ;;  %2073 = vmatprep.mubr.bf16.mxu0 %v4610_v7 }
 0x400   : > { %v1776_v32 = vadd.f32 %v3739_v36, %v5465_v55  ;;  %v1767_v27 = vpop.f32.mrb[23].mxu1  ;;  %v1881_v31 = vmax.f32 %v1773_v62, 0.0 }
 0x401   : > { %v1768_v3 = vadd.f32 %v5465_v55, %v1767_v27  ;;  %v1879_v8 = vmax.f32 %v1765_v57, 0.0  ;;  %3551 = vmatpush3.bf16.msra.mxu1 %v4101_v30 }
 0x402   : > { %v1882_v6 = vmax.f32 %v1776_v32, 0.0  ;;  %3552 = vmatprep.subr.bf16.mxu1 %v4102_v60 }
 0x403   : > { %v1880_v10 = vmax.f32 %v1768_v3, 0.0 }
 0x404   : > { %v1910_v5 = vpack.c.bf16 %v1882_v6, %v1881_v31 }
 0x405   : > { %v1909_v12 = vpack.c.bf16 %v1880_v10, %v1879_v8  ;;  %3553 = vmatpush3.bf16.msra.mxu1 %v4103_v25 }
 0x406   : > { %2074 = vmatmul.mubr.bf16.gmra.mrb[20].mxu0 %v1908_v61  ;;  %v4105_v61 = vld [vmem:[#allocation11 + $0x38] sm:$0xff]   ;;  %3554 = vmatprep.subr.bf16.mxu1 %v4104_v9 }
 0x407   : > { %2083 = vmatprep.mubr.bf16.mxu0 %v4610_v7 }
 0x409   : > { %3555 = vmatpush3.bf16.msra.mxu1 %v4105_v61 }
 0x40e   : > { %2084 = vmatmul.mubr.bf16.gmra.mrb[24].mxu0 %v1909_v12 }
 0x40f   : > { %2093 = vmatprep.mubr.bf16.mxu0 %v4610_v7 }
 0x416   : > { %2094 = vmatmul.mubr.bf16.gmra.mrb[28].mxu0 %v1910_v5 }
 0x417   : > { %2103 = vmatprep.mubr.bf16.mxu0 %v4610_v7 }
 0x41d   : > { %v3742_v29 = vpop.f32.mrb[24].mxu1 }
 0x41e   : > { %v1789_v13 = vadd.f32 %v3742_v29, %v5465_v55  ;;  %v1780_v56 = vpop.f32.mrb[25].mxu1 }
 0x41f   : > { %v1781_v40 = vadd.f32 %v5465_v55, %v1780_v56  ;;  %v3743_v14 = vpop.f32.mrb[26].mxu1 }
 0x420   : > { %v1792_v16 = vadd.f32 %v3743_v14, %v5465_v55  ;;  %v1783_v43 = vpop.f32.mrb[27].mxu1  ;;  %v1885_v18 = vmax.f32 %v1789_v13, 0.0 }
 0x421   : > { %v1784_v17 = vadd.f32 %v5465_v55, %v1783_v43  ;;  %v1883_v20 = vmax.f32 %v1781_v40, 0.0 }
 0x422   : > { %v1886_v21 = vmax.f32 %v1792_v16, 0.0 }
 0x423   : > { %v1884_v11 = vmax.f32 %v1784_v17, 0.0 }
 0x424   : > { %v1912_v22 = vpack.c.bf16 %v1886_v21, %v1885_v18 }
 0x425   : > { %v1911_v23 = vpack.c.bf16 %v1884_v11, %v1883_v20 }
 0x427   : > { %2104 = vmatmul.mubr.bf16.gmra.mrb[32].mxu0 %v1911_v23 }
 0x428   : > { %2113 = vmatprep.mubr.bf16.mxu0 %v4610_v7 }
 0x42f   : > { %2114 = vmatmul.mubr.bf16.gmra.mrb[36].mxu0 %v1912_v22 }
 0x430   : > { %2123 = vmatprep.mubr.bf16.mxu0 %v4610_v7 }
 0x43e   : > { %v3746_v15 = vpop.f32.mrb[28].mxu1 }
 0x43f   : > { %v1805_v34 = vadd.f32 %v3746_v15, %v5465_v55  ;;  %v1796_v35 = vpop.f32.mrb[29].mxu1 }
 0x440   : > { %v1797_v37 = vadd.f32 %v5465_v55, %v1796_v35  ;;  %v3747_v39 = vpop.f32.mrb[30].mxu1 }
 0x441   : > { %v1808_v4 = vadd.f32 %v3747_v39, %v5465_v55  ;;  %v1799_v28 = vpop.f32.mrb[31].mxu1  ;;  %v1889_v50 = vmax.f32 %v1805_v34, 0.0 }
 0x442   : > { %v1800_v46 = vadd.f32 %v5465_v55, %v1799_v28  ;;  %v1887_v42 = vmax.f32 %v1797_v37, 0.0 }
 0x443   : > { %v1890_v54 = vmax.f32 %v1808_v4, 0.0 }
 0x444   : > { %v1888_v19 = vmax.f32 %v1800_v46, 0.0 }
 0x445   : > { %v1914_v24 = vpack.c.bf16 %v1890_v54, %v1889_v50  ;;  %v1939_v54 = vld [vmem:[#allocation17] sm:$0x3] }
 0x446   : > { %v1913_v44 = vpack.c.bf16 %v1888_v19, %v1887_v42  ;;  %v5515_v53 = vrot.slane %v1939_v54, %v833_v48  ;;  %v5519_v30 = vrot.slane %v1939_v54, %v997_v45 }
 0x448   : > { %2124 = vmatmul.mubr.bf16.gmra.mrb[40].mxu0 %v1913_v44 }
 0x449   : > { %2133 = vmatprep.mubr.bf16.mxu0 %v4610_v7 }
 0x450   : > { %2134 = vmatmul.mubr.bf16.gmra.mrb[44].mxu0 %v1914_v24 }
 0x451   : > { %2143 = vmatprep.mubr.bf16.mxu0 %v4610_v7 }
 0x463   : > { %v3750_v1 = vpop.f32.mrb[32].mxu1 }
 0x464   : > { %v1821_v2 = vadd.f32 %v3750_v1, %v5465_v55  ;;  %v1812_v62 = vpop.f32.mrb[33].mxu1 }
 0x465   : > { %v1813_v47 = vadd.f32 %v5465_v55, %v1812_v62  ;;  %v3751_v57 = vpop.f32.mrb[34].mxu1 }
 0x466   : > { %v1824_v36 = vadd.f32 %v3751_v57, %v5465_v55  ;;  %v1815_v32 = vpop.f32.mrb[35].mxu1  ;;  %v1893_v3 = vmax.f32 %v1821_v2, 0.0 }
 0x467   : > { %v1816_v27 = vadd.f32 %v5465_v55, %v1815_v32  ;;  %v1891_v6 = vmax.f32 %v1813_v47, 0.0 }
 0x468   : > { %v1894_v31 = vmax.f32 %v1824_v36, 0.0 }
 0x469   : > { %v1892_v8 = vmax.f32 %v1816_v27, 0.0 }
 0x46a   : > { %v1916_v10 = vpack.c.bf16 %v1894_v31, %v1893_v3 }
 0x46b   : > { %v1915_v5 = vpack.c.bf16 %v1892_v8, %v1891_v6 }
 0x46d   : > { %2144 = vmatmul.mubr.bf16.gmra.mrb[48].mxu0 %v1915_v5 }
 0x46e   : > { %2153 = vmatprep.mubr.bf16.mxu0 %v4610_v7 }
 0x475   : > { %2154 = vmatmul.mubr.bf16.gmra.mrb[52].mxu0 %v1916_v10 }
 0x476   : > { %2163 = vmatprep.mubr.bf16.mxu0 %v4610_v7 }
 0x484   : > { %v3754_v12 = vpop.f32.mrb[36].mxu1 }
 0x485   : > { %v1837_v29 = vadd.f32 %v3754_v12, %v5465_v55  ;;  %v1828_v13 = vpop.f32.mrb[37].mxu1 }
 0x486   : > { %v1829_v56 = vadd.f32 %v5465_v55, %v1828_v13  ;;  %v3755_v40 = vpop.f32.mrb[38].mxu1 }
 0x487   : > { %v1840_v14 = vadd.f32 %v3755_v40, %v5465_v55  ;;  %v1831_v16 = vpop.f32.mrb[39].mxu1  ;;  %v1897_v17 = vmax.f32 %v1837_v29, 0.0 }
 0x488   : > { %v1832_v43 = vadd.f32 %v5465_v55, %v1831_v16  ;;  %v1895_v21 = vmax.f32 %v1829_v56, 0.0 }
 0x489   : > { %v1898_v18 = vmax.f32 %v1840_v14, 0.0 }
 0x48a   : > { %v1896_v20 = vmax.f32 %v1832_v43, 0.0 }
 0x48b   : > { %v1918_v11 = vpack.c.bf16 %v1898_v18, %v1897_v17 }
 0x48c   : > { %v1917_v22 = vpack.c.bf16 %v1896_v20, %v1895_v21 }
 0x48e   : > { %2164 = vmatmul.mubr.bf16.gmra.mrb[56].mxu0 %v1917_v22 }
 0x48f   : > { %2173 = vmatprep.mubr.bf16.mxu0 %v4610_v7 }
 0x496   : > { %2174 = vmatmul.mubr.bf16.gmra.mrb[60].mxu0 %v1918_v11 }
 0x497   : > { %2183 = vmatprep.mubr.bf16.mxu0 %v4610_v7 }
 0x4a9   : > { %v3758_v23 = vpop.f32.mrb[40].mxu1 }
 0x4aa   : > { %v1853_v26 = vadd.f32 %v3758_v23, %v5465_v55  ;;  %v1844_v33 = vpop.f32.mrb[41].mxu1 }
 0x4ab   : > { %v1845_v0 = vadd.f32 %v5465_v55, %v1844_v33  ;;  %v3759_v49 = vpop.f32.mrb[42].mxu1 }
 0x4ac   : > { %v1856_v15 = vadd.f32 %v3759_v49, %v5465_v55  ;;  %v1847_v59 = vpop.f32.mrb[43].mxu1  ;;  %v1901_v35 = vmax.f32 %v1853_v26, 0.0 }
 0x4ad   : > { %v1848_v34 = vadd.f32 %v5465_v55, %v1847_v59  ;;  %v1899_v39 = vmax.f32 %v1845_v0, 0.0 }
 0x4ae   : > { %v1902_v37 = vmax.f32 %v1856_v15, 0.0 }
 0x4af   : > { %v1900_v4 = vmax.f32 %v1848_v34, 0.0 }
 0x4b0   : > { %v1920_v28 = vpack.c.bf16 %v1902_v37, %v1901_v35 }
 0x4b1   : > { %v1919_v38 = vpack.c.bf16 %v1900_v4, %v1899_v39 }
 0x4b3   : > { %2184 = vmatmul.mubr.bf16.gmra.mrb[64].mxu0 %v1919_v38 }
 0x4b4   : > { %2193 = vmatprep.mubr.bf16.mxu0 %v4610_v7 }
 0x4bb   : > { %2194 = vmatmul.mubr.bf16.gmra.mrb[68].mxu0 %v1920_v28 }
 0x4bc   : > { %2203 = vmatprep.mubr.bf16.mxu0 %v4610_v7 }
 0x4ca   : > { %v3762_v46 = vpop.f32.mrb[44].mxu1 }
 0x4cb   : > { %v1869_v51 = vadd.f32 %v3762_v46, %v5465_v55  ;;  %v1860_v50 = vpop.f32.mrb[45].mxu1 }
 0x4cc   : > { %v1861_v42 = vadd.f32 %v5465_v55, %v1860_v50  ;;  %v3763_v19 = vpop.f32.mrb[46].mxu1 }
 0x4cd   : > { %v1872_v24 = vadd.f32 %v3763_v19, %v5465_v55  ;;  %v1863_v52 = vpop.f32.mrb[47].mxu1  ;;  %v1905_v58 = vmax.f32 %v1869_v51, 0.0 }
 0x4ce   : > { %v1864_v44 = vadd.f32 %v5465_v55, %v1863_v52  ;;  %v1903_v60 = vmax.f32 %v1861_v42, 0.0 }
 0x4cf   : > { %v1906_v63 = vmax.f32 %v1872_v24, 0.0 }
 0x4d0   : > { %v1904_v25 = vmax.f32 %v1864_v44, 0.0 }
 0x4d1   : > { %v1922_v9 = vpack.c.bf16 %v1906_v63, %v1905_v58  ;;  %v2065_v61 = vpop.f32.mrb[16].mxu0 }
 0x4d2   : > { %v1921_v1 = vpack.c.bf16 %v1904_v25, %v1903_v60  ;;  %v2066_v2 = vadd.f32 %v2065_v61, %v5515_v53  ;;  %v2067_v62 = vpop.f32.mrb[17].mxu0 }
 0x4d3   : > { %v2068_v55 = vadd.f32 %v2067_v62, %v5519_v30  ;;  %v2069_v47 = vpop.f32.mrb[18].mxu0 }
 0x4d4   : > { %v2070_v48 = vadd.f32 %v2069_v47, %v5515_v53  ;;  %v2071_v57 = vpop.f32.mrb[19].mxu0  ;;  %2204 = vmatmul.mubr.bf16.gmra.mrb[72].mxu0 %v1921_v1  ;;  %v2224_v41 = vmax.f32 %v2066_v2, 0.0 }
 0x4d5   : > { %v2072_v36 = vadd.f32 %v2071_v57, %v5519_v30  ;;  %2213 = vmatprep.mubr.bf16.mxu0 %v4610_v7  ;;  %v2225_v32 = vmax.f32 %v2068_v55, 0.0 }
 0x4d6   : > { %v2226_v45 = vmax.f32 %v2070_v48, 0.0 }
 0x4d7   : > { %v2227_v27 = vmax.f32 %v2072_v36, 0.0 }
 0x4d8   : > { %v2288_v3 = vpack.c.bf16 %v2226_v45, %v2224_v41 }
 0x4d9   : > { %v2289_v31 = vpack.c.bf16 %v2227_v27, %v2225_v32  ;;  %v2075_v6 = vpop.f32.mrb[20].mxu0 }
 0x4da   : > { %v2076_v8 = vadd.f32 %v2075_v6, %v5515_v53  ;;  %v2077_v10 = vpop.f32.mrb[21].mxu0 }
 0x4db   : > { %v2078_v5 = vadd.f32 %v2077_v10, %v5519_v30  ;;  %v2079_v12 = vpop.f32.mrb[22].mxu0  ;;  %2487 = vmatprep.mubr.bf16.mxu1 %v2289_v31 }
 0x4dc   : > { %v2080_v29 = vadd.f32 %v2079_v12, %v5515_v53  ;;  %v2081_v13 = vpop.f32.mrb[23].mxu0  ;;  %2214 = vmatmul.mubr.bf16.gmra.mrb[76].mxu0 %v1922_v9  ;;  %2488 = vmatmul.mubr.bf16.vlgmr.msra.gmra.mrb[48].mxu1 %v2288_v3  ;;  %v2228_v56 = vmax.f32 %v2076_v8, 0.0 }
 0x4dd   : > { %v2082_v7 = vadd.f32 %v2081_v13, %v5519_v30  ;;  %v2229_v14 = vmax.f32 %v2078_v5, 0.0 }
 0x4de   : > { %v2230_v40 = vmax.f32 %v2080_v29, 0.0 }
 0x4df   : > { %v2231_v16 = vmax.f32 %v2082_v7, 0.0 }
 0x4e0   : > { %v2290_v43 = vpack.c.bf16 %v2230_v40, %v2228_v56  ;;  %v4106_v56 = vld [vmem:[#allocation20] sm:$0xff]   ;;  %v4107_v40 = vld [vmem:[#allocation20 + $0x8] sm:$0xff]  }
 0x4e1   : > { %v2291_v17 = vpack.c.bf16 %v2231_v16, %v2229_v14  ;;  %v2085_v18 = vpop.f32.mrb[24].mxu0  ;;  %3764 = vmatprep.subr.bf16.mxu0 %v4106_v56 }
 0x4e2   : > { %v2086_v21 = vadd.f32 %v2085_v18, %v5515_v53  ;;  %v2087_v20 = vpop.f32.mrb[25].mxu0  ;;  %3765 = vmatpush3.bf16.msra.mxu0 %v4106_v56 }
 0x4e3   : > { %v2088_v11 = vadd.f32 %v2087_v20, %v5519_v30  ;;  %v2089_v22 = vpop.f32.mrb[26].mxu0  ;;  %2495 = vmatprep.mubr.bf16.mxu1 %v2291_v17  ;;  %3766 = vmatprep.subr.bf16.mxu0 %v4107_v40 }
 0x4e4   : > { %v2090_v23 = vadd.f32 %v2089_v22, %v5515_v53  ;;  %v2091_v26 = vpop.f32.mrb[27].mxu0  ;;  %2496 = vmatmul.mubr.bf16.gmra.mrb[52].mxu1 %v2290_v43  ;;  %v2232_v0 = vmax.f32 %v2086_v21, 0.0 }
 0x4e5   : > { %v2092_v33 = vadd.f32 %v2091_v26, %v5519_v30  ;;  %v2233_v15 = vmax.f32 %v2088_v11, 0.0 }
 0x4e6   : > { %v2234_v49 = vmax.f32 %v2090_v23, 0.0  ;;  %3767 = vmatpush3.bf16.msra.mxu0 %v4107_v40 }
 0x4e7   : > { %v2235_v59 = vmax.f32 %v2092_v33, 0.0 }
 0x4e8   : > { %v2292_v34 = vpack.c.bf16 %v2234_v49, %v2232_v0 }
 0x4e9   : > { %v2293_v35 = vpack.c.bf16 %v2235_v59, %v2233_v15  ;;  %v2095_v37 = vpop.f32.mrb[28].mxu0 }
 0x4ea   : > { %v2096_v39 = vadd.f32 %v2095_v37, %v5515_v53  ;;  %v2097_v4 = vpop.f32.mrb[29].mxu0 }
 0x4eb   : > { %v2098_v28 = vadd.f32 %v2097_v4, %v5519_v30  ;;  %v2099_v38 = vpop.f32.mrb[30].mxu0  ;;  %2503 = vmatprep.mubr.bf16.mxu1 %v2293_v35 }
 0x4ec   : > { %v2100_v46 = vadd.f32 %v2099_v38, %v5515_v53  ;;  %v2101_v51 = vpop.f32.mrb[31].mxu0  ;;  %2504 = vmatmul.mubr.bf16.gmra.mrb[56].mxu1 %v2292_v34  ;;  %v2236_v54 = vmax.f32 %v2096_v39, 0.0  ;;  %v4108_v38 = vld [vmem:[#allocation20 + $0x10] sm:$0xff]  }
 0x4ed   : > { %v2102_v50 = vadd.f32 %v2101_v51, %v5519_v30  ;;  %v2237_v19 = vmax.f32 %v2098_v28, 0.0  ;;  %3768 = vmatprep.subr.bf16.mxu0 %v4108_v38 }
 0x4ee   : > { %v2238_v42 = vmax.f32 %v2100_v46, 0.0  ;;  %3769 = vmatpush3.bf16.msra.mxu0 %v4108_v38 }
 0x4ef   : > { %v2239_v24 = vmax.f32 %v2102_v50, 0.0 }
 0x4f0   : > { %v2294_v52 = vpack.c.bf16 %v2238_v42, %v2236_v54 }
 0x4f1   : > { %v2295_v44 = vpack.c.bf16 %v2239_v24, %v2237_v19  ;;  %v4109_v24 = vld [vmem:[#allocation20 + $0x18] sm:$0xff]  }
 0x4f2   : > { %3770 = vmatprep.subr.bf16.mxu0 %v4109_v24 }
 0x4f3   : > { %2511 = vmatprep.mubr.bf16.mxu1 %v2295_v44  ;;  %3771 = vmatpush3.bf16.msra.mxu0 %v4109_v24  ;;  %v4111_v44 = vld [vmem:[#allocation20 + $0x28] sm:$0xff]  }
 0x4f4   : > { %2512 = vmatmul.mubr.bf16.gmra.mrb[60].mxu1 %v2294_v52  ;;  %v4110_v52 = vld [vmem:[#allocation20 + $0x20] sm:$0xff]  }
 0x4f5   : > { %3772 = vmatprep.subr.bf16.mxu0 %v4110_v52 }
 0x4f7   : > { %3773 = vmatpush3.bf16.msra.mxu0 %v4110_v52 }
 0x4f8   : > { %3774 = vmatprep.subr.bf16.mxu0 %v4111_v44 }
 0x4fa   : > { %v2105_v58 = vpop.f32.mrb[32].mxu0 }
 0x4fb   : > { %v2106_v63 = vadd.f32 %v2105_v58, %v5515_v53  ;;  %v2107_v60 = vpop.f32.mrb[33].mxu0  ;;  %3775 = vmatpush3.bf16.msra.mxu0 %v4111_v44  ;;  %v4112_v58 = vld [vmem:[#allocation20 + $0x30] sm:$0xff]  }
 0x4fc   : > { %v2108_v25 = vadd.f32 %v2107_v60, %v5519_v30  ;;  %v2109_v9 = vpop.f32.mrb[34].mxu0  ;;  %3776 = vmatprep.subr.bf16.mxu0 %v4112_v58 }
 0x4fd   : > { %v2110_v61 = vadd.f32 %v2109_v9, %v5515_v53  ;;  %v2111_v1 = vpop.f32.mrb[35].mxu0  ;;  %v2240_v62 = vmax.f32 %v2106_v63, 0.0  ;;  %v4113_v63 = vld [vmem:[#allocation20 + $0x38] sm:$0xff]  }
 0x4fe   : > { %v2112_v2 = vadd.f32 %v2111_v1, %v5519_v30  ;;  %v2241_v47 = vmax.f32 %v2108_v25, 0.0 }
 0x4ff   : > { %v2242_v55 = vmax.f32 %v2110_v61, 0.0  ;;  %3777 = vmatpush3.bf16.msra.mxu0 %v4112_v58 }
 0x500   : > { %v2243_v48 = vmax.f32 %v2112_v2, 0.0  ;;  %3778 = vmatprep.subr.bf16.mxu0 %v4113_v63 }
 0x501   : > { %v2296_v57 = vpack.c.bf16 %v2242_v55, %v2240_v62 }
 0x502   : > { %v2297_v36 = vpack.c.bf16 %v2243_v48, %v2241_v47  ;;  %v2115_v41 = vpop.f32.mrb[36].mxu0 }
 0x503   : > { %v2116_v45 = vadd.f32 %v2115_v41, %v5515_v53  ;;  %v2117_v32 = vpop.f32.mrb[37].mxu0  ;;  %3779 = vmatpush3.bf16.msra.mxu0 %v4113_v63 }
 0x504   : > { %v2118_v27 = vadd.f32 %v2117_v32, %v5519_v30  ;;  %v2119_v3 = vpop.f32.mrb[38].mxu0  ;;  %2519 = vmatprep.mubr.bf16.mxu1 %v2297_v36 }
 0x505   : > { %v2120_v31 = vadd.f32 %v2119_v3, %v5515_v53  ;;  %v2121_v6 = vpop.f32.mrb[39].mxu0  ;;  %2520 = vmatmul.mubr.bf16.gmra.mrb[64].mxu1 %v2296_v57  ;;  %v2244_v10 = vmax.f32 %v2116_v45, 0.0 }
 0x506   : > { %v2122_v8 = vadd.f32 %v2121_v6, %v5519_v30  ;;  %v2245_v12 = vmax.f32 %v2118_v27, 0.0 }
 0x507   : > { %v2246_v5 = vmax.f32 %v2120_v31, 0.0 }
 0x508   : > { %v2247_v29 = vmax.f32 %v2122_v8, 0.0 }
 0x509   : > { %v2298_v13 = vpack.c.bf16 %v2246_v5, %v2244_v10 }
 0x50a   : > { %v2299_v7 = vpack.c.bf16 %v2247_v29, %v2245_v12 }
 0x50c   : > { %2527 = vmatprep.mubr.bf16.mxu1 %v2299_v7 }
 0x50d   : > { %2528 = vmatmul.mubr.bf16.gmra.mrb[68].mxu1 %v2298_v13 }
 0x51b   : > { %v2125_v14 = vpop.f32.mrb[40].mxu0 }
 0x51c   : > { %v2126_v16 = vadd.f32 %v2125_v14, %v5515_v53  ;;  %v2127_v43 = vpop.f32.mrb[41].mxu0 }
 0x51d   : > { %v2128_v17 = vadd.f32 %v2127_v43, %v5519_v30  ;;  %v2129_v18 = vpop.f32.mrb[42].mxu0 }
 0x51e   : > { %v2130_v21 = vadd.f32 %v2129_v18, %v5515_v53  ;;  %v2131_v20 = vpop.f32.mrb[43].mxu0  ;;  %v2248_v22 = vmax.f32 %v2126_v16, 0.0 }
 0x51f   : > { %v2132_v11 = vadd.f32 %v2131_v20, %v5519_v30  ;;  %v2249_v26 = vmax.f32 %v2128_v17, 0.0 }
 0x520   : > { %v2250_v23 = vmax.f32 %v2130_v21, 0.0 }
 0x521   : > { %v2251_v33 = vmax.f32 %v2132_v11, 0.0 }
 0x522   : > { %v2300_v0 = vpack.c.bf16 %v2250_v23, %v2248_v22 }
 0x523   : > { %v2301_v49 = vpack.c.bf16 %v2251_v33, %v2249_v26  ;;  %v2135_v15 = vpop.f32.mrb[44].mxu0 }
 0x524   : > { %v2136_v59 = vadd.f32 %v2135_v15, %v5515_v53  ;;  %v2137_v34 = vpop.f32.mrb[45].mxu0 }
 0x525   : > { %v2138_v35 = vadd.f32 %v2137_v34, %v5519_v30  ;;  %v2139_v37 = vpop.f32.mrb[46].mxu0  ;;  %2535 = vmatprep.mubr.bf16.mxu1 %v2301_v49 }
 0x526   : > { %v2140_v39 = vadd.f32 %v2139_v37, %v5515_v53  ;;  %v2141_v4 = vpop.f32.mrb[47].mxu0  ;;  %2536 = vmatmul.mubr.bf16.gmra.mrb[72].mxu1 %v2300_v0  ;;  %v2252_v46 = vmax.f32 %v2136_v59, 0.0 }
 0x527   : > { %v2142_v28 = vadd.f32 %v2141_v4, %v5519_v30  ;;  %v2253_v50 = vmax.f32 %v2138_v35, 0.0 }
 0x528   : > { %v2254_v51 = vmax.f32 %v2140_v39, 0.0 }
 0x529   : > { %v2255_v54 = vmax.f32 %v2142_v28, 0.0 }
 0x52a   : > { %v2302_v42 = vpack.c.bf16 %v2254_v51, %v2252_v46 }
 0x52b   : > { %v2303_v19 = vpack.c.bf16 %v2255_v54, %v2253_v50 }
 0x52d   : > { %2543 = vmatprep.mubr.bf16.mxu1 %v2303_v19 }
 0x52e   : > { %2544 = vmatmul.mubr.bf16.gmra.mrb[76].mxu1 %v2302_v42 }
 0x540   : > { %v2145_v60 = vpop.f32.mrb[48].mxu0 }
 0x541   : > { %v2146_v25 = vadd.f32 %v2145_v60, %v5515_v53  ;;  %v2147_v9 = vpop.f32.mrb[49].mxu0 }
 0x542   : > { %v2148_v61 = vadd.f32 %v2147_v9, %v5519_v30  ;;  %v2149_v1 = vpop.f32.mrb[50].mxu0 }
 0x543   : > { %v2150_v2 = vadd.f32 %v2149_v1, %v5515_v53  ;;  %v2151_v62 = vpop.f32.mrb[51].mxu0  ;;  %v2256_v47 = vmax.f32 %v2146_v25, 0.0 }
 0x544   : > { %v2152_v55 = vadd.f32 %v2151_v62, %v5519_v30  ;;  %v2257_v57 = vmax.f32 %v2148_v61, 0.0 }
 0x545   : > { %v2258_v48 = vmax.f32 %v2150_v2, 0.0 }
 0x546   : > { %v2259_v36 = vmax.f32 %v2152_v55, 0.0 }
 0x547   : > { %v2304_v41 = vpack.c.bf16 %v2258_v48, %v2256_v47 }
 0x548   : > { %v2305_v45 = vpack.c.bf16 %v2259_v36, %v2257_v57  ;;  %v2155_v32 = vpop.f32.mrb[52].mxu0 }
 0x549   : > { %v2156_v27 = vadd.f32 %v2155_v32, %v5515_v53  ;;  %v2157_v3 = vpop.f32.mrb[53].mxu0 }
 0x54a   : > { %v2158_v31 = vadd.f32 %v2157_v3, %v5519_v30  ;;  %v2159_v6 = vpop.f32.mrb[54].mxu0  ;;  %2551 = vmatprep.mubr.bf16.mxu1 %v2305_v45 }
 0x54b   : > { %v2160_v8 = vadd.f32 %v2159_v6, %v5515_v53  ;;  %v2161_v10 = vpop.f32.mrb[55].mxu0  ;;  %2552 = vmatmul.mubr.bf16.gmra.mrb[80].mxu1 %v2304_v41  ;;  %v2260_v12 = vmax.f32 %v2156_v27, 0.0 }
 0x54c   : > { %v2162_v5 = vadd.f32 %v2161_v10, %v5519_v30  ;;  %v2261_v13 = vmax.f32 %v2158_v31, 0.0 }
 0x54d   : > { %v2262_v29 = vmax.f32 %v2160_v8, 0.0 }
 0x54e   : > { %v2263_v7 = vmax.f32 %v2162_v5, 0.0 }
 0x54f   : > { %v2306_v56 = vpack.c.bf16 %v2262_v29, %v2260_v12 }
 0x550   : > { %v2307_v40 = vpack.c.bf16 %v2263_v7, %v2261_v13 }
 0x552   : > { %2559 = vmatprep.mubr.bf16.mxu1 %v2307_v40 }
 0x553   : > { %2560 = vmatmul.mubr.bf16.gmra.mrb[84].mxu1 %v2306_v56 }
 0x561   : > { %v2165_v14 = vpop.f32.mrb[56].mxu0 }
 0x562   : > { %v2166_v16 = vadd.f32 %v2165_v14, %v5515_v53  ;;  %v2167_v43 = vpop.f32.mrb[57].mxu0 }
 0x563   : > { %v2168_v17 = vadd.f32 %v2167_v43, %v5519_v30  ;;  %v2169_v18 = vpop.f32.mrb[58].mxu0 }
 0x564   : > { %v2170_v21 = vadd.f32 %v2169_v18, %v5515_v53  ;;  %v2171_v20 = vpop.f32.mrb[59].mxu0  ;;  %v2264_v22 = vmax.f32 %v2166_v16, 0.0 }
 0x565   : > { %v2172_v11 = vadd.f32 %v2171_v20, %v5519_v30  ;;  %v2265_v26 = vmax.f32 %v2168_v17, 0.0 }
 0x566   : > { %v2266_v23 = vmax.f32 %v2170_v21, 0.0 }
 0x567   : > { %v2267_v33 = vmax.f32 %v2172_v11, 0.0 }
 0x568   : > { %v2308_v0 = vpack.c.bf16 %v2266_v23, %v2264_v22 }
 0x569   : > { %v2309_v49 = vpack.c.bf16 %v2267_v33, %v2265_v26  ;;  %v2175_v15 = vpop.f32.mrb[60].mxu0 }
 0x56a   : > { %v2176_v59 = vadd.f32 %v2175_v15, %v5515_v53  ;;  %v2177_v34 = vpop.f32.mrb[61].mxu0 }
 0x56b   : > { %v2178_v35 = vadd.f32 %v2177_v34, %v5519_v30  ;;  %v2179_v37 = vpop.f32.mrb[62].mxu0  ;;  %2567 = vmatprep.mubr.bf16.mxu1 %v2309_v49 }
 0x56c   : > { %v2180_v39 = vadd.f32 %v2179_v37, %v5515_v53  ;;  %v2181_v4 = vpop.f32.mrb[63].mxu0  ;;  %2568 = vmatmul.mubr.bf16.gmra.mrb[88].mxu1 %v2308_v0  ;;  %v2268_v38 = vmax.f32 %v2176_v59, 0.0 }
 0x56d   : > { %v2182_v28 = vadd.f32 %v2181_v4, %v5519_v30  ;;  %v2269_v51 = vmax.f32 %v2178_v35, 0.0  ;;  %v5584_v35 = vld [vmem:[#allocation19] ss:$0 sm:$0xff] }
 0x56e   : > { %v2270_v46 = vmax.f32 %v2180_v39, 0.0 }
 0x56f   : > { %v2271_v50 = vmax.f32 %v2182_v28, 0.0 }
 0x570   : > { %v2310_v54 = vpack.c.bf16 %v2270_v46, %v2268_v38 }
 0x571   : > { %v2311_v42 = vpack.c.bf16 %v2271_v50, %v2269_v51 }
 0x573   : > { %2575 = vmatprep.mubr.bf16.mxu1 %v2311_v42 }
 0x574   : > { %2576 = vmatmul.mubr.bf16.gmra.mrb[92].mxu1 %v2310_v54 }
 0x586   : > { %v2185_v19 = vpop.f32.mrb[64].mxu0 }
 0x587   : > { %v2186_v24 = vadd.f32 %v2185_v19, %v5515_v53  ;;  %v2187_v52 = vpop.f32.mrb[65].mxu0 }
 0x588   : > { %v2188_v44 = vadd.f32 %v2187_v52, %v5519_v30  ;;  %v2189_v58 = vpop.f32.mrb[66].mxu0 }
 0x589   : > { %v2190_v63 = vadd.f32 %v2189_v58, %v5515_v53  ;;  %v2191_v60 = vpop.f32.mrb[67].mxu0  ;;  %v2272_v9 = vmax.f32 %v2186_v24, 0.0 }
 0x58a   : > { %v2192_v25 = vadd.f32 %v2191_v60, %v5519_v30  ;;  %v2273_v1 = vmax.f32 %v2188_v44, 0.0 }
 0x58b   : > { %v2274_v61 = vmax.f32 %v2190_v63, 0.0 }
 0x58c   : > { %v2275_v2 = vmax.f32 %v2192_v25, 0.0 }
 0x58d   : > { %v2312_v62 = vpack.c.bf16 %v2274_v61, %v2272_v9 }
 0x58e   : > { %v2313_v55 = vpack.c.bf16 %v2275_v2, %v2273_v1  ;;  %v2195_v47 = vpop.f32.mrb[68].mxu0 }
 0x58f   : > { %v2196_v48 = vadd.f32 %v2195_v47, %v5515_v53  ;;  %v2197_v57 = vpop.f32.mrb[69].mxu0 }
 0x590   : > { %v2198_v36 = vadd.f32 %v2197_v57, %v5519_v30  ;;  %v2199_v41 = vpop.f32.mrb[70].mxu0  ;;  %2583 = vmatprep.mubr.bf16.mxu1 %v2313_v55 }
 0x591   : > { %v2200_v45 = vadd.f32 %v2199_v41, %v5515_v53  ;;  %v2201_v32 = vpop.f32.mrb[71].mxu0  ;;  %2584 = vmatmul.mubr.bf16.gmra.mrb[96].mxu1 %v2312_v62  ;;  %v2276_v3 = vmax.f32 %v2196_v48, 0.0 }
 0x592   : > { %v2202_v27 = vadd.f32 %v2201_v32, %v5519_v30  ;;  %v2277_v6 = vmax.f32 %v2198_v36, 0.0 }
 0x593   : > { %v2278_v31 = vmax.f32 %v2200_v45, 0.0 }
 0x594   : > { %v2279_v8 = vmax.f32 %v2202_v27, 0.0 }
 0x595   : > { %v2314_v10 = vpack.c.bf16 %v2278_v31, %v2276_v3 }
 0x596   : > { %v2315_v5 = vpack.c.bf16 %v2279_v8, %v2277_v6 }
 0x598   : > { %2591 = vmatprep.mubr.bf16.mxu1 %v2315_v5 }
 0x599   : > { %2592 = vmatmul.mubr.bf16.gmra.mrb[100].mxu1 %v2314_v10 }
 0x5a7   : > { %v2205_v12 = vpop.f32.mrb[72].mxu0 }
 0x5a8   : > { %v2206_v29 = vadd.f32 %v2205_v12, %v5515_v53  ;;  %v2207_v13 = vpop.f32.mrb[73].mxu0 }
 0x5a9   : > { %v2208_v7 = vadd.f32 %v2207_v13, %v5519_v30  ;;  %v2209_v56 = vpop.f32.mrb[74].mxu0 }
 0x5aa   : > { %v2210_v40 = vadd.f32 %v2209_v56, %v5515_v53  ;;  %v2211_v14 = vpop.f32.mrb[75].mxu0  ;;  %v2280_v43 = vmax.f32 %v2206_v29, 0.0 }
 0x5ab   : > { %v2212_v16 = vadd.f32 %v2211_v14, %v5519_v30  ;;  %v2281_v18 = vmax.f32 %v2208_v7, 0.0 }
 0x5ac   : > { %v2282_v17 = vmax.f32 %v2210_v40, 0.0 }
 0x5ad   : > { %v2283_v21 = vmax.f32 %v2212_v16, 0.0 }
 0x5ae   : > { %v2316_v20 = vpack.c.bf16 %v2282_v17, %v2280_v43 }
 0x5af   : > { %v2317_v11 = vpack.c.bf16 %v2283_v21, %v2281_v18  ;;  %v2215_v22 = vpop.f32.mrb[76].mxu0  ;;  %v3556_v23 = vpop.f32.mrb[48].mxu1 }
 0x5b0   : > { %v2216_v26 = vadd.f32 %v2215_v22, %v5515_v53  ;;  %v2217_v33 = vpop.f32.mrb[77].mxu0  ;;  %v3557_v0 = vpop.f32.mrb[49].mxu1 }
 0x5b1   : > { %v2218_v49 = vadd.f32 %v2217_v33, %v5519_v30  ;;  %v3558_v15 = vadd.f32 %v3557_v0, %v3556_v23  ;;  %v2219_v59 = vpop.f32.mrb[78].mxu0  ;;  %v3559_v34 = vpop.f32.mrb[50].mxu1  ;;  %2599 = vmatprep.mubr.bf16.mxu1 %v2317_v11 }
 0x5b2   : > { %v2220_v37 = vadd.f32 %v2219_v59, %v5515_v53  ;;  %v2221_v39 = vpop.f32.mrb[79].mxu0  ;;  %v3560_v4 = vpop.f32.mrb[51].mxu1  ;;  %2600 = vmatmul.mubr.bf16.gmra.mrb[104].mxu1 %v2316_v20  ;;  %v2284_v46 = vmax.f32 %v2216_v26, 0.0 }
 0x5b3   : > { %v2222_v28 = vadd.f32 %v2221_v39, %v5519_v30  ;;  %v3561_v38 = vadd.f32 %v3560_v4, %v3559_v34  ;;  %v2285_v50 = vmax.f32 %v2218_v49, 0.0  ;;  %v2490_v54 = vadd.f32 %v3558_v15, %v5584_v35 }
 0x5b4   : > { %v2286_v51 = vmax.f32 %v2220_v37, 0.0 }
 0x5b5   : > { %v2287_v42 = vmax.f32 %v2222_v28, 0.0  ;;  %v2493_v19 = vadd.f32 %v3561_v38, %v5584_v35 }
 0x5b6   : > { %v2318_v24 = vpack.c.bf16 %v2286_v51, %v2284_v46 }
 0x5b7   : > { %v2319_v52 = vpack.c.bf16 %v2287_v42, %v2285_v50  ;;  %v3562_v44 = vpop.f32.mrb[52].mxu1  ;;  %v2665_v58 = vpack.c.bf16 %v2493_v19, %v2490_v54 }
 0x5b8   : > { %v3563_v63 = vpop.f32.mrb[53].mxu1 }
 0x5b9   : > { %v3564_v53 = vadd.f32 %v3563_v63, %v3562_v44  ;;  %v3565_v60 = vpop.f32.mrb[54].mxu1  ;;  %2607 = vmatprep.mubr.bf16.mxu1 %v2319_v52  ;;  %3780 = vmatprep.mubr.bf16.mxu0 %v2665_v58 }
 0x5ba   : > { %v3566_v25 = vpop.f32.mrb[55].mxu1  ;;  %2608 = vmatmul.mubr.bf16.gmra.mrb[108].mxu1 %v2318_v24 }
 0x5bb   : > { %v3567_v30 = vadd.f32 %v3566_v25, %v3565_v60  ;;  %v2498_v9 = vadd.f32 %v3564_v53, %v5584_v35 }
 0x5bd   : > { %v2501_v61 = vadd.f32 %v3567_v30, %v5584_v35 }
 0x5bf   : > { %v2666_v1 = vpack.c.bf16 %v2501_v61, %v2498_v9  ;;  %v3568_v2 = vpop.f32.mrb[56].mxu1 }
 0x5c0   : > { %v3569_v62 = vpop.f32.mrb[57].mxu1 }
 0x5c1   : > { %v3570_v55 = vadd.f32 %v3569_v62, %v3568_v2  ;;  %v3571_v47 = vpop.f32.mrb[58].mxu1  ;;  %3781 = vmatmul.mubr.bf16.vlgmr.msra.gmra.mrb[80].mxu0 %v2666_v1 }
 0x5c2   : > { %v3572_v48 = vpop.f32.mrb[59].mxu1 }
 0x5c3   : > { %v2506_v57 = vadd.f32 %v3570_v55, %v5584_v35  ;;  %v3573_v36 = vadd.f32 %v3572_v48, %v3571_v47 }
 0x5c5   : > { %v2616_v41 = vmax.f32 %v2490_v54, %v2506_v57  ;;  %v2509_v45 = vadd.f32 %v3573_v36, %v5584_v35 }
 0x5c7   : > { %v2617_v32 = vmax.f32 %v2493_v19, %v2509_v45  ;;  %v3574_v27 = vpop.f32.mrb[60].mxu1  ;;  %v2667_v3 = vpack.c.bf16 %v2509_v45, %v2506_v57 }
 0x5c8   : > { %v3575_v31 = vpop.f32.mrb[61].mxu1 }
 0x5c9   : > { %v3576_v6 = vadd.f32 %v3575_v31, %v3574_v27  ;;  %v3577_v8 = vpop.f32.mrb[62].mxu1  ;;  %3784 = vmatprep.mubr.bf16.mxu0 %v2667_v3 }
 0x5ca   : > { %v3578_v10 = vpop.f32.mrb[63].mxu1 }
 0x5cb   : > { %v2514_v5 = vadd.f32 %v3576_v6, %v5584_v35  ;;  %v3579_v12 = vadd.f32 %v3578_v10, %v3577_v8 }
 0x5cd   : > { %v2618_v29 = vmax.f32 %v2498_v9, %v2514_v5  ;;  %v2517_v13 = vadd.f32 %v3579_v12, %v5584_v35 }
 0x5cf   : > { %v2619_v7 = vmax.f32 %v2501_v61, %v2517_v13  ;;  %v2668_v56 = vpack.c.bf16 %v2517_v13, %v2514_v5 }
 0x5d1   : > { %3785 = vmatmul.mubr.bf16.gmra.mrb[84].mxu0 %v2668_v56 }
 0x5d8   : > { %v3580_v40 = vpop.f32.mrb[64].mxu1 }
 0x5d9   : > { %v3581_v14 = vpop.f32.mrb[65].mxu1 }
 0x5da   : > { %v3582_v16 = vadd.f32 %v3581_v14, %v3580_v40  ;;  %v3583_v43 = vpop.f32.mrb[66].mxu1 }
 0x5db   : > { %v3584_v17 = vpop.f32.mrb[67].mxu1 }
 0x5dc   : > { %v2522_v18 = vadd.f32 %v3582_v16, %v5584_v35  ;;  %v3585_v21 = vadd.f32 %v3584_v17, %v3583_v43 }
 0x5de   : > { %v2620_v20 = vmax.f32 %v2616_v41, %v2522_v18  ;;  %v2525_v11 = vadd.f32 %v3585_v21, %v5584_v35 }
 0x5e0   : > { %v2621_v22 = vmax.f32 %v2617_v32, %v2525_v11  ;;  %v3586_v23 = vpop.f32.mrb[68].mxu1  ;;  %v2669_v26 = vpack.c.bf16 %v2525_v11, %v2522_v18 }
 0x5e1   : > { %v3587_v33 = vpop.f32.mrb[69].mxu1 }
 0x5e2   : > { %v3588_v0 = vadd.f32 %v3587_v33, %v3586_v23  ;;  %v3589_v49 = vpop.f32.mrb[70].mxu1  ;;  %3788 = vmatprep.mubr.bf16.mxu0 %v2669_v26 }
 0x5e3   : > { %v3590_v15 = vpop.f32.mrb[71].mxu1 }
 0x5e4   : > { %v2530_v59 = vadd.f32 %v3588_v0, %v5584_v35  ;;  %v3591_v34 = vadd.f32 %v3590_v15, %v3589_v49 }
 0x5e6   : > { %v2622_v37 = vmax.f32 %v2618_v29, %v2530_v59  ;;  %v2533_v39 = vadd.f32 %v3591_v34, %v5584_v35 }
 0x5e8   : > { %v2623_v4 = vmax.f32 %v2619_v7, %v2533_v39  ;;  %v2670_v28 = vpack.c.bf16 %v2533_v39, %v2530_v59 }
 0x5ea   : > { %3789 = vmatmul.mubr.bf16.gmra.mrb[88].mxu0 %v2670_v28 }
 0x5f9   : > { %v3592_v38 = vpop.f32.mrb[72].mxu1 }
 0x5fa   : > { %v3593_v46 = vpop.f32.mrb[73].mxu1 }
 0x5fb   : > { %v3594_v51 = vadd.f32 %v3593_v46, %v3592_v38  ;;  %v3595_v50 = vpop.f32.mrb[74].mxu1 }
 0x5fc   : > { %v3596_v54 = vpop.f32.mrb[75].mxu1 }
 0x5fd   : > { %v2538_v42 = vadd.f32 %v3594_v51, %v5584_v35  ;;  %v3597_v19 = vadd.f32 %v3596_v54, %v3595_v50 }
 0x5ff   : > { %v2624_v24 = vmax.f32 %v2620_v20, %v2538_v42  ;;  %v2541_v52 = vadd.f32 %v3597_v19, %v5584_v35 }
 0x601   : > { %v2625_v44 = vmax.f32 %v2621_v22, %v2541_v52  ;;  %v3598_v58 = vpop.f32.mrb[76].mxu1  ;;  %v2671_v63 = vpack.c.bf16 %v2541_v52, %v2538_v42 }
 0x602   : > { %v3599_v53 = vpop.f32.mrb[77].mxu1 }
 0x603   : > { %v3600_v60 = vadd.f32 %v3599_v53, %v3598_v58  ;;  %v3601_v25 = vpop.f32.mrb[78].mxu1  ;;  %3792 = vmatprep.mubr.bf16.mxu0 %v2671_v63 }
 0x604   : > { %v3602_v30 = vpop.f32.mrb[79].mxu1 }
 0x605   : > { %v2546_v9 = vadd.f32 %v3600_v60, %v5584_v35  ;;  %v3603_v61 = vadd.f32 %v3602_v30, %v3601_v25 }
 0x607   : > { %v2626_v1 = vmax.f32 %v2622_v37, %v2546_v9  ;;  %v2549_v2 = vadd.f32 %v3603_v61, %v5584_v35 }
 0x609   : > { %v2627_v62 = vmax.f32 %v2623_v4, %v2549_v2  ;;  %v2672_v55 = vpack.c.bf16 %v2549_v2, %v2546_v9 }
 0x60b   : > { %3793 = vmatmul.mubr.bf16.gmra.mrb[92].mxu0 %v2672_v55 }
 0x61e   : > { %v3604_v47 = vpop.f32.mrb[80].mxu1 }
 0x61f   : > { %v3605_v48 = vpop.f32.mrb[81].mxu1 }
 0x620   : > { %v3606_v57 = vadd.f32 %v3605_v48, %v3604_v47  ;;  %v3607_v36 = vpop.f32.mrb[82].mxu1 }
 0x621   : > { %v3608_v41 = vpop.f32.mrb[83].mxu1 }
 0x622   : > { %v2554_v45 = vadd.f32 %v3606_v57, %v5584_v35  ;;  %v3609_v32 = vadd.f32 %v3608_v41, %v3607_v36 }
 0x624   : > { %v2628_v27 = vmax.f32 %v2624_v24, %v2554_v45  ;;  %v2557_v3 = vadd.f32 %v3609_v32, %v5584_v35 }
 0x626   : > { %v2629_v31 = vmax.f32 %v2625_v44, %v2557_v3  ;;  %v3610_v6 = vpop.f32.mrb[84].mxu1  ;;  %v2673_v8 = vpack.c.bf16 %v2557_v3, %v2554_v45 }
 0x627   : > { %v3611_v10 = vpop.f32.mrb[85].mxu1 }
 0x628   : > { %v3612_v5 = vadd.f32 %v3611_v10, %v3610_v6  ;;  %v3613_v12 = vpop.f32.mrb[86].mxu1  ;;  %3796 = vmatprep.mubr.bf16.mxu0 %v2673_v8 }
 0x629   : > { %v3614_v29 = vpop.f32.mrb[87].mxu1 }
 0x62a   : > { %v2562_v13 = vadd.f32 %v3612_v5, %v5584_v35  ;;  %v3615_v7 = vadd.f32 %v3614_v29, %v3613_v12 }
 0x62c   : > { %v2630_v56 = vmax.f32 %v2626_v1, %v2562_v13  ;;  %v2565_v40 = vadd.f32 %v3615_v7, %v5584_v35 }
 0x62e   : > { %v2631_v14 = vmax.f32 %v2627_v62, %v2565_v40  ;;  %v2674_v16 = vpack.c.bf16 %v2565_v40, %v2562_v13 }
 0x630   : > { %3797 = vmatmul.mubr.bf16.gmra.mrb[96].mxu0 %v2674_v16 }
 0x63f   : > { %v3616_v43 = vpop.f32.mrb[88].mxu1 }
 0x640   : > { %v3617_v17 = vpop.f32.mrb[89].mxu1 }
 0x641   : > { %v3618_v18 = vadd.f32 %v3617_v17, %v3616_v43  ;;  %v3619_v21 = vpop.f32.mrb[90].mxu1 }
 0x642   : > { %v3620_v20 = vpop.f32.mrb[91].mxu1 }
 0x643   : > { %v2570_v11 = vadd.f32 %v3618_v18, %v5584_v35  ;;  %v3621_v22 = vadd.f32 %v3620_v20, %v3619_v21 }
 0x645   : > { %v2632_v23 = vmax.f32 %v2628_v27, %v2570_v11  ;;  %v2573_v26 = vadd.f32 %v3621_v22, %v5584_v35 }
 0x647   : > { %v2633_v33 = vmax.f32 %v2629_v31, %v2573_v26  ;;  %v3622_v0 = vpop.f32.mrb[92].mxu1  ;;  %v2675_v49 = vpack.c.bf16 %v2573_v26, %v2570_v11 }
 0x648   : > { %v3623_v15 = vpop.f32.mrb[93].mxu1 }
 0x649   : > { %v3624_v59 = vadd.f32 %v3623_v15, %v3622_v0  ;;  %v3625_v34 = vpop.f32.mrb[94].mxu1  ;;  %3800 = vmatprep.mubr.bf16.mxu0 %v2675_v49 }
 0x64a   : > { %v3626_v37 = vpop.f32.mrb[95].mxu1 }
 0x64b   : > { %v2578_v39 = vadd.f32 %v3624_v59, %v5584_v35  ;;  %v3627_v4 = vadd.f32 %v3626_v37, %v3625_v34 }
 0x64d   : > { %v2634_v28 = vmax.f32 %v2630_v56, %v2578_v39  ;;  %v2581_v38 = vadd.f32 %v3627_v4, %v5584_v35 }
 0x64f   : > { %v2635_v46 = vmax.f32 %v2631_v14, %v2581_v38  ;;  %v2676_v51 = vpack.c.bf16 %v2581_v38, %v2578_v39 }
 0x651   : > { %3801 = vmatmul.mubr.bf16.gmra.mrb[100].mxu0 %v2676_v51 }
 0x664   : > { %v3628_v50 = vpop.f32.mrb[96].mxu1 }
 0x665   : > { %v3629_v54 = vpop.f32.mrb[97].mxu1 }
 0x666   : > { %v3630_v42 = vadd.f32 %v3629_v54, %v3628_v50  ;;  %v3631_v19 = vpop.f32.mrb[98].mxu1 }
 0x667   : > { %v3632_v24 = vpop.f32.mrb[99].mxu1 }
 0x668   : > { %v2586_v52 = vadd.f32 %v3630_v42, %v5584_v35  ;;  %v3633_v44 = vadd.f32 %v3632_v24, %v3631_v19 }
 0x66a   : > { %v2636_v58 = vmax.f32 %v2632_v23, %v2586_v52  ;;  %v2589_v63 = vadd.f32 %v3633_v44, %v5584_v35 }
 0x66c   : > { %v2637_v53 = vmax.f32 %v2633_v33, %v2589_v63  ;;  %v3634_v60 = vpop.f32.mrb[100].mxu1  ;;  %v2677_v25 = vpack.c.bf16 %v2589_v63, %v2586_v52 }
 0x66d   : > { %v3635_v30 = vpop.f32.mrb[101].mxu1 }
 0x66e   : > { %v3636_v9 = vadd.f32 %v3635_v30, %v3634_v60  ;;  %v3637_v61 = vpop.f32.mrb[102].mxu1  ;;  %3804 = vmatprep.mubr.bf16.mxu0 %v2677_v25 }
 0x66f   : > { %v3638_v1 = vpop.f32.mrb[103].mxu1 }
 0x670   : > { %v2594_v2 = vadd.f32 %v3636_v9, %v5584_v35  ;;  %v3639_v62 = vadd.f32 %v3638_v1, %v3637_v61 }
 0x672   : > { %v2638_v55 = vmax.f32 %v2634_v28, %v2594_v2  ;;  %v2597_v47 = vadd.f32 %v3639_v62, %v5584_v35 }
 0x674   : > { %v2639_v48 = vmax.f32 %v2635_v46, %v2597_v47  ;;  %v2678_v57 = vpack.c.bf16 %v2597_v47, %v2594_v2 }
 0x676   : > { %3805 = vmatmul.mubr.bf16.gmra.mrb[104].mxu0 %v2678_v57 }
 0x685   : > { %v3640_v36 = vpop.f32.mrb[104].mxu1 }
 0x686   : > { %v3641_v41 = vpop.f32.mrb[105].mxu1 }
 0x687   : > { %v3642_v45 = vadd.f32 %v3641_v41, %v3640_v36  ;;  %v3643_v32 = vpop.f32.mrb[106].mxu1 }
 0x688   : > { %v3644_v27 = vpop.f32.mrb[107].mxu1 }
 0x689   : > { %v2602_v3 = vadd.f32 %v3642_v45, %v5584_v35  ;;  %v3645_v31 = vadd.f32 %v3644_v27, %v3643_v32 }
 0x68b   : > { %v2640_v6 = vmax.f32 %v2636_v58, %v2602_v3  ;;  %v2605_v8 = vadd.f32 %v3645_v31, %v5584_v35 }
 0x68d   : > { %v2641_v10 = vmax.f32 %v2637_v53, %v2605_v8  ;;  %v3646_v5 = vpop.f32.mrb[108].mxu1  ;;  %v2679_v12 = vpack.c.bf16 %v2605_v8, %v2602_v3 }
 0x68e   : > { %v3647_v29 = vpop.f32.mrb[109].mxu1 }
 0x68f   : > { %v2644_v13 = vmax.f32 %v2640_v6, %v2641_v10  ;;  %v3648_v7 = vadd.f32 %v3647_v29, %v3646_v5  ;;  %v3649_v56 = vpop.f32.mrb[110].mxu1  ;;  %3808 = vmatprep.mubr.bf16.mxu0 %v2679_v12 }
 0x690   : > { %v3650_v40 = vpop.f32.mrb[111].mxu1 }
 0x691   : > { %v2610_v14 = vadd.f32 %v3648_v7, %v5584_v35  ;;  %v3651_v16 = vadd.f32 %v3650_v40, %v3649_v56 }
 0x693   : > { %v2642_v43 = vmax.f32 %v2638_v55, %v2610_v14  ;;  %v2613_v17 = vadd.f32 %v3651_v16, %v5584_v35 }
 0x694   : > { %v3782_v18 = vpop.f32.mrb[80].mxu0 }
 0x695   : > { %v2643_v21 = vmax.f32 %v2639_v48, %v2613_v17  ;;  %v3465_v20 = vpack.c.bf16 %v3782_v18, %v3782_v18  ;;  %v2779_v11 = vpop.f32.mrb[81].mxu0  ;;  %v2680_v22 = vpack.c.bf16 %v2613_v17, %v2610_v14 }
 0x696   : > { %v3463_v23 = vpack.c.bf16 %v2779_v11, %v2779_v11  ;;  %v3783_v26 = vpop.f32.mrb[82].mxu0 }
 0x697   : > { %v2645_v33 = vmax.f32 %v2642_v43, %v2643_v21  ;;  %3037 = vst.msk [vmem:[%s5621_s0 + $0x8] sm:$0xf] %vm3034_vm1, %v3465_v20  ;;  %v3466_v0 = vpack.c.bf16 %v3783_v26, %v3783_v26  ;;  %v2782_v49 = vpop.f32.mrb[83].mxu0  ;;  %3809 = vmatmul.mubr.bf16.gmra.mrb[108].mxu0 %v2680_v22 }
 0x698   : > { %3035 = vst.msk [vmem:[%s5621_s0] sm:$0xf] %vm3034_vm1, %v3463_v23  ;;  %v3464_v35 = vpack.c.bf16 %v2782_v49, %v2782_v49 }
 0x699   : > { %v2646_v15 = vmax.f32 %v2644_v13, %v2645_v33  ;;  %3038 = vst.msk [vmem:[%s5621_s0 + $0xc] sm:$0xf] %vm3034_vm1, %v3466_v0 }
 0x69a   : > { %3036 = vst.msk [vmem:[%s5621_s0 + $0x4] sm:$0xf] %vm3034_vm1, %v3464_v35 }
 0x69b   : > { %v2647_v59 = vrot.slane %v2646_v15, 4 }
 0x69d   : > { %v2648_v34 = vmax.f32 %v2646_v15, %v2647_v59 }
 0x69f   : > { %v2649_v37 = vrot.slane %v2648_v34, 2 }
 0x6a1   : > { %v2650_v39 = vmax.f32 %v2648_v34, %v2649_v37 }
 0x6a3   : > { %v2651_v4 = vrot.slane %v2650_v39, 1 }
 0x6a4   : > { %v3786_v28 = vpop.f32.mrb[84].mxu0 }
 0x6a5   : > { %v3469_v38 = vpack.c.bf16 %v3786_v28, %v3786_v28  ;;  %v2795_v46 = vpop.f32.mrb[85].mxu0  ;;  %v2652_v51 = vmax.f32 %v2650_v39, %v2651_v4 }
 0x6a6   : > { %v3467_v50 = vpack.c.bf16 %v2795_v46, %v2795_v46  ;;  %v3787_v54 = vpop.f32.mrb[86].mxu0 }
 0x6a7   : > { %3041 = vst.msk [vmem:[%s5621_s0 + $0x18] sm:$0xf] %vm3034_vm1, %v3469_v38  ;;  %v3470_v42 = vpack.c.bf16 %v3787_v54, %v3787_v54  ;;  %v2798_v19 = vpop.f32.mrb[87].mxu0  ;;  %2657 = vst [vmem:[%s634_s12] sm:$0x1] %v2652_v51 }
 0x6a8   : > { %3039 = vst.msk [vmem:[%s5621_s0 + $0x10] sm:$0xf] %vm3034_vm1, %v3467_v50  ;;  %v3468_v24 = vpack.c.bf16 %v2798_v19, %v2798_v19 }
 0x6a9   : > { %3042 = vst.msk [vmem:[%s5621_s0 + $0x1c] sm:$0xf] %vm3034_vm1, %v3470_v42 }
 0x6aa   : > { %3040 = vst.msk [vmem:[%s5621_s0 + $0x14] sm:$0xf] %vm3034_vm1, %v3468_v24 }
 0x6bd   : > { %v3790_v52 = vpop.f32.mrb[88].mxu0 }
 0x6be   : > { %v3473_v44 = vpack.c.bf16 %v3790_v52, %v3790_v52  ;;  %v2811_v58 = vpop.f32.mrb[89].mxu0 }
 0x6bf   : > { %v3471_v63 = vpack.c.bf16 %v2811_v58, %v2811_v58  ;;  %v3791_v53 = vpop.f32.mrb[90].mxu0 }
 0x6c0   : > { %3045 = vst.msk [vmem:[%s5621_s0 + $0x28] sm:$0xf] %vm3034_vm1, %v3473_v44  ;;  %v3474_v60 = vpack.c.bf16 %v3791_v53, %v3791_v53  ;;  %v2814_v25 = vpop.f32.mrb[91].mxu0 }
 0x6c1   : > { %3043 = vst.msk [vmem:[%s5621_s0 + $0x20] sm:$0xf] %vm3034_vm1, %v3471_v63  ;;  %v3472_v30 = vpack.c.bf16 %v2814_v25, %v2814_v25 }
 0x6c2   : > { %3046 = vst.msk [vmem:[%s5621_s0 + $0x2c] sm:$0xf] %vm3034_vm1, %v3474_v60 }
 0x6c3   : > { %3044 = vst.msk [vmem:[%s5621_s0 + $0x24] sm:$0xf] %vm3034_vm1, %v3472_v30 }
 0x6de   : > { %v3794_v9 = vpop.f32.mrb[92].mxu0 }
 0x6df   : > { %v3477_v61 = vpack.c.bf16 %v3794_v9, %v3794_v9  ;;  %v2827_v1 = vpop.f32.mrb[93].mxu0 }
 0x6e0   : > { %v3475_v2 = vpack.c.bf16 %v2827_v1, %v2827_v1  ;;  %v3795_v62 = vpop.f32.mrb[94].mxu0 }
 0x6e1   : > { %3049 = vst.msk [vmem:[%s5621_s0 + $0x38] sm:$0xf] %vm3034_vm1, %v3477_v61  ;;  %v3478_v55 = vpack.c.bf16 %v3795_v62, %v3795_v62  ;;  %v2830_v47 = vpop.f32.mrb[95].mxu0 }
 0x6e2   : > { %3047 = vst.msk [vmem:[%s5621_s0 + $0x30] sm:$0xf] %vm3034_vm1, %v3475_v2  ;;  %v3476_v48 = vpack.c.bf16 %v2830_v47, %v2830_v47 }
 0x6e3   : > { %3050 = vst.msk [vmem:[%s5621_s0 + $0x3c] sm:$0xf] %vm3034_vm1, %v3478_v55 }
 0x6e4   : > { %3048 = vst.msk [vmem:[%s5621_s0 + $0x34] sm:$0xf] %vm3034_vm1, %v3476_v48 }
 0x6e5   : > { %4465 = shalt.err (!%p4462_p8)
}
 0x6e6   : > { %s4466_s12 = scalar_lea.hbm %s5664_s19, 16  ;;  %s4470_s21 = scalar_lea.hbm %s5841_s22, 32 }
 0x6e7   : > { %p4467_p9 = scmp.ne.s32.totalorder %s5664_s19, %s4466_s12  ;;  %p4471_p10 = scmp.lt.u32.totalorder %s5664_s19, %s5841_s22 }
 0x6e8   : > { %p4472_p7 = scmp.lt.u32.totalorder %s4470_s21, %s4466_s12  ;;  %p4474_p6 = scmp.lt.u32.totalorder %s4466_s12, %s5664_s19 }
 0x6e9   : > { %p4468_p1 = pnand %p4467_p9, %p5842_p2 }
 0x6ea   : > { %p4473_p13 = por %p4472_p7, %p4471_p10 }
 0x6eb   : > { %p4469_p3 = pneg %p4468_p1 }
 0x6ec   : > { %p4475_p5 = por %p4474_p6, %p4473_p13 }
 0x6ee   : > { %p4476_p4 = pnand %p4475_p5, %p4469_p3 }
 0x6f0   : > { %4479 = shalt.err (!%p4476_p4)
}
 0x6f1   : > { %3867 = dma.vmem_to_hbm [thread:$0]  (%p5842_p2), %s3104_s17, 16, %s5664_s19, %s3073_s3  }
 0x6f2   : > { %s3495_s5 = sshll.u32 %s5840_s14, 11  ;;  %s3087_s17 = sshll.u32 %s5621_s0, 4  ;;  %s5717_s17 = int_to_ptr.vmem [resolvable:$true] %s3087_s17 }
 0x6f3   : > { %s5843_s2 = sld [smem:[#allocation43_spill]]  ;;  %s3068_s14 = scalar_lea.sflag [#allocation4], %s5051_s28 }
 0x6f4   : > { %s4480_s18 = scalar_lea.vmem %s5717_s17, 2048  ;;  %s4612_s15 = smov [#allocation22]  }
 0x6f5   : > { %p4481_p11 = scmp.ne.s32.totalorder %s5717_s17, %s4480_s18  ;;  %s4484_s21 = sshll.u32 %s4612_s15, 4  ;;  %s4485_s21 = int_to_ptr.vmem [resolvable:$false] %s4484_s21 }
 0x6f6   : > { %s4486_s20 = scalar_lea.vmem %s4485_s21, 4096  ;;  %p4487_p8 = scmp.lt.s32.totalorder %s5717_s17, %s4485_s21 }
 0x6f7   : > { %p4482_p12 = pnand %p4481_p11, %p5842_p2  ;;  %p4488_p9 = scmp.lt.s32.totalorder %s4486_s20, %s4480_s18 }
 0x6f9   : > { %s5715_s12 = scalar_lea.hbm %s5843_s2, %s3495_s5  ;;  %p4483_p0 = pneg %p4482_p12 }
 0x6fa   : > { %p4489_p1 = por %p4488_p9, %p4487_p8 }
 0x6fc   : > { %p4490_p3 = pnand %p4489_p1, %p4483_p0 }
 0x703   : > { %v3798_v57 = vpop.f32.mrb[96].mxu0 }
 0x704   : > { %v3481_v36 = vpack.c.bf16 %v3798_v57, %v3798_v57  ;;  %v2843_v41 = vpop.f32.mrb[97].mxu0 }
 0x705   : > { %v3479_v45 = vpack.c.bf16 %v2843_v41, %v2843_v41  ;;  %v3799_v32 = vpop.f32.mrb[98].mxu0 }
 0x706   : > { %3053 = vst.msk [vmem:[%s5621_s0 + $0x48] sm:$0xf] %vm3034_vm1, %v3481_v36  ;;  %v3482_v27 = vpack.c.bf16 %v3799_v32, %v3799_v32  ;;  %v2846_v3 = vpop.f32.mrb[99].mxu0 }
 0x707   : > { %3051 = vst.msk [vmem:[%s5621_s0 + $0x40] sm:$0xf] %vm3034_vm1, %v3479_v45  ;;  %v3480_v31 = vpack.c.bf16 %v2846_v3, %v2846_v3 }
 0x708   : > { %3054 = vst.msk [vmem:[%s5621_s0 + $0x4c] sm:$0xf] %vm3034_vm1, %v3482_v27 }
 0x709   : > { %3052 = vst.msk [vmem:[%s5621_s0 + $0x44] sm:$0xf] %vm3034_vm1, %v3480_v31 }
 0x724   : > { %v3802_v6 = vpop.f32.mrb[100].mxu0 }
 0x725   : > { %v3485_v8 = vpack.c.bf16 %v3802_v6, %v3802_v6  ;;  %v2859_v10 = vpop.f32.mrb[101].mxu0 }
 0x726   : > { %v3483_v5 = vpack.c.bf16 %v2859_v10, %v2859_v10  ;;  %v3803_v12 = vpop.f32.mrb[102].mxu0 }
 0x727   : > { %3057 = vst.msk [vmem:[%s5621_s0 + $0x58] sm:$0xf] %vm3034_vm1, %v3485_v8  ;;  %v3486_v29 = vpack.c.bf16 %v3803_v12, %v3803_v12  ;;  %v2862_v13 = vpop.f32.mrb[103].mxu0 }
 0x728   : > { %3055 = vst.msk [vmem:[%s5621_s0 + $0x50] sm:$0xf] %vm3034_vm1, %v3483_v5  ;;  %v3484_v7 = vpack.c.bf16 %v2862_v13, %v2862_v13 }
 0x729   : > { %3058 = vst.msk [vmem:[%s5621_s0 + $0x5c] sm:$0xf] %vm3034_vm1, %v3486_v29 }
 0x72a   : > { %3056 = vst.msk [vmem:[%s5621_s0 + $0x54] sm:$0xf] %vm3034_vm1, %v3484_v7 }
 0x749   : > { %v3806_v56 = vpop.f32.mrb[104].mxu0 }
 0x74a   : > { %v3489_v40 = vpack.c.bf16 %v3806_v56, %v3806_v56  ;;  %v2875_v14 = vpop.f32.mrb[105].mxu0 }
 0x74b   : > { %v3487_v16 = vpack.c.bf16 %v2875_v14, %v2875_v14  ;;  %v3807_v43 = vpop.f32.mrb[106].mxu0 }
 0x74c   : > { %3061 = vst.msk [vmem:[%s5621_s0 + $0x68] sm:$0xf] %vm3034_vm1, %v3489_v40  ;;  %v3490_v17 = vpack.c.bf16 %v3807_v43, %v3807_v43  ;;  %v2878_v18 = vpop.f32.mrb[107].mxu0 }
 0x74d   : > { %3059 = vst.msk [vmem:[%s5621_s0 + $0x60] sm:$0xf] %vm3034_vm1, %v3487_v16  ;;  %v3488_v21 = vpack.c.bf16 %v2878_v18, %v2878_v18 }
 0x74e   : > { %3062 = vst.msk [vmem:[%s5621_s0 + $0x6c] sm:$0xf] %vm3034_vm1, %v3490_v17 }
 0x74f   : > { %3060 = vst.msk [vmem:[%s5621_s0 + $0x64] sm:$0xf] %vm3034_vm1, %v3488_v21 }
 0x76a   : > { %v3810_v20 = vpop.f32.mrb[108].mxu0 }
 0x76b   : > { %v3493_v11 = vpack.c.bf16 %v3810_v20, %v3810_v20  ;;  %v2891_v22 = vpop.f32.mrb[109].mxu0 }
 0x76c   : > { %v3491_v23 = vpack.c.bf16 %v2891_v22, %v2891_v22  ;;  %v3811_v26 = vpop.f32.mrb[110].mxu0 }
 0x76d   : > { %3065 = vst.msk [vmem:[%s5621_s0 + $0x78] sm:$0xf] %vm3034_vm1, %v3493_v11  ;;  %v3494_v33 = vpack.c.bf16 %v3811_v26, %v3811_v26  ;;  %v2894_v0 = vpop.f32.mrb[111].mxu0 }
 0x76e   : > { %3063 = vst.msk [vmem:[%s5621_s0 + $0x70] sm:$0xf] %vm3034_vm1, %v3491_v23  ;;  %v3492_v49 = vpack.c.bf16 %v2894_v0, %v2894_v0 }
 0x76f   : > { %3066 = vst.msk [vmem:[%s5621_s0 + $0x7c] sm:$0xf] %vm3034_vm1, %v3494_v33 }
 0x770   : > { %3064 = vst.msk [vmem:[%s5621_s0 + $0x74] sm:$0xf] %vm3034_vm1, %v3492_v49 }
 0x771   : > { %4493 = shalt.err (!%p4490_p3)
}
 0x772   : > { %s4494_s0 = scalar_lea.hbm %s5715_s12, 2048  ;;  %s4498_s19 = scalar_lea.hbm %s5843_s2, 4096 }
 0x773   : > { %p4495_p10 = scmp.ne.s32.totalorder %s5715_s12, %s4494_s0  ;;  %p4499_p6 = scmp.lt.u32.totalorder %s5715_s12, %s5843_s2 }
 0x774   : > { %p4500_p5 = scmp.lt.u32.totalorder %s4498_s19, %s4494_s0  ;;  %p4502_p11 = scmp.lt.u32.totalorder %s4494_s0, %s5715_s12 }
 0x775   : > { %p4496_p7 = pnand %p4495_p10, %p5842_p2 }
 0x776   : > { %p4501_p4 = por %p4500_p5, %p4499_p6 }
 0x777   : > { %p4497_p13 = pneg %p4496_p7 }
 0x778   : > { %p4503_p12 = por %p4502_p11, %p4501_p4 }
 0x77a   : > { %p4504_p0 = pnand %p4503_p12, %p4497_p13 }
 0x77c   : > { %4507 = shalt.err (!%p4504_p0)
}
 0x77d   : > { %s4613_s18 = smov 64   ;;  %s4614_s21 = smov 4  }
 0x77e   : > { %3866 = dma.vmem_to_hbm [thread:$0]  (%p5842_p2), %s5717_s17, 2048, %s5715_s12, %s3068_s14, %s4613_s18, %s4613_s18, %s4614_s21  }
 0x77f PF: > { %s3115_s20 = sand.u32 1, %s4570_s25   ;;  %p5844_p8 = scmp.ne.s32.totalorder %s5830_s24, 0 }
 0x780   : > { %p5845_p9 = scmp.ge.s32.totalorder %s4590_s30, 2  ;;  %s3116_s0 = scalar_lea.sflag [#allocation4], %s3115_s20 }
 0x782   : > { %p3909_p1 = pnand %p5845_p9, %p5844_p8 }
 0x784   : > { %4561 = dma.done.wait (!%p3909_p1), %s3116_s0, 2048  }
 0x785   : > { %4563 = vsyncadd (!%p3909_p1), %s3116_s0, 4294965248  ;;  %s3125_s4 = scalar_lea.sflag [#allocation24], %s3115_s20 }
 0x786   : > { %4565 = dma.done.wait (!%p3909_p1), %s3125_s4, 16  }
 0x787   : > { %4567 = vsyncadd (!%p3909_p1), %s3125_s4, 4294967280  ;;  %s39_s30 = sadd.s32 1, %s4590_s30   ;;  %s5846_s25 = smov %s4574_s26 }
 0x788   : > { %p36_p3 = scmp.ge.s32.totalorder %s39_s30, 4   ;;  %s5847_s26 = smov %s4578_s27 }
 0x789   : > { %s5848_s27 = smov %s4996_s23  ;;  %s5849_s28 = smov %s4586_s29 }
 0x78a   : > { %s5850_s29 = smov %s5852_s16  ;;  %38 = sbr.rel (!%p36_p3) target bundleno = 23 (0x17), region = 182 }
 0x791   :  { %3129 = vsyncpa [#allocation3], 1 }
 0x792   :  { %3131 = vsyncpa [#allocation3 + $0x1], 1 }
 0x793   :  { %3132 = vsyncpa [#allocation6], 1 }
 0x794   :  { %3133 = vsyncpa [#allocation9], 1 }
 0x795   :  { %3134 = vsyncpa [#allocation12], 1 }
 0x796   :  { %3135 = vsyncpa [#allocation15], 1 }
 0x797   :  { %3136 = vsyncpa [#allocation18], 1 }
 0x798   :  { %3137 = vsyncpa [#allocation21], 1 }
 0x799   :  { %3138 = vsyncpa [#allocation4], 1 }
 0x79a   :  { %3140 = vsyncpa [#allocation4 + $0x1], 1 }
 0x79b   :  { %3141 = vsyncpa [#allocation24], 1 }
 0x79c   :  { %3143 = vsyncpa [#allocation24 + $0x1], 1 }

</bundles_post_ra>
